<compile_context>
chip_gen: v6e
topology: v6e:2x2x1
jax: 0.10.0
libtpu: 0.0.40
codegen_flags: <defaults>
</compile_context>

<pallas_src>
import jax
import jax.numpy as jnp
from jax import lax
from jax.experimental import pallas as pl
from jax.experimental.pallas import tpu as pltpu

HIDDEN = 8
NUM_LAYERS = 1
SEQ_LEN = 48
INPUT_SIZE = 5
NUM_CLASSES = 2


def lstm_fc_kernel(x_ref, wih_ref, whh_ref, b_ref, fcw_ref, fcb_ref,
                   out_ref, hs_ref):
    """Whole LSTM recurrence + fused FC in a single kernel invocation.

    x_ref  : (T*B, I)   time-major input, flattened over (t, b)
    wih_ref: (I, 4H)    input->gates weight (transposed torch weight_ih_l0)
    whh_ref: (H, 4H)    hidden->gates weight (transposed torch weight_hh_l0)
    b_ref  : (1, 4H)    b_ih + b_hh
    fcw_ref: (T*H, C)   fc weight transposed; row index == flatten index t*H+h
    fcb_ref: (1, C)     fc bias
    out_ref: (B, C)     logits
    hs_ref : (B, T*H)   VMEM scratch holding all hidden states (lane-dense)
    """
    H = HIDDEN
    T = SEQ_LEN
    B = out_ref.shape[0]

    # ---- hoisted input projection: one (T*B, I) @ (I, 4H) matmul + bias ----
    gates_all = (jnp.dot(x_ref[...], wih_ref[...],
                         preferred_element_type=jnp.float32)
                 + b_ref[...])                               # (T*B, 4H)

    whh = whh_ref[...]                                       # (H, 4H)

    # tanh only for the `g` gate (PyTorch gate order [i, f, g, o]); hoisted.
    lane = lax.broadcasted_iota(jnp.int32, (B, 4 * H), 1)
    is_g = (lane >= 2 * H) & (lane < 3 * H)                  # (B, 4H) bool

    h = jnp.zeros((B, H), jnp.float32)
    c = jnp.zeros((B, H), jnp.float32)

    # Fully unrolled recurrence: T is static, so all slices are static and the
    # only loop-carried values are (h, c); each h_t is stored immediately.
    for t in range(T):
        g_pre = gates_all[t * B:(t + 1) * B, :]              # (B, 4H)
        if t == 0:
            gates = g_pre                                    # h0 == 0
        else:
            gates = g_pre + jnp.dot(h, whh,
                                    preferred_element_type=jnp.float32)
        # Fused nonlinearities: one sigmoid + one tanh for all four gates.
        sig = jax.nn.sigmoid(gates)
        th = jnp.tanh(gates)
        act = jnp.where(is_g, th, sig)                       # (B, 4H)
        i_g = act[:, 0 * H:1 * H]
        f_g = act[:, 1 * H:2 * H]
        g_g = act[:, 2 * H:3 * H]
        o_g = act[:, 3 * H:4 * H]
        c = f_g * c + i_g * g_g
        h = o_g * jnp.tanh(c)
        hs_ref[:, t * H:(t + 1) * H] = h                     # lane-dense stash

    # ---- fused fc: ONE (B, T*H) @ (T*H, C) matmul over the flat sequence ----
    out_ref[...] = (jnp.dot(hs_ref[...], fcw_ref[...],
                            preferred_element_type=jnp.float32)
                    + fcb_ref[...])


def lstm_forward(x, params):
    """x: (B, T, I) float32 (batch_first, like the PyTorch module)."""
    w_ih, w_hh, b_ih, b_hh, fc_w, fc_b = params
    B, T, I = x.shape
    assert T == SEQ_LEN and I == INPUT_SIZE
    H = HIDDEN
    C = NUM_CLASSES

    # Time-major, flattened over (t, b) so the input projection is one matmul.
    x2d = jnp.transpose(x, (1, 0, 2)).reshape(T * B, I)           # (T*B, I)
    wih_t = jnp.transpose(w_ih)                                   # (I, 4H)
    whh_t = jnp.transpose(w_hh)                                   # (H, 4H)
    b = (b_ih + b_hh)[None, :]                                    # (1, 4H)
    # fc weight (C, T*H) -> (T*H, C); row index matches flatten order t*H + h.
    fcw_t = jnp.transpose(fc_w)                                   # (T*H, C)
    fcb = fc_b[None, :]                                           # (1, C)

    vmem_spec = lambda: pl.BlockSpec(memory_space=pltpu.MemorySpace.VMEM)
    out = pl.pallas_call(
        lstm_fc_kernel,
        out_shape=jax.ShapeDtypeStruct((B, C), jnp.float32),
        in_specs=[vmem_spec() for _ in range(6)],
        out_specs=vmem_spec(),
        scratch_shapes=[pltpu.VMEM((B, T * H), jnp.float32)],
    )(x2d, wih_t, whh_t, b, fcw_t, fcb)
    return out
    # TODO(synk): if batch grows, add a leading grid axis over batch blocks with
    # dimension_semantics=("parallel",) to use the second TensorCore on v7x.


def reference_forward(x, params):
    """Pure-JAX reference matching torch.nn.LSTM + Linear semantics."""
    w_ih, w_hh, b_ih, b_hh, fc_w, fc_b = params
    B, T, I = x.shape
    H = HIDDEN

    def cell(carry, x_t):
        h, c = carry
        gates = x_t @ w_ih.T + h @ w_hh.T + b_ih + b_hh
        i = jax.nn.sigmoid(gates[:, :H])
        f = jax.nn.sigmoid(gates[:, H:2 * H])
        g = jnp.tanh(gates[:, 2 * H:3 * H])
        o = jax.nn.sigmoid(gates[:, 3 * H:])
        c = f * c + i * g
        h = o * jnp.tanh(c)
        return (h, c), h

    init = (jnp.zeros((B, H), jnp.float32), jnp.zeros((B, H), jnp.float32))
    _, hs = lax.scan(cell, init, jnp.transpose(x, (1, 0, 2)))
    lstm_out = jnp.transpose(hs, (1, 0, 2)).reshape(B, -1)        # (B, T*H)
    return lstm_out @ fc_w.T + fc_b


if __name__ == "__main__":
    key = jax.random.PRNGKey(0)
    ks = jax.random.split(key, 7)
    B = 2

    # Deterministic, PyTorch-style uniform(-1/sqrt(fan), 1/sqrt(fan)) init.
    k_lstm = 1.0 / (HIDDEN ** 0.5)
    w_ih = jax.random.uniform(ks[0], (4 * HIDDEN, INPUT_SIZE), jnp.float32, -k_lstm, k_lstm)
    w_hh = jax.random.uniform(ks[1], (4 * HIDDEN, HIDDEN), jnp.float32, -k_lstm, k_lstm)
    b_ih = jax.random.uniform(ks[2], (4 * HIDDEN,), jnp.float32, -k_lstm, k_lstm)
    b_hh = jax.random.uniform(ks[3], (4 * HIDDEN,), jnp.float32, -k_lstm, k_lstm)
    k_fc = 1.0 / ((HIDDEN * SEQ_LEN) ** 0.5)
    fc_w = jax.random.uniform(ks[4], (NUM_CLASSES, HIDDEN * SEQ_LEN), jnp.float32, -k_fc, k_fc)
    fc_b = jax.random.uniform(ks[5], (NUM_CLASSES,), jnp.float32, -k_fc, k_fc)

    x = jax.random.normal(ks[6], (B, SEQ_LEN, INPUT_SIZE), jnp.float32)

    params = (w_ih, w_hh, b_ih, b_hh, fc_w, fc_b)
    out = lstm_forward(x, params)
    out = jax.block_until_ready(out)

    ref = reference_forward(x, params)
    assert out.shape == (B, NUM_CLASSES)
    assert jnp.allclose(out, ref, atol=1e-4, rtol=1e-4), (out, ref)
    print("KERNEL_OK")
</pallas_src>

<mosaic_0001>
module attributes {stable_mosaic.version = 11 : i64} {
  func.func @lstm_fc_kernel(%arg0: memref<96x5xf32, #tpu.memory_space<vmem>>, %arg1: memref<5x32xf32, #tpu.memory_space<vmem>>, %arg2: memref<8x32xf32, #tpu.memory_space<vmem>>, %arg3: memref<1x32xf32, #tpu.memory_space<vmem>>, %arg4: memref<384x2xf32, #tpu.memory_space<vmem>>, %arg5: memref<1x2xf32, #tpu.memory_space<vmem>>, %arg6: memref<2x2xf32, #tpu.memory_space<vmem>>, %arg7: memref<2x384xf32, #tpu.memory_space<vmem>>) attributes {dimension_semantics = [], scalar_prefetch = 0 : i64, scratch_operands = 1 : i64, tpu.core_type = #tpu.core_type<tc>} {
    %c0 = arith.constant 0 : index
    %c0_0 = arith.constant 0 : index
    %0 = vector.load %arg0[%c0, %c0_0] : memref<96x5xf32, #tpu.memory_space<vmem>>, vector<96x5xf32>
    %c0_1 = arith.constant 0 : index
    %c0_2 = arith.constant 0 : index
    %1 = vector.load %arg1[%c0_1, %c0_2] : memref<5x32xf32, #tpu.memory_space<vmem>>, vector<5x32xf32>
    %cst = arith.constant dense<0.000000e+00> : vector<96x32xf32>
    %2 = tpu.matmul %0, %1, %cst {dimension_numbers = #tpu.dot_dimension_numbers<[1], [0], [0], [1], [0, 0, 1, 1], [], []>} : vector<96x5xf32>, vector<5x32xf32>, vector<96x32xf32> -> vector<96x32xf32>
    %c0_3 = arith.constant 0 : index
    %c0_4 = arith.constant 0 : index
    %3 = vector.load %arg3[%c0_3, %c0_4] : memref<1x32xf32, #tpu.memory_space<vmem>>, vector<1x32xf32>
    %4 = vector.broadcast %3 : vector<1x32xf32> to vector<96x32xf32>
    %5 = arith.addf %2, %4 : vector<96x32xf32>
    %c0_5 = arith.constant 0 : index
    %c0_6 = arith.constant 0 : index
    %6 = vector.load %arg2[%c0_5, %c0_6] : memref<8x32xf32, #tpu.memory_space<vmem>>, vector<8x32xf32>
    %7 = tpu.iota {dimensions = array<i32: 1>} : vector<2x32xi32>
    %c16_i32 = arith.constant 16 : i32
    %8 = vector.broadcast %c16_i32 : i32 to vector<2x32xi32>
    %9 = arith.cmpi sge, %7, %8 : vector<2x32xi32>
    %c24_i32 = arith.constant 24 : i32
    %10 = vector.broadcast %c24_i32 : i32 to vector<2x32xi32>
    %11 = arith.cmpi slt, %7, %10 : vector<2x32xi32>
    %12 = arith.andi %9, %11 : vector<2x32xi1>
    %cst_7 = arith.constant 0.000000e+00 : f32
    %13 = vector.broadcast %cst_7 : f32 to vector<2x8xf32>
    %14 = vector.extract_strided_slice %5 {offsets = [0, 0], sizes = [2, 32], strides = [1, 1]} : vector<96x32xf32> to vector<2x32xf32>
    %15 = arith.negf %14 : vector<2x32xf32>
    %16 = math.exp %15 : vector<2x32xf32>
    %cst_8 = arith.constant 1.000000e+00 : f32
    %17 = vector.broadcast %cst_8 : f32 to vector<2x32xf32>
    %18 = arith.addf %17, %16 : vector<2x32xf32>
    %19 = arith.divf %17, %18 : vector<2x32xf32>
    %20 = math.tanh %14 : vector<2x32xf32>
    %21 = arith.select %12, %20, %19 : vector<2x32xi1>, vector<2x32xf32>
    %22 = vector.extract_strided_slice %21 {offsets = [0, 0], sizes = [2, 8], strides = [1, 1]} : vector<2x32xf32> to vector<2x8xf32>
    %23 = vector.extract_strided_slice %21 {offsets = [0, 8], sizes = [2, 8], strides = [1, 1]} : vector<2x32xf32> to vector<2x8xf32>
    %24 = vector.extract_strided_slice %21 {offsets = [0, 16], sizes = [2, 8], strides = [1, 1]} : vector<2x32xf32> to vector<2x8xf32>
    %25 = vector.extract_strided_slice %21 {offsets = [0, 24], sizes = [2, 8], strides = [1, 1]} : vector<2x32xf32> to vector<2x8xf32>
    %26 = arith.mulf %23, %13 : vector<2x8xf32>
    %27 = arith.mulf %22, %24 : vector<2x8xf32>
    %28 = arith.addf %26, %27 : vector<2x8xf32>
    %29 = math.tanh %28 : vector<2x8xf32>
    %30 = arith.mulf %25, %29 : vector<2x8xf32>
    %c0_9 = arith.constant 0 : index
    %c0_10 = arith.constant 0 : index
    %31 = vector.load %arg7[%c0_9, %c0_10] : memref<2x384xf32, #tpu.memory_space<vmem>>, vector<2x8xf32>
    tpu.vector_store %arg7[%c0_9, %c0_10], %30 {strides = array<i32>} : memref<2x384xf32, #tpu.memory_space<vmem>>, vector<2x8xf32>,
    %32 = vector.extract_strided_slice %5 {offsets = [2, 0], sizes = [2, 32], strides = [1, 1]} : vector<96x32xf32> to vector<2x32xf32>
    %cst_11 = arith.constant dense<0.000000e+00> : vector<2x32xf32>
    %33 = tpu.matmul %30, %6, %cst_11 {dimension_numbers = #tpu.dot_dimension_numbers<[1], [0], [0], [1], [0, 0, 1, 1], [], []>} : vector<2x8xf32>, vector<8x32xf32>, vector<2x32xf32> -> vector<2x32xf32>
    %34 = arith.addf %32, %33 : vector<2x32xf32>
    %35 = arith.negf %34 : vector<2x32xf32>
    %36 = math.exp %35 : vector<2x32xf32>
    %cst_12 = arith.constant 1.000000e+00 : f32
    %37 = vector.broadcast %cst_12 : f32 to vector<2x32xf32>
    %38 = arith.addf %37, %36 : vector<2x32xf32>
    %39 = arith.divf %37, %38 : vector<2x32xf32>
    %40 = math.tanh %34 : vector<2x32xf32>
    %41 = arith.select %12, %40, %39 : vector<2x32xi1>, vector<2x32xf32>
    %42 = vector.extract_strided_slice %41 {offsets = [0, 0], sizes = [2, 8], strides = [1, 1]} : vector<2x32xf32> to vector<2x8xf32>
    %43 = vector.extract_strided_slice %41 {offsets = [0, 8], sizes = [2, 8], strides = [1, 1]} : vector<2x32xf32> to vector<2x8xf32>
    %44 = vector.extract_strided_slice %41 {offsets = [0, 16], sizes = [2, 8], strides = [1, 1]} : vector<2x32xf32> to vector<2x8xf32>
    %45 = vector.extract_strided_slice %41 {offsets = [0, 24], sizes = [2, 8], strides = [1, 1]} : vector<2x32xf32> to vector<2x8xf32>
    %46 = arith.mulf %43, %28 : vector<2x8xf32>
    %47 = arith.mulf %42, %44 : vector<2x8xf32>
    %48 = arith.addf %46, %47 : vector<2x8xf32>
    %49 = math.tanh %48 : vector<2x8xf32>
    %50 = arith.mulf %45, %49 : vector<2x8xf32>
    %c0_13 = arith.constant 0 : index
    %c8 = arith.constant 8 : index
    %51 = vector.load %arg7[%c0_13, %c8] : memref<2x384xf32, #tpu.memory_space<vmem>>, vector<2x8xf32>
    tpu.vector_store %arg7[%c0_13, %c8], %50 {strides = array<i32>} : memref<2x384xf32, #tpu.memory_space<vmem>>, vector<2x8xf32>,
    %52 = vector.extract_strided_slice %5 {offsets = [4, 0], sizes = [2, 32], strides = [1, 1]} : vector<96x32xf32> to vector<2x32xf32>
    %cst_14 = arith.constant dense<0.000000e+00> : vector<2x32xf32>
    %53 = tpu.matmul %50, %6, %cst_14 {dimension_numbers = #tpu.dot_dimension_numbers<[1], [0], [0], [1], [0, 0, 1, 1], [], []>} : vector<2x8xf32>, vector<8x32xf32>, vector<2x32xf32> -> vector<2x32xf32>
    %54 = arith.addf %52, %53 : vector<2x32xf32>
    %55 = arith.negf %54 : vector<2x32xf32>
    %56 = math.exp %55 : vector<2x32xf32>
    %cst_15 = arith.constant 1.000000e+00 : f32
    %57 = vector.broadcast %cst_15 : f32 to vector<2x32xf32>
    %58 = arith.addf %57, %56 : vector<2x32xf32>
    %59 = arith.divf %57, %58 : vector<2x32xf32>
    %60 = math.tanh %54 : vector<2x32xf32>
    %61 = arith.select %12, %60, %59 : vector<2x32xi1>, vector<2x32xf32>
    %62 = vector.extract_strided_slice %61 {offsets = [0, 0], sizes = [2, 8], strides = [1, 1]} : vector<2x32xf32> to vector<2x8xf32>
    %63 = vector.extract_strided_slice %61 {offsets = [0, 8], sizes = [2, 8], strides = [1, 1]} : vector<2x32xf32> to vector<2x8xf32>
    %64 = vector.extract_strided_slice %61 {offsets = [0, 16], sizes = [2, 8], strides = [1, 1]} : vector<2x32xf32> to vector<2x8xf32>
    %65 = vector.extract_strided_slice %61 {offsets = [0, 24], sizes = [2, 8], strides = [1, 1]} : vector<2x32xf32> to vector<2x8xf32>
    %66 = arith.mulf %63, %48 : vector<2x8xf32>
    %67 = arith.mulf %62, %64 : vector<2x8xf32>
    %68 = arith.addf %66, %67 : vector<2x8xf32>
    %69 = math.tanh %68 : vector<2x8xf32>
    %70 = arith.mulf %65, %69 : vector<2x8xf32>
    %c0_16 = arith.constant 0 : index
    %c16 = arith.constant 16 : index
    %71 = vector.load %arg7[%c0_16, %c16] : memref<2x384xf32, #tpu.memory_space<vmem>>, vector<2x8xf32>
    tpu.vector_store %arg7[%c0_16, %c16], %70 {strides = array<i32>} : memref<2x384xf32, #tpu.memory_space<vmem>>, vector<2x8xf32>,
    %72 = vector.extract_strided_slice %5 {offsets = [6, 0], sizes = [2, 32], strides = [1, 1]} : vector<96x32xf32> to vector<2x32xf32>
    %cst_17 = arith.constant dense<0.000000e+00> : vector<2x32xf32>
    %73 = tpu.matmul %70, %6, %cst_17 {dimension_numbers = #tpu.dot_dimension_numbers<[1], [0], [0], [1], [0, 0, 1, 1], [], []>} : vector<2x8xf32>, vector<8x32xf32>, vector<2x32xf32> -> vector<2x32xf32>
    %74 = arith.addf %72, %73 : vector<2x32xf32>
    %75 = arith.negf %74 : vector<2x32xf32>
    %76 = math.exp %75 : vector<2x32xf32>
    %cst_18 = arith.constant 1.000000e+00 : f32
    %77 = vector.broadcast %cst_18 : f32 to vector<2x32xf32>
    %78 = arith.addf %77, %76 : vector<2x32xf32>
    %79 = arith.divf %77, %78 : vector<2x32xf32>
    %80 = math.tanh %74 : vector<2x32xf32>
    %81 = arith.select %12, %80, %79 : vector<2x32xi1>, vector<2x32xf32>
    %82 = vector.extract_strided_slice %81 {offsets = [0, 0], sizes = [2, 8], strides = [1, 1]} : vector<2x32xf32> to vector<2x8xf32>
    %83 = vector.extract_strided_slice %81 {offsets = [0, 8], sizes = [2, 8], strides = [1, 1]} : vector<2x32xf32> to vector<2x8xf32>
    %84 = vector.extract_strided_slice %81 {offsets = [0, 16], sizes = [2, 8], strides = [1, 1]} : vector<2x32xf32> to vector<2x8xf32>
    %85 = vector.extract_strided_slice %81 {offsets = [0, 24], sizes = [2, 8], strides = [1, 1]} : vector<2x32xf32> to vector<2x8xf32>
    %86 = arith.mulf %83, %68 : vector<2x8xf32>
    %87 = arith.mulf %82, %84 : vector<2x8xf32>
    %88 = arith.addf %86, %87 : vector<2x8xf32>
    %89 = math.tanh %88 : vector<2x8xf32>
    %90 = arith.mulf %85, %89 : vector<2x8xf32>
    %c0_19 = arith.constant 0 : index
    %c24 = arith.constant 24 : index
    %91 = vector.load %arg7[%c0_19, %c24] : memref<2x384xf32, #tpu.memory_space<vmem>>, vector<2x8xf32>
    tpu.vector_store %arg7[%c0_19, %c24], %90 {strides = array<i32>} : memref<2x384xf32, #tpu.memory_space<vmem>>, vector<2x8xf32>,
    %92 = vector.extract_strided_slice %5 {offsets = [8, 0], sizes = [2, 32], strides = [1, 1]} : vector<96x32xf32> to vector<2x32xf32>
    %cst_20 = arith.constant dense<0.000000e+00> : vector<2x32xf32>
    %93 = tpu.matmul %90, %6, %cst_20 {dimension_numbers = #tpu.dot_dimension_numbers<[1], [0], [0], [1], [0, 0, 1, 1], [], []>} : vector<2x8xf32>, vector<8x32xf32>, vector<2x32xf32> -> vector<2x32xf32>
    %94 = arith.addf %92, %93 : vector<2x32xf32>
    %95 = arith.negf %94 : vector<2x32xf32>
    %96 = math.exp %95 : vector<2x32xf32>
    %cst_21 = arith.constant 1.000000e+00 : f32
    %97 = vector.broadcast %cst_21 : f32 to vector<2x32xf32>
    %98 = arith.addf %97, %96 : vector<2x32xf32>
    %99 = arith.divf %97, %98 : vector<2x32xf32>
    %100 = math.tanh %94 : vector<2x32xf32>
    %101 = arith.select %12, %100, %99 : vector<2x32xi1>, vector<2x32xf32>
    %102 = vector.extract_strided_slice %101 {offsets = [0, 0], sizes = [2, 8], strides = [1, 1]} : vector<2x32xf32> to vector<2x8xf32>
    %103 = vector.extract_strided_slice %101 {offsets = [0, 8], sizes = [2, 8], strides = [1, 1]} : vector<2x32xf32> to vector<2x8xf32>
    %104 = vector.extract_strided_slice %101 {offsets = [0, 16], sizes = [2, 8], strides = [1, 1]} : vector<2x32xf32> to vector<2x8xf32>
    %105 = vector.extract_strided_slice %101 {offsets = [0, 24], sizes = [2, 8], strides = [1, 1]} : vector<2x32xf32> to vector<2x8xf32>
    %106 = arith.mulf %103, %88 : vector<2x8xf32>
    %107 = arith.mulf %102, %104 : vector<2x8xf32>
    %108 = arith.addf %106, %107 : vector<2x8xf32>
    %109 = math.tanh %108 : vector<2x8xf32>
    %110 = arith.mulf %105, %109 : vector<2x8xf32>
    %c0_22 = arith.constant 0 : index
    %c32 = arith.constant 32 : index
    %111 = vector.load %arg7[%c0_22, %c32] : memref<2x384xf32, #tpu.memory_space<vmem>>, vector<2x8xf32>
    tpu.vector_store %arg7[%c0_22, %c32], %110 {strides = array<i32>} : memref<2x384xf32, #tpu.memory_space<vmem>>, vector<2x8xf32>,
    %112 = vector.extract_strided_slice %5 {offsets = [10, 0], sizes = [2, 32], strides = [1, 1]} : vector<96x32xf32> to vector<2x32xf32>
    %cst_23 = arith.constant dense<0.000000e+00> : vector<2x32xf32>
    %113 = tpu.matmul %110, %6, %cst_23 {dimension_numbers = #tpu.dot_dimension_numbers<[1], [0], [0], [1], [0, 0, 1, 1], [], []>} : vector<2x8xf32>, vector<8x32xf32>, vector<2x32xf32> -> vector<2x32xf32>
    %114 = arith.addf %112, %113 : vector<2x32xf32>
    %115 = arith.negf %114 : vector<2x32xf32>
    %116 = math.exp %115 : vector<2x32xf32>
    %cst_24 = arith.constant 1.000000e+00 : f32
    %117 = vector.broadcast %cst_24 : f32 to vector<2x32xf32>
    %118 = arith.addf %117, %116 : vector<2x32xf32>
    %119 = arith.divf %117, %118 : vector<2x32xf32>
    %120 = math.tanh %114 : vector<2x32xf32>
    %121 = arith.select %12, %120, %119 : vector<2x32xi1>, vector<2x32xf32>
    %122 = vector.extract_strided_slice %121 {offsets = [0, 0], sizes = [2, 8], strides = [1, 1]} : vector<2x32xf32> to vector<2x8xf32>
    %123 = vector.extract_strided_slice %121 {offsets = [0, 8], sizes = [2, 8], strides = [1, 1]} : vector<2x32xf32> to vector<2x8xf32>
    %124 = vector.extract_strided_slice %121 {offsets = [0, 16], sizes = [2, 8], strides = [1, 1]} : vector<2x32xf32> to vector<2x8xf32>
    %125 = vector.extract_strided_slice %121 {offsets = [0, 24], sizes = [2, 8], strides = [1, 1]} : vector<2x32xf32> to vector<2x8xf32>
    %126 = arith.mulf %123, %108 : vector<2x8xf32>
    %127 = arith.mulf %122, %124 : vector<2x8xf32>
    %128 = arith.addf %126, %127 : vector<2x8xf32>
    %129 = math.tanh %128 : vector<2x8xf32>
    %130 = arith.mulf %125, %129 : vector<2x8xf32>
    %c0_25 = arith.constant 0 : index
    %c40 = arith.constant 40 : index
    %131 = vector.load %arg7[%c0_25, %c40] : memref<2x384xf32, #tpu.memory_space<vmem>>, vector<2x8xf32>
    tpu.vector_store %arg7[%c0_25, %c40], %130 {strides = array<i32>} : memref<2x384xf32, #tpu.memory_space<vmem>>, vector<2x8xf32>,
    %132 = vector.extract_strided_slice %5 {offsets = [12, 0], sizes = [2, 32], strides = [1, 1]} : vector<96x32xf32> to vector<2x32xf32>
    %cst_26 = arith.constant dense<0.000000e+00> : vector<2x32xf32>
    %133 = tpu.matmul %130, %6, %cst_26 {dimension_numbers = #tpu.dot_dimension_numbers<[1], [0], [0], [1], [0, 0, 1, 1], [], []>} : vector<2x8xf32>, vector<8x32xf32>, vector<2x32xf32> -> vector<2x32xf32>
    %134 = arith.addf %132, %133 : vector<2x32xf32>
    %135 = arith.negf %134 : vector<2x32xf32>
    %136 = math.exp %135 : vector<2x32xf32>
    %cst_27 = arith.constant 1.000000e+00 : f32
    %137 = vector.broadcast %cst_27 : f32 to vector<2x32xf32>
    %138 = arith.addf %137, %136 : vector<2x32xf32>
    %139 = arith.divf %137, %138 : vector<2x32xf32>
    %140 = math.tanh %134 : vector<2x32xf32>
    %141 = arith.select %12, %140, %139 : vector<2x32xi1>, vector<2x32xf32>
    %142 = vector.extract_strided_slice %141 {offsets = [0, 0], sizes = [2, 8], strides = [1, 1]} : vector<2x32xf32> to vector<2x8xf32>
    %143 = vector.extract_strided_slice %141 {offsets = [0, 8], sizes = [2, 8], strides = [1, 1]} : vector<2x32xf32> to vector<2x8xf32>
    %144 = vector.extract_strided_slice %141 {offsets = [0, 16], sizes = [2, 8], strides = [1, 1]} : vector<2x32xf32> to vector<2x8xf32>
    %145 = vector.extract_strided_slice %141 {offsets = [0, 24], sizes = [2, 8], strides = [1, 1]} : vector<2x32xf32> to vector<2x8xf32>
    %146 = arith.mulf %143, %128 : vector<2x8xf32>
    %147 = arith.mulf %142, %144 : vector<2x8xf32>
    %148 = arith.addf %146, %147 : vector<2x8xf32>
    %149 = math.tanh %148 : vector<2x8xf32>
    %150 = arith.mulf %145, %149 : vector<2x8xf32>
    %c0_28 = arith.constant 0 : index
    %c48 = arith.constant 48 : index
    %151 = vector.load %arg7[%c0_28, %c48] : memref<2x384xf32, #tpu.memory_space<vmem>>, vector<2x8xf32>
    tpu.vector_store %arg7[%c0_28, %c48], %150 {strides = array<i32>} : memref<2x384xf32, #tpu.memory_space<vmem>>, vector<2x8xf32>,
    %152 = vector.extract_strided_slice %5 {offsets = [14, 0], sizes = [2, 32], strides = [1, 1]} : vector<96x32xf32> to vector<2x32xf32>
    %cst_29 = arith.constant dense<0.000000e+00> : vector<2x32xf32>
    %153 = tpu.matmul %150, %6, %cst_29 {dimension_numbers = #tpu.dot_dimension_numbers<[1], [0], [0], [1], [0, 0, 1, 1], [], []>} : vector<2x8xf32>, vector<8x32xf32>, vector<2x32xf32> -> vector<2x32xf32>
    %154 = arith.addf %152, %153 : vector<2x32xf32>
    %155 = arith.negf %154 : vector<2x32xf32>
    %156 = math.exp %155 : vector<2x32xf32>
    %cst_30 = arith.constant 1.000000e+00 : f32
    %157 = vector.broadcast %cst_30 : f32 to vector<2x32xf32>
    %158 = arith.addf %157, %156 : vector<2x32xf32>
    %159 = arith.divf %157, %158 : vector<2x32xf32>
    %160 = math.tanh %154 : vector<2x32xf32>
    %161 = arith.select %12, %160, %159 : vector<2x32xi1>, vector<2x32xf32>
    %162 = vector.extract_strided_slice %161 {offsets = [0, 0], sizes = [2, 8], strides = [1, 1]} : vector<2x32xf32> to vector<2x8xf32>
    %163 = vector.extract_strided_slice %161 {offsets = [0, 8], sizes = [2, 8], strides = [1, 1]} : vector<2x32xf32> to vector<2x8xf32>
    %164 = vector.extract_strided_slice %161 {offsets = [0, 16], sizes = [2, 8], strides = [1, 1]} : vector<2x32xf32> to vector<2x8xf32>
    %165 = vector.extract_strided_slice %161 {offsets = [0, 24], sizes = [2, 8], strides = [1, 1]} : vector<2x32xf32> to vector<2x8xf32>
    %166 = arith.mulf %163, %148 : vector<2x8xf32>
    %167 = arith.mulf %162, %164 : vector<2x8xf32>
    %168 = arith.addf %166, %167 : vector<2x8xf32>
    %169 = math.tanh %168 : vector<2x8xf32>
    %170 = arith.mulf %165, %169 : vector<2x8xf32>
    %c0_31 = arith.constant 0 : index
    %c56 = arith.constant 56 : index
    %171 = vector.load %arg7[%c0_31, %c56] : memref<2x384xf32, #tpu.memory_space<vmem>>, vector<2x8xf32>
    tpu.vector_store %arg7[%c0_31, %c56], %170 {strides = array<i32>} : memref<2x384xf32, #tpu.memory_space<vmem>>, vector<2x8xf32>,
    %172 = vector.extract_strided_slice %5 {offsets = [16, 0], sizes = [2, 32], strides = [1, 1]} : vector<96x32xf32> to vector<2x32xf32>
    %cst_32 = arith.constant dense<0.000000e+00> : vector<2x32xf32>
    %173 = tpu.matmul %170, %6, %cst_32 {dimension_numbers = #tpu.dot_dimension_numbers<[1], [0], [0], [1], [0, 0, 1, 1], [], []>} : vector<2x8xf32>, vector<8x32xf32>, vector<2x32xf32> -> vector<2x32xf32>
    %174 = arith.addf %172, %173 : vector<2x32xf32>
    %175 = arith.negf %174 : vector<2x32xf32>
    %176 = math.exp %175 : vector<2x32xf32>
    %cst_33 = arith.constant 1.000000e+00 : f32
    %177 = vector.broadcast %cst_33 : f32 to vector<2x32xf32>
    %178 = arith.addf %177, %176 : vector<2x32xf32>
    %179 = arith.divf %177, %178 : vector<2x32xf32>
    %180 = math.tanh %174 : vector<2x32xf32>
    %181 = arith.select %12, %180, %179 : vector<2x32xi1>, vector<2x32xf32>
    %182 = vector.extract_strided_slice %181 {offsets = [0, 0], sizes = [2, 8], strides = [1, 1]} : vector<2x32xf32> to vector<2x8xf32>
    %183 = vector.extract_strided_slice %181 {offsets = [0, 8], sizes = [2, 8], strides = [1, 1]} : vector<2x32xf32> to vector<2x8xf32>
    %184 = vector.extract_strided_slice %181 {offsets = [0, 16], sizes = [2, 8], strides = [1, 1]} : vector<2x32xf32> to vector<2x8xf32>
    %185 = vector.extract_strided_slice %181 {offsets = [0, 24], sizes = [2, 8], strides = [1, 1]} : vector<2x32xf32> to vector<2x8xf32>
    %186 = arith.mulf %183, %168 : vector<2x8xf32>
    %187 = arith.mulf %182, %184 : vector<2x8xf32>
    %188 = arith.addf %186, %187 : vector<2x8xf32>
    %189 = math.tanh %188 : vector<2x8xf32>
    %190 = arith.mulf %185, %189 : vector<2x8xf32>
    %c0_34 = arith.constant 0 : index
    %c64 = arith.constant 64 : index
    %191 = vector.load %arg7[%c0_34, %c64] : memref<2x384xf32, #tpu.memory_space<vmem>>, vector<2x8xf32>
    tpu.vector_store %arg7[%c0_34, %c64], %190 {strides = array<i32>} : memref<2x384xf32, #tpu.memory_space<vmem>>, vector<2x8xf32>,
    %192 = vector.extract_strided_slice %5 {offsets = [18, 0], sizes = [2, 32], strides = [1, 1]} : vector<96x32xf32> to vector<2x32xf32>
    %cst_35 = arith.constant dense<0.000000e+00> : vector<2x32xf32>
    %193 = tpu.matmul %190, %6, %cst_35 {dimension_numbers = #tpu.dot_dimension_numbers<[1], [0], [0], [1], [0, 0, 1, 1], [], []>} : vector<2x8xf32>, vector<8x32xf32>, vector<2x32xf32> -> vector<2x32xf32>
    %194 = arith.addf %192, %193 : vector<2x32xf32>
    %195 = arith.negf %194 : vector<2x32xf32>
    %196 = math.exp %195 : vector<2x32xf32>
    %cst_36 = arith.constant 1.000000e+00 : f32
    %197 = vector.broadcast %cst_36 : f32 to vector<2x32xf32>
    %198 = arith.addf %197, %196 : vector<2x32xf32>
    %199 = arith.divf %197, %198 : vector<2x32xf32>
    %200 = math.tanh %194 : vector<2x32xf32>
    %201 = arith.select %12, %200, %199 : vector<2x32xi1>, vector<2x32xf32>
    %202 = vector.extract_strided_slice %201 {offsets = [0, 0], sizes = [2, 8], strides = [1, 1]} : vector<2x32xf32> to vector<2x8xf32>
    %203 = vector.extract_strided_slice %201 {offsets = [0, 8], sizes = [2, 8], strides = [1, 1]} : vector<2x32xf32> to vector<2x8xf32>
    %204 = vector.extract_strided_slice %201 {offsets = [0, 16], sizes = [2, 8], strides = [1, 1]} : vector<2x32xf32> to vector<2x8xf32>
    %205 = vector.extract_strided_slice %201 {offsets = [0, 24], sizes = [2, 8], strides = [1, 1]} : vector<2x32xf32> to vector<2x8xf32>
    %206 = arith.mulf %203, %188 : vector<2x8xf32>
    %207 = arith.mulf %202, %204 : vector<2x8xf32>
    %208 = arith.addf %206, %207 : vector<2x8xf32>
    %209 = math.tanh %208 : vector<2x8xf32>
    %210 = arith.mulf %205, %209 : vector<2x8xf32>
    %c0_37 = arith.constant 0 : index
    %c72 = arith.constant 72 : index
    %211 = vector.load %arg7[%c0_37, %c72] : memref<2x384xf32, #tpu.memory_space<vmem>>, vector<2x8xf32>
    tpu.vector_store %arg7[%c0_37, %c72], %210 {strides = array<i32>} : memref<2x384xf32, #tpu.memory_space<vmem>>, vector<2x8xf32>,
    %212 = vector.extract_strided_slice %5 {offsets = [20, 0], sizes = [2, 32], strides = [1, 1]} : vector<96x32xf32> to vector<2x32xf32>
    %cst_38 = arith.constant dense<0.000000e+00> : vector<2x32xf32>
    %213 = tpu.matmul %210, %6, %cst_38 {dimension_numbers = #tpu.dot_dimension_numbers<[1], [0], [0], [1], [0, 0, 1, 1], [], []>} : vector<2x8xf32>, vector<8x32xf32>, vector<2x32xf32> -> vector<2x32xf32>
    %214 = arith.addf %212, %213 : vector<2x32xf32>
    %215 = arith.negf %214 : vector<2x32xf32>
    %216 = math.exp %215 : vector<2x32xf32>
    %cst_39 = arith.constant 1.000000e+00 : f32
    %217 = vector.broadcast %cst_39 : f32 to vector<2x32xf32>
    %218 = arith.addf %217, %216 : vector<2x32xf32>
    %219 = arith.divf %217, %218 : vector<2x32xf32>
    %220 = math.tanh %214 : vector<2x32xf32>
    %221 = arith.select %12, %220, %219 : vector<2x32xi1>, vector<2x32xf32>
    %222 = vector.extract_strided_slice %221 {offsets = [0, 0], sizes = [2, 8], strides = [1, 1]} : vector<2x32xf32> to vector<2x8xf32>
    %223 = vector.extract_strided_slice %221 {offsets = [0, 8], sizes = [2, 8], strides = [1, 1]} : vector<2x32xf32> to vector<2x8xf32>
    %224 = vector.extract_strided_slice %221 {offsets = [0, 16], sizes = [2, 8], strides = [1, 1]} : vector<2x32xf32> to vector<2x8xf32>
    %225 = vector.extract_strided_slice %221 {offsets = [0, 24], sizes = [2, 8], strides = [1, 1]} : vector<2x32xf32> to vector<2x8xf32>
    %226 = arith.mulf %223, %208 : vector<2x8xf32>
    %227 = arith.mulf %222, %224 : vector<2x8xf32>
    %228 = arith.addf %226, %227 : vector<2x8xf32>
    %229 = math.tanh %228 : vector<2x8xf32>
    %230 = arith.mulf %225, %229 : vector<2x8xf32>
    %c0_40 = arith.constant 0 : index
    %c80 = arith.constant 80 : index
    %231 = vector.load %arg7[%c0_40, %c80] : memref<2x384xf32, #tpu.memory_space<vmem>>, vector<2x8xf32>
    tpu.vector_store %arg7[%c0_40, %c80], %230 {strides = array<i32>} : memref<2x384xf32, #tpu.memory_space<vmem>>, vector<2x8xf32>,
    %232 = vector.extract_strided_slice %5 {offsets = [22, 0], sizes = [2, 32], strides = [1, 1]} : vector<96x32xf32> to vector<2x32xf32>
    %cst_41 = arith.constant dense<0.000000e+00> : vector<2x32xf32>
    %233 = tpu.matmul %230, %6, %cst_41 {dimension_numbers = #tpu.dot_dimension_numbers<[1], [0], [0], [1], [0, 0, 1, 1], [], []>} : vector<2x8xf32>, vector<8x32xf32>, vector<2x32xf32> -> vector<2x32xf32>
    %234 = arith.addf %232, %233 : vector<2x32xf32>
    %235 = arith.negf %234 : vector<2x32xf32>
    %236 = math.exp %235 : vector<2x32xf32>
    %cst_42 = arith.constant 1.000000e+00 : f32
    %237 = vector.broadcast %cst_42 : f32 to vector<2x32xf32>
    %238 = arith.addf %237, %236 : vector<2x32xf32>
    %239 = arith.divf %237, %238 : vector<2x32xf32>
    %240 = math.tanh %234 : vector<2x32xf32>
    %241 = arith.select %12, %240, %239 : vector<2x32xi1>, vector<2x32xf32>
    %242 = vector.extract_strided_slice %241 {offsets = [0, 0], sizes = [2, 8], strides = [1, 1]} : vector<2x32xf32> to vector<2x8xf32>
    %243 = vector.extract_strided_slice %241 {offsets = [0, 8], sizes = [2, 8], strides = [1, 1]} : vector<2x32xf32> to vector<2x8xf32>
    %244 = vector.extract_strided_slice %241 {offsets = [0, 16], sizes = [2, 8], strides = [1, 1]} : vector<2x32xf32> to vector<2x8xf32>
    %245 = vector.extract_strided_slice %241 {offsets = [0, 24], sizes = [2, 8], strides = [1, 1]} : vector<2x32xf32> to vector<2x8xf32>
    %246 = arith.mulf %243, %228 : vector<2x8xf32>
    %247 = arith.mulf %242, %244 : vector<2x8xf32>
    %248 = arith.addf %246, %247 : vector<2x8xf32>
    %249 = math.tanh %248 : vector<2x8xf32>
    %250 = arith.mulf %245, %249 : vector<2x8xf32>
    %c0_43 = arith.constant 0 : index
    %c88 = arith.constant 88 : index
    %251 = vector.load %arg7[%c0_43, %c88] : memref<2x384xf32, #tpu.memory_space<vmem>>, vector<2x8xf32>
    tpu.vector_store %arg7[%c0_43, %c88], %250 {strides = array<i32>} : memref<2x384xf32, #tpu.memory_space<vmem>>, vector<2x8xf32>,
    %252 = vector.extract_strided_slice %5 {offsets = [24, 0], sizes = [2, 32], strides = [1, 1]} : vector<96x32xf32> to vector<2x32xf32>
    %cst_44 = arith.constant dense<0.000000e+00> : vector<2x32xf32>
    %253 = tpu.matmul %250, %6, %cst_44 {dimension_numbers = #tpu.dot_dimension_numbers<[1], [0], [0], [1], [0, 0, 1, 1], [], []>} : vector<2x8xf32>, vector<8x32xf32>, vector<2x32xf32> -> vector<2x32xf32>
    %254 = arith.addf %252, %253 : vector<2x32xf32>
    %255 = arith.negf %254 : vector<2x32xf32>
    %256 = math.exp %255 : vector<2x32xf32>
    %cst_45 = arith.constant 1.000000e+00 : f32
    %257 = vector.broadcast %cst_45 : f32 to vector<2x32xf32>
    %258 = arith.addf %257, %256 : vector<2x32xf32>
    %259 = arith.divf %257, %258 : vector<2x32xf32>
    %260 = math.tanh %254 : vector<2x32xf32>
    %261 = arith.select %12, %260, %259 : vector<2x32xi1>, vector<2x32xf32>
    %262 = vector.extract_strided_slice %261 {offsets = [0, 0], sizes = [2, 8], strides = [1, 1]} : vector<2x32xf32> to vector<2x8xf32>
    %263 = vector.extract_strided_slice %261 {offsets = [0, 8], sizes = [2, 8], strides = [1, 1]} : vector<2x32xf32> to vector<2x8xf32>
    %264 = vector.extract_strided_slice %261 {offsets = [0, 16], sizes = [2, 8], strides = [1, 1]} : vector<2x32xf32> to vector<2x8xf32>
    %265 = vector.extract_strided_slice %261 {offsets = [0, 24], sizes = [2, 8], strides = [1, 1]} : vector<2x32xf32> to vector<2x8xf32>
    %266 = arith.mulf %263, %248 : vector<2x8xf32>
    %267 = arith.mulf %262, %264 : vector<2x8xf32>
    %268 = arith.addf %266, %267 : vector<2x8xf32>
    %269 = math.tanh %268 : vector<2x8xf32>
    %270 = arith.mulf %265, %269 : vector<2x8xf32>
    %c0_46 = arith.constant 0 : index
    %c96 = arith.constant 96 : index
    %271 = vector.load %arg7[%c0_46, %c96] : memref<2x384xf32, #tpu.memory_space<vmem>>, vector<2x8xf32>
    tpu.vector_store %arg7[%c0_46, %c96], %270 {strides = array<i32>} : memref<2x384xf32, #tpu.memory_space<vmem>>, vector<2x8xf32>,
    %272 = vector.extract_strided_slice %5 {offsets = [26, 0], sizes = [2, 32], strides = [1, 1]} : vector<96x32xf32> to vector<2x32xf32>
    %cst_47 = arith.constant dense<0.000000e+00> : vector<2x32xf32>
    %273 = tpu.matmul %270, %6, %cst_47 {dimension_numbers = #tpu.dot_dimension_numbers<[1], [0], [0], [1], [0, 0, 1, 1], [], []>} : vector<2x8xf32>, vector<8x32xf32>, vector<2x32xf32> -> vector<2x32xf32>
    %274 = arith.addf %272, %273 : vector<2x32xf32>
    %275 = arith.negf %274 : vector<2x32xf32>
    %276 = math.exp %275 : vector<2x32xf32>
    %cst_48 = arith.constant 1.000000e+00 : f32
    %277 = vector.broadcast %cst_48 : f32 to vector<2x32xf32>
    %278 = arith.addf %277, %276 : vector<2x32xf32>
    %279 = arith.divf %277, %278 : vector<2x32xf32>
    %280 = math.tanh %274 : vector<2x32xf32>
    %281 = arith.select %12, %280, %279 : vector<2x32xi1>, vector<2x32xf32>
    %282 = vector.extract_strided_slice %281 {offsets = [0, 0], sizes = [2, 8], strides = [1, 1]} : vector<2x32xf32> to vector<2x8xf32>
    %283 = vector.extract_strided_slice %281 {offsets = [0, 8], sizes = [2, 8], strides = [1, 1]} : vector<2x32xf32> to vector<2x8xf32>
    %284 = vector.extract_strided_slice %281 {offsets = [0, 16], sizes = [2, 8], strides = [1, 1]} : vector<2x32xf32> to vector<2x8xf32>
    %285 = vector.extract_strided_slice %281 {offsets = [0, 24], sizes = [2, 8], strides = [1, 1]} : vector<2x32xf32> to vector<2x8xf32>
    %286 = arith.mulf %283, %268 : vector<2x8xf32>
    %287 = arith.mulf %282, %284 : vector<2x8xf32>
    %288 = arith.addf %286, %287 : vector<2x8xf32>
    %289 = math.tanh %288 : vector<2x8xf32>
    %290 = arith.mulf %285, %289 : vector<2x8xf32>
    %c0_49 = arith.constant 0 : index
    %c104 = arith.constant 104 : index
    %291 = vector.load %arg7[%c0_49, %c104] : memref<2x384xf32, #tpu.memory_space<vmem>>, vector<2x8xf32>
    tpu.vector_store %arg7[%c0_49, %c104], %290 {strides = array<i32>} : memref<2x384xf32, #tpu.memory_space<vmem>>, vector<2x8xf32>,
    %292 = vector.extract_strided_slice %5 {offsets = [28, 0], sizes = [2, 32], strides = [1, 1]} : vector<96x32xf32> to vector<2x32xf32>
    %cst_50 = arith.constant dense<0.000000e+00> : vector<2x32xf32>
    %293 = tpu.matmul %290, %6, %cst_50 {dimension_numbers = #tpu.dot_dimension_numbers<[1], [0], [0], [1], [0, 0, 1, 1], [], []>} : vector<2x8xf32>, vector<8x32xf32>, vector<2x32xf32> -> vector<2x32xf32>
    %294 = arith.addf %292, %293 : vector<2x32xf32>
    %295 = arith.negf %294 : vector<2x32xf32>
    %296 = math.exp %295 : vector<2x32xf32>
    %cst_51 = arith.constant 1.000000e+00 : f32
    %297 = vector.broadcast %cst_51 : f32 to vector<2x32xf32>
    %298 = arith.addf %297, %296 : vector<2x32xf32>
    %299 = arith.divf %297, %298 : vector<2x32xf32>
    %300 = math.tanh %294 : vector<2x32xf32>
    %301 = arith.select %12, %300, %299 : vector<2x32xi1>, vector<2x32xf32>
    %302 = vector.extract_strided_slice %301 {offsets = [0, 0], sizes = [2, 8], strides = [1, 1]} : vector<2x32xf32> to vector<2x8xf32>
    %303 = vector.extract_strided_slice %301 {offsets = [0, 8], sizes = [2, 8], strides = [1, 1]} : vector<2x32xf32> to vector<2x8xf32>
    %304 = vector.extract_strided_slice %301 {offsets = [0, 16], sizes = [2, 8], strides = [1, 1]} : vector<2x32xf32> to vector<2x8xf32>
    %305 = vector.extract_strided_slice %301 {offsets = [0, 24], sizes = [2, 8], strides = [1, 1]} : vector<2x32xf32> to vector<2x8xf32>
    %306 = arith.mulf %303, %288 : vector<2x8xf32>
    %307 = arith.mulf %302, %304 : vector<2x8xf32>
    %308 = arith.addf %306, %307 : vector<2x8xf32>
    %309 = math.tanh %308 : vector<2x8xf32>
    %310 = arith.mulf %305, %309 : vector<2x8xf32>
    %c0_52 = arith.constant 0 : index
    %c112 = arith.constant 112 : index
    %311 = vector.load %arg7[%c0_52, %c112] : memref<2x384xf32, #tpu.memory_space<vmem>>, vector<2x8xf32>
    tpu.vector_store %arg7[%c0_52, %c112], %310 {strides = array<i32>} : memref<2x384xf32, #tpu.memory_space<vmem>>, vector<2x8xf32>,
    %312 = vector.extract_strided_slice %5 {offsets = [30, 0], sizes = [2, 32], strides = [1, 1]} : vector<96x32xf32> to vector<2x32xf32>
    %cst_53 = arith.constant dense<0.000000e+00> : vector<2x32xf32>
    %313 = tpu.matmul %310, %6, %cst_53 {dimension_numbers = #tpu.dot_dimension_numbers<[1], [0], [0], [1], [0, 0, 1, 1], [], []>} : vector<2x8xf32>, vector<8x32xf32>, vector<2x32xf32> -> vector<2x32xf32>
    %314 = arith.addf %312, %313 : vector<2x32xf32>
    %315 = arith.negf %314 : vector<2x32xf32>
    %316 = math.exp %315 : vector<2x32xf32>
    %cst_54 = arith.constant 1.000000e+00 : f32
    %317 = vector.broadcast %cst_54 : f32 to vector<2x32xf32>
    %318 = arith.addf %317, %316 : vector<2x32xf32>
    %319 = arith.divf %317, %318 : vector<2x32xf32>
    %320 = math.tanh %314 : vector<2x32xf32>
    %321 = arith.select %12, %320, %319 : vector<2x32xi1>, vector<2x32xf32>
    %322 = vector.extract_strided_slice %321 {offsets = [0, 0], sizes = [2, 8], strides = [1, 1]} : vector<2x32xf32> to vector<2x8xf32>
    %323 = vector.extract_strided_slice %321 {offsets = [0, 8], sizes = [2, 8], strides = [1, 1]} : vector<2x32xf32> to vector<2x8xf32>
    %324 = vector.extract_strided_slice %321 {offsets = [0, 16], sizes = [2, 8], strides = [1, 1]} : vector<2x32xf32> to vector<2x8xf32>
    %325 = vector.extract_strided_slice %321 {offsets = [0, 24], sizes = [2, 8], strides = [1, 1]} : vector<2x32xf32> to vector<2x8xf32>
    %326 = arith.mulf %323, %308 : vector<2x8xf32>
    %327 = arith.mulf %322, %324 : vector<2x8xf32>
    %328 = arith.addf %326, %327 : vector<2x8xf32>
    %329 = math.tanh %328 : vector<2x8xf32>
    %330 = arith.mulf %325, %329 : vector<2x8xf32>
    %c0_55 = arith.constant 0 : index
    %c120 = arith.constant 120 : index
    %331 = vector.load %arg7[%c0_55, %c120] : memref<2x384xf32, #tpu.memory_space<vmem>>, vector<2x8xf32>
    tpu.vector_store %arg7[%c0_55, %c120], %330 {strides = array<i32>} : memref<2x384xf32, #tpu.memory_space<vmem>>, vector<2x8xf32>,
    %332 = vector.extract_strided_slice %5 {offsets = [32, 0], sizes = [2, 32], strides = [1, 1]} : vector<96x32xf32> to vector<2x32xf32>
    %cst_56 = arith.constant dense<0.000000e+00> : vector<2x32xf32>
    %333 = tpu.matmul %330, %6, %cst_56 {dimension_numbers = #tpu.dot_dimension_numbers<[1], [0], [0], [1], [0, 0, 1, 1], [], []>} : vector<2x8xf32>, vector<8x32xf32>, vector<2x32xf32> -> vector<2x32xf32>
    %334 = arith.addf %332, %333 : vector<2x32xf32>
    %335 = arith.negf %334 : vector<2x32xf32>
    %336 = math.exp %335 : vector<2x32xf32>
    %cst_57 = arith.constant 1.000000e+00 : f32
    %337 = vector.broadcast %cst_57 : f32 to vector<2x32xf32>
    %338 = arith.addf %337, %336 : vector<2x32xf32>
    %339 = arith.divf %337, %338 : vector<2x32xf32>
    %340 = math.tanh %334 : vector<2x32xf32>
    %341 = arith.select %12, %340, %339 : vector<2x32xi1>, vector<2x32xf32>
    %342 = vector.extract_strided_slice %341 {offsets = [0, 0], sizes = [2, 8], strides = [1, 1]} : vector<2x32xf32> to vector<2x8xf32>
    %343 = vector.extract_strided_slice %341 {offsets = [0, 8], sizes = [2, 8], strides = [1, 1]} : vector<2x32xf32> to vector<2x8xf32>
    %344 = vector.extract_strided_slice %341 {offsets = [0, 16], sizes = [2, 8], strides = [1, 1]} : vector<2x32xf32> to vector<2x8xf32>
    %345 = vector.extract_strided_slice %341 {offsets = [0, 24], sizes = [2, 8], strides = [1, 1]} : vector<2x32xf32> to vector<2x8xf32>
    %346 = arith.mulf %343, %328 : vector<2x8xf32>
    %347 = arith.mulf %342, %344 : vector<2x8xf32>
    %348 = arith.addf %346, %347 : vector<2x8xf32>
    %349 = math.tanh %348 : vector<2x8xf32>
    %350 = arith.mulf %345, %349 : vector<2x8xf32>
    %c0_58 = arith.constant 0 : index
    %c128 = arith.constant 128 : index
    %351 = vector.load %arg7[%c0_58, %c128] : memref<2x384xf32, #tpu.memory_space<vmem>>, vector<2x8xf32>
    tpu.vector_store %arg7[%c0_58, %c128], %350 {strides = array<i32>} : memref<2x384xf32, #tpu.memory_space<vmem>>, vector<2x8xf32>,
    %352 = vector.extract_strided_slice %5 {offsets = [34, 0], sizes = [2, 32], strides = [1, 1]} : vector<96x32xf32> to vector<2x32xf32>
    %cst_59 = arith.constant dense<0.000000e+00> : vector<2x32xf32>
    %353 = tpu.matmul %350, %6, %cst_59 {dimension_numbers = #tpu.dot_dimension_numbers<[1], [0], [0], [1], [0, 0, 1, 1], [], []>} : vector<2x8xf32>, vector<8x32xf32>, vector<2x32xf32> -> vector<2x32xf32>
    %354 = arith.addf %352, %353 : vector<2x32xf32>
    %355 = arith.negf %354 : vector<2x32xf32>
    %356 = math.exp %355 : vector<2x32xf32>
    %cst_60 = arith.constant 1.000000e+00 : f32
    %357 = vector.broadcast %cst_60 : f32 to vector<2x32xf32>
    %358 = arith.addf %357, %356 : vector<2x32xf32>
    %359 = arith.divf %357, %358 : vector<2x32xf32>
    %360 = math.tanh %354 : vector<2x32xf32>
    %361 = arith.select %12, %360, %359 : vector<2x32xi1>, vector<2x32xf32>
    %362 = vector.extract_strided_slice %361 {offsets = [0, 0], sizes = [2, 8], strides = [1, 1]} : vector<2x32xf32> to vector<2x8xf32>
    %363 = vector.extract_strided_slice %361 {offsets = [0, 8], sizes = [2, 8], strides = [1, 1]} : vector<2x32xf32> to vector<2x8xf32>
    %364 = vector.extract_strided_slice %361 {offsets = [0, 16], sizes = [2, 8], strides = [1, 1]} : vector<2x32xf32> to vector<2x8xf32>
    %365 = vector.extract_strided_slice %361 {offsets = [0, 24], sizes = [2, 8], strides = [1, 1]} : vector<2x32xf32> to vector<2x8xf32>
    %366 = arith.mulf %363, %348 : vector<2x8xf32>
    %367 = arith.mulf %362, %364 : vector<2x8xf32>
    %368 = arith.addf %366, %367 : vector<2x8xf32>
    %369 = math.tanh %368 : vector<2x8xf32>
    %370 = arith.mulf %365, %369 : vector<2x8xf32>
    %c0_61 = arith.constant 0 : index
    %c136 = arith.constant 136 : index
    %371 = vector.load %arg7[%c0_61, %c136] : memref<2x384xf32, #tpu.memory_space<vmem>>, vector<2x8xf32>
    tpu.vector_store %arg7[%c0_61, %c136], %370 {strides = array<i32>} : memref<2x384xf32, #tpu.memory_space<vmem>>, vector<2x8xf32>,
    %372 = vector.extract_strided_slice %5 {offsets = [36, 0], sizes = [2, 32], strides = [1, 1]} : vector<96x32xf32> to vector<2x32xf32>
    %cst_62 = arith.constant dense<0.000000e+00> : vector<2x32xf32>
    %373 = tpu.matmul %370, %6, %cst_62 {dimension_numbers = #tpu.dot_dimension_numbers<[1], [0], [0], [1], [0, 0, 1, 1], [], []>} : vector<2x8xf32>, vector<8x32xf32>, vector<2x32xf32> -> vector<2x32xf32>
    %374 = arith.addf %372, %373 : vector<2x32xf32>
    %375 = arith.negf %374 : vector<2x32xf32>
    %376 = math.exp %375 : vector<2x32xf32>
    %cst_63 = arith.constant 1.000000e+00 : f32
    %377 = vector.broadcast %cst_63 : f32 to vector<2x32xf32>
    %378 = arith.addf %377, %376 : vector<2x32xf32>
    %379 = arith.divf %377, %378 : vector<2x32xf32>
    %380 = math.tanh %374 : vector<2x32xf32>
    %381 = arith.select %12, %380, %379 : vector<2x32xi1>, vector<2x32xf32>
    %382 = vector.extract_strided_slice %381 {offsets = [0, 0], sizes = [2, 8], strides = [1, 1]} : vector<2x32xf32> to vector<2x8xf32>
    %383 = vector.extract_strided_slice %381 {offsets = [0, 8], sizes = [2, 8], strides = [1, 1]} : vector<2x32xf32> to vector<2x8xf32>
    %384 = vector.extract_strided_slice %381 {offsets = [0, 16], sizes = [2, 8], strides = [1, 1]} : vector<2x32xf32> to vector<2x8xf32>
    %385 = vector.extract_strided_slice %381 {offsets = [0, 24], sizes = [2, 8], strides = [1, 1]} : vector<2x32xf32> to vector<2x8xf32>
    %386 = arith.mulf %383, %368 : vector<2x8xf32>
    %387 = arith.mulf %382, %384 : vector<2x8xf32>
    %388 = arith.addf %386, %387 : vector<2x8xf32>
    %389 = math.tanh %388 : vector<2x8xf32>
    %390 = arith.mulf %385, %389 : vector<2x8xf32>
    %c0_64 = arith.constant 0 : index
    %c144 = arith.constant 144 : index
    %391 = vector.load %arg7[%c0_64, %c144] : memref<2x384xf32, #tpu.memory_space<vmem>>, vector<2x8xf32>
    tpu.vector_store %arg7[%c0_64, %c144], %390 {strides = array<i32>} : memref<2x384xf32, #tpu.memory_space<vmem>>, vector<2x8xf32>,
    %392 = vector.extract_strided_slice %5 {offsets = [38, 0], sizes = [2, 32], strides = [1, 1]} : vector<96x32xf32> to vector<2x32xf32>
    %cst_65 = arith.constant dense<0.000000e+00> : vector<2x32xf32>
    %393 = tpu.matmul %390, %6, %cst_65 {dimension_numbers = #tpu.dot_dimension_numbers<[1], [0], [0], [1], [0, 0, 1, 1], [], []>} : vector<2x8xf32>, vector<8x32xf32>, vector<2x32xf32> -> vector<2x32xf32>
    %394 = arith.addf %392, %393 : vector<2x32xf32>
    %395 = arith.negf %394 : vector<2x32xf32>
    %396 = math.exp %395 : vector<2x32xf32>
    %cst_66 = arith.constant 1.000000e+00 : f32
    %397 = vector.broadcast %cst_66 : f32 to vector<2x32xf32>
    %398 = arith.addf %397, %396 : vector<2x32xf32>
    %399 = arith.divf %397, %398 : vector<2x32xf32>
    %400 = math.tanh %394 : vector<2x32xf32>
    %401 = arith.select %12, %400, %399 : vector<2x32xi1>, vector<2x32xf32>
    %402 = vector.extract_strided_slice %401 {offsets = [0, 0], sizes = [2, 8], strides = [1, 1]} : vector<2x32xf32> to vector<2x8xf32>
    %403 = vector.extract_strided_slice %401 {offsets = [0, 8], sizes = [2, 8], strides = [1, 1]} : vector<2x32xf32> to vector<2x8xf32>
    %404 = vector.extract_strided_slice %401 {offsets = [0, 16], sizes = [2, 8], strides = [1, 1]} : vector<2x32xf32> to vector<2x8xf32>
    %405 = vector.extract_strided_slice %401 {offsets = [0, 24], sizes = [2, 8], strides = [1, 1]} : vector<2x32xf32> to vector<2x8xf32>
    %406 = arith.mulf %403, %388 : vector<2x8xf32>
    %407 = arith.mulf %402, %404 : vector<2x8xf32>
    %408 = arith.addf %406, %407 : vector<2x8xf32>
    %409 = math.tanh %408 : vector<2x8xf32>
    %410 = arith.mulf %405, %409 : vector<2x8xf32>
    %c0_67 = arith.constant 0 : index
    %c152 = arith.constant 152 : index
    %411 = vector.load %arg7[%c0_67, %c152] : memref<2x384xf32, #tpu.memory_space<vmem>>, vector<2x8xf32>
    tpu.vector_store %arg7[%c0_67, %c152], %410 {strides = array<i32>} : memref<2x384xf32, #tpu.memory_space<vmem>>, vector<2x8xf32>,
    %412 = vector.extract_strided_slice %5 {offsets = [40, 0], sizes = [2, 32], strides = [1, 1]} : vector<96x32xf32> to vector<2x32xf32>
    %cst_68 = arith.constant dense<0.000000e+00> : vector<2x32xf32>
    %413 = tpu.matmul %410, %6, %cst_68 {dimension_numbers = #tpu.dot_dimension_numbers<[1], [0], [0], [1], [0, 0, 1, 1], [], []>} : vector<2x8xf32>, vector<8x32xf32>, vector<2x32xf32> -> vector<2x32xf32>
    %414 = arith.addf %412, %413 : vector<2x32xf32>
    %415 = arith.negf %414 : vector<2x32xf32>
    %416 = math.exp %415 : vector<2x32xf32>
    %cst_69 = arith.constant 1.000000e+00 : f32
    %417 = vector.broadcast %cst_69 : f32 to vector<2x32xf32>
    %418 = arith.addf %417, %416 : vector<2x32xf32>
    %419 = arith.divf %417, %418 : vector<2x32xf32>
    %420 = math.tanh %414 : vector<2x32xf32>
    %421 = arith.select %12, %420, %419 : vector<2x32xi1>, vector<2x32xf32>
    %422 = vector.extract_strided_slice %421 {offsets = [0, 0], sizes = [2, 8], strides = [1, 1]} : vector<2x32xf32> to vector<2x8xf32>
    %423 = vector.extract_strided_slice %421 {offsets = [0, 8], sizes = [2, 8], strides = [1, 1]} : vector<2x32xf32> to vector<2x8xf32>
    %424 = vector.extract_strided_slice %421 {offsets = [0, 16], sizes = [2, 8], strides = [1, 1]} : vector<2x32xf32> to vector<2x8xf32>
    %425 = vector.extract_strided_slice %421 {offsets = [0, 24], sizes = [2, 8], strides = [1, 1]} : vector<2x32xf32> to vector<2x8xf32>
    %426 = arith.mulf %423, %408 : vector<2x8xf32>
    %427 = arith.mulf %422, %424 : vector<2x8xf32>
    %428 = arith.addf %426, %427 : vector<2x8xf32>
    %429 = math.tanh %428 : vector<2x8xf32>
    %430 = arith.mulf %425, %429 : vector<2x8xf32>
    %c0_70 = arith.constant 0 : index
    %c160 = arith.constant 160 : index
    %431 = vector.load %arg7[%c0_70, %c160] : memref<2x384xf32, #tpu.memory_space<vmem>>, vector<2x8xf32>
    tpu.vector_store %arg7[%c0_70, %c160], %430 {strides = array<i32>} : memref<2x384xf32, #tpu.memory_space<vmem>>, vector<2x8xf32>,
    %432 = vector.extract_strided_slice %5 {offsets = [42, 0], sizes = [2, 32], strides = [1, 1]} : vector<96x32xf32> to vector<2x32xf32>
    %cst_71 = arith.constant dense<0.000000e+00> : vector<2x32xf32>
    %433 = tpu.matmul %430, %6, %cst_71 {dimension_numbers = #tpu.dot_dimension_numbers<[1], [0], [0], [1], [0, 0, 1, 1], [], []>} : vector<2x8xf32>, vector<8x32xf32>, vector<2x32xf32> -> vector<2x32xf32>
    %434 = arith.addf %432, %433 : vector<2x32xf32>
    %435 = arith.negf %434 : vector<2x32xf32>
    %436 = math.exp %435 : vector<2x32xf32>
    %cst_72 = arith.constant 1.000000e+00 : f32
    %437 = vector.broadcast %cst_72 : f32 to vector<2x32xf32>
    %438 = arith.addf %437, %436 : vector<2x32xf32>
    %439 = arith.divf %437, %438 : vector<2x32xf32>
    %440 = math.tanh %434 : vector<2x32xf32>
    %441 = arith.select %12, %440, %439 : vector<2x32xi1>, vector<2x32xf32>
    %442 = vector.extract_strided_slice %441 {offsets = [0, 0], sizes = [2, 8], strides = [1, 1]} : vector<2x32xf32> to vector<2x8xf32>
    %443 = vector.extract_strided_slice %441 {offsets = [0, 8], sizes = [2, 8], strides = [1, 1]} : vector<2x32xf32> to vector<2x8xf32>
    %444 = vector.extract_strided_slice %441 {offsets = [0, 16], sizes = [2, 8], strides = [1, 1]} : vector<2x32xf32> to vector<2x8xf32>
    %445 = vector.extract_strided_slice %441 {offsets = [0, 24], sizes = [2, 8], strides = [1, 1]} : vector<2x32xf32> to vector<2x8xf32>
    %446 = arith.mulf %443, %428 : vector<2x8xf32>
    %447 = arith.mulf %442, %444 : vector<2x8xf32>
    %448 = arith.addf %446, %447 : vector<2x8xf32>
    %449 = math.tanh %448 : vector<2x8xf32>
    %450 = arith.mulf %445, %449 : vector<2x8xf32>
    %c0_73 = arith.constant 0 : index
    %c168 = arith.constant 168 : index
    %451 = vector.load %arg7[%c0_73, %c168] : memref<2x384xf32, #tpu.memory_space<vmem>>, vector<2x8xf32>
    tpu.vector_store %arg7[%c0_73, %c168], %450 {strides = array<i32>} : memref<2x384xf32, #tpu.memory_space<vmem>>, vector<2x8xf32>,
    %452 = vector.extract_strided_slice %5 {offsets = [44, 0], sizes = [2, 32], strides = [1, 1]} : vector<96x32xf32> to vector<2x32xf32>
    %cst_74 = arith.constant dense<0.000000e+00> : vector<2x32xf32>
    %453 = tpu.matmul %450, %6, %cst_74 {dimension_numbers = #tpu.dot_dimension_numbers<[1], [0], [0], [1], [0, 0, 1, 1], [], []>} : vector<2x8xf32>, vector<8x32xf32>, vector<2x32xf32> -> vector<2x32xf32>
    %454 = arith.addf %452, %453 : vector<2x32xf32>
    %455 = arith.negf %454 : vector<2x32xf32>
    %456 = math.exp %455 : vector<2x32xf32>
    %cst_75 = arith.constant 1.000000e+00 : f32
    %457 = vector.broadcast %cst_75 : f32 to vector<2x32xf32>
    %458 = arith.addf %457, %456 : vector<2x32xf32>
    %459 = arith.divf %457, %458 : vector<2x32xf32>
    %460 = math.tanh %454 : vector<2x32xf32>
    %461 = arith.select %12, %460, %459 : vector<2x32xi1>, vector<2x32xf32>
    %462 = vector.extract_strided_slice %461 {offsets = [0, 0], sizes = [2, 8], strides = [1, 1]} : vector<2x32xf32> to vector<2x8xf32>
    %463 = vector.extract_strided_slice %461 {offsets = [0, 8], sizes = [2, 8], strides = [1, 1]} : vector<2x32xf32> to vector<2x8xf32>
    %464 = vector.extract_strided_slice %461 {offsets = [0, 16], sizes = [2, 8], strides = [1, 1]} : vector<2x32xf32> to vector<2x8xf32>
    %465 = vector.extract_strided_slice %461 {offsets = [0, 24], sizes = [2, 8], strides = [1, 1]} : vector<2x32xf32> to vector<2x8xf32>
    %466 = arith.mulf %463, %448 : vector<2x8xf32>
    %467 = arith.mulf %462, %464 : vector<2x8xf32>
    %468 = arith.addf %466, %467 : vector<2x8xf32>
    %469 = math.tanh %468 : vector<2x8xf32>
    %470 = arith.mulf %465, %469 : vector<2x8xf32>
    %c0_76 = arith.constant 0 : index
    %c176 = arith.constant 176 : index
    %471 = vector.load %arg7[%c0_76, %c176] : memref<2x384xf32, #tpu.memory_space<vmem>>, vector<2x8xf32>
    tpu.vector_store %arg7[%c0_76, %c176], %470 {strides = array<i32>} : memref<2x384xf32, #tpu.memory_space<vmem>>, vector<2x8xf32>,
    %472 = vector.extract_strided_slice %5 {offsets = [46, 0], sizes = [2, 32], strides = [1, 1]} : vector<96x32xf32> to vector<2x32xf32>
    %cst_77 = arith.constant dense<0.000000e+00> : vector<2x32xf32>
    %473 = tpu.matmul %470, %6, %cst_77 {dimension_numbers = #tpu.dot_dimension_numbers<[1], [0], [0], [1], [0, 0, 1, 1], [], []>} : vector<2x8xf32>, vector<8x32xf32>, vector<2x32xf32> -> vector<2x32xf32>
    %474 = arith.addf %472, %473 : vector<2x32xf32>
    %475 = arith.negf %474 : vector<2x32xf32>
    %476 = math.exp %475 : vector<2x32xf32>
    %cst_78 = arith.constant 1.000000e+00 : f32
    %477 = vector.broadcast %cst_78 : f32 to vector<2x32xf32>
    %478 = arith.addf %477, %476 : vector<2x32xf32>
    %479 = arith.divf %477, %478 : vector<2x32xf32>
    %480 = math.tanh %474 : vector<2x32xf32>
    %481 = arith.select %12, %480, %479 : vector<2x32xi1>, vector<2x32xf32>
    %482 = vector.extract_strided_slice %481 {offsets = [0, 0], sizes = [2, 8], strides = [1, 1]} : vector<2x32xf32> to vector<2x8xf32>
    %483 = vector.extract_strided_slice %481 {offsets = [0, 8], sizes = [2, 8], strides = [1, 1]} : vector<2x32xf32> to vector<2x8xf32>
    %484 = vector.extract_strided_slice %481 {offsets = [0, 16], sizes = [2, 8], strides = [1, 1]} : vector<2x32xf32> to vector<2x8xf32>
    %485 = vector.extract_strided_slice %481 {offsets = [0, 24], sizes = [2, 8], strides = [1, 1]} : vector<2x32xf32> to vector<2x8xf32>
    %486 = arith.mulf %483, %468 : vector<2x8xf32>
    %487 = arith.mulf %482, %484 : vector<2x8xf32>
    %488 = arith.addf %486, %487 : vector<2x8xf32>
    %489 = math.tanh %488 : vector<2x8xf32>
    %490 = arith.mulf %485, %489 : vector<2x8xf32>
    %c0_79 = arith.constant 0 : index
    %c184 = arith.constant 184 : index
    %491 = vector.load %arg7[%c0_79, %c184] : memref<2x384xf32, #tpu.memory_space<vmem>>, vector<2x8xf32>
    tpu.vector_store %arg7[%c0_79, %c184], %490 {strides = array<i32>} : memref<2x384xf32, #tpu.memory_space<vmem>>, vector<2x8xf32>,
    %492 = vector.extract_strided_slice %5 {offsets = [48, 0], sizes = [2, 32], strides = [1, 1]} : vector<96x32xf32> to vector<2x32xf32>
    %cst_80 = arith.constant dense<0.000000e+00> : vector<2x32xf32>
    %493 = tpu.matmul %490, %6, %cst_80 {dimension_numbers = #tpu.dot_dimension_numbers<[1], [0], [0], [1], [0, 0, 1, 1], [], []>} : vector<2x8xf32>, vector<8x32xf32>, vector<2x32xf32> -> vector<2x32xf32>
    %494 = arith.addf %492, %493 : vector<2x32xf32>
    %495 = arith.negf %494 : vector<2x32xf32>
    %496 = math.exp %495 : vector<2x32xf32>
    %cst_81 = arith.constant 1.000000e+00 : f32
    %497 = vector.broadcast %cst_81 : f32 to vector<2x32xf32>
    %498 = arith.addf %497, %496 : vector<2x32xf32>
    %499 = arith.divf %497, %498 : vector<2x32xf32>
    %500 = math.tanh %494 : vector<2x32xf32>
    %501 = arith.select %12, %500, %499 : vector<2x32xi1>, vector<2x32xf32>
    %502 = vector.extract_strided_slice %501 {offsets = [0, 0], sizes = [2, 8], strides = [1, 1]} : vector<2x32xf32> to vector<2x8xf32>
    %503 = vector.extract_strided_slice %501 {offsets = [0, 8], sizes = [2, 8], strides = [1, 1]} : vector<2x32xf32> to vector<2x8xf32>
    %504 = vector.extract_strided_slice %501 {offsets = [0, 16], sizes = [2, 8], strides = [1, 1]} : vector<2x32xf32> to vector<2x8xf32>
    %505 = vector.extract_strided_slice %501 {offsets = [0, 24], sizes = [2, 8], strides = [1, 1]} : vector<2x32xf32> to vector<2x8xf32>
    %506 = arith.mulf %503, %488 : vector<2x8xf32>
    %507 = arith.mulf %502, %504 : vector<2x8xf32>
    %508 = arith.addf %506, %507 : vector<2x8xf32>
    %509 = math.tanh %508 : vector<2x8xf32>
    %510 = arith.mulf %505, %509 : vector<2x8xf32>
    %c0_82 = arith.constant 0 : index
    %c192 = arith.constant 192 : index
    %511 = vector.load %arg7[%c0_82, %c192] : memref<2x384xf32, #tpu.memory_space<vmem>>, vector<2x8xf32>
    tpu.vector_store %arg7[%c0_82, %c192], %510 {strides = array<i32>} : memref<2x384xf32, #tpu.memory_space<vmem>>, vector<2x8xf32>,
    %512 = vector.extract_strided_slice %5 {offsets = [50, 0], sizes = [2, 32], strides = [1, 1]} : vector<96x32xf32> to vector<2x32xf32>
    %cst_83 = arith.constant dense<0.000000e+00> : vector<2x32xf32>
    %513 = tpu.matmul %510, %6, %cst_83 {dimension_numbers = #tpu.dot_dimension_numbers<[1], [0], [0], [1], [0, 0, 1, 1], [], []>} : vector<2x8xf32>, vector<8x32xf32>, vector<2x32xf32> -> vector<2x32xf32>
    %514 = arith.addf %512, %513 : vector<2x32xf32>
    %515 = arith.negf %514 : vector<2x32xf32>
    %516 = math.exp %515 : vector<2x32xf32>
    %cst_84 = arith.constant 1.000000e+00 : f32
    %517 = vector.broadcast %cst_84 : f32 to vector<2x32xf32>
    %518 = arith.addf %517, %516 : vector<2x32xf32>
    %519 = arith.divf %517, %518 : vector<2x32xf32>
    %520 = math.tanh %514 : vector<2x32xf32>
    %521 = arith.select %12, %520, %519 : vector<2x32xi1>, vector<2x32xf32>
    %522 = vector.extract_strided_slice %521 {offsets = [0, 0], sizes = [2, 8], strides = [1, 1]} : vector<2x32xf32> to vector<2x8xf32>
    %523 = vector.extract_strided_slice %521 {offsets = [0, 8], sizes = [2, 8], strides = [1, 1]} : vector<2x32xf32> to vector<2x8xf32>
    %524 = vector.extract_strided_slice %521 {offsets = [0, 16], sizes = [2, 8], strides = [1, 1]} : vector<2x32xf32> to vector<2x8xf32>
    %525 = vector.extract_strided_slice %521 {offsets = [0, 24], sizes = [2, 8], strides = [1, 1]} : vector<2x32xf32> to vector<2x8xf32>
    %526 = arith.mulf %523, %508 : vector<2x8xf32>
    %527 = arith.mulf %522, %524 : vector<2x8xf32>
    %528 = arith.addf %526, %527 : vector<2x8xf32>
    %529 = math.tanh %528 : vector<2x8xf32>
    %530 = arith.mulf %525, %529 : vector<2x8xf32>
    %c0_85 = arith.constant 0 : index
    %c200 = arith.constant 200 : index
    %531 = vector.load %arg7[%c0_85, %c200] : memref<2x384xf32, #tpu.memory_space<vmem>>, vector<2x8xf32>
    tpu.vector_store %arg7[%c0_85, %c200], %530 {strides = array<i32>} : memref<2x384xf32, #tpu.memory_space<vmem>>, vector<2x8xf32>,
    %532 = vector.extract_strided_slice %5 {offsets = [52, 0], sizes = [2, 32], strides = [1, 1]} : vector<96x32xf32> to vector<2x32xf32>
    %cst_86 = arith.constant dense<0.000000e+00> : vector<2x32xf32>
    %533 = tpu.matmul %530, %6, %cst_86 {dimension_numbers = #tpu.dot_dimension_numbers<[1], [0], [0], [1], [0, 0, 1, 1], [], []>} : vector<2x8xf32>, vector<8x32xf32>, vector<2x32xf32> -> vector<2x32xf32>
    %534 = arith.addf %532, %533 : vector<2x32xf32>
    %535 = arith.negf %534 : vector<2x32xf32>
    %536 = math.exp %535 : vector<2x32xf32>
    %cst_87 = arith.constant 1.000000e+00 : f32
    %537 = vector.broadcast %cst_87 : f32 to vector<2x32xf32>
    %538 = arith.addf %537, %536 : vector<2x32xf32>
    %539 = arith.divf %537, %538 : vector<2x32xf32>
    %540 = math.tanh %534 : vector<2x32xf32>
    %541 = arith.select %12, %540, %539 : vector<2x32xi1>, vector<2x32xf32>
    %542 = vector.extract_strided_slice %541 {offsets = [0, 0], sizes = [2, 8], strides = [1, 1]} : vector<2x32xf32> to vector<2x8xf32>
    %543 = vector.extract_strided_slice %541 {offsets = [0, 8], sizes = [2, 8], strides = [1, 1]} : vector<2x32xf32> to vector<2x8xf32>
    %544 = vector.extract_strided_slice %541 {offsets = [0, 16], sizes = [2, 8], strides = [1, 1]} : vector<2x32xf32> to vector<2x8xf32>
    %545 = vector.extract_strided_slice %541 {offsets = [0, 24], sizes = [2, 8], strides = [1, 1]} : vector<2x32xf32> to vector<2x8xf32>
    %546 = arith.mulf %543, %528 : vector<2x8xf32>
    %547 = arith.mulf %542, %544 : vector<2x8xf32>
    %548 = arith.addf %546, %547 : vector<2x8xf32>
    %549 = math.tanh %548 : vector<2x8xf32>
    %550 = arith.mulf %545, %549 : vector<2x8xf32>
    %c0_88 = arith.constant 0 : index
    %c208 = arith.constant 208 : index
    %551 = vector.load %arg7[%c0_88, %c208] : memref<2x384xf32, #tpu.memory_space<vmem>>, vector<2x8xf32>
    tpu.vector_store %arg7[%c0_88, %c208], %550 {strides = array<i32>} : memref<2x384xf32, #tpu.memory_space<vmem>>, vector<2x8xf32>,
    %552 = vector.extract_strided_slice %5 {offsets = [54, 0], sizes = [2, 32], strides = [1, 1]} : vector<96x32xf32> to vector<2x32xf32>
    %cst_89 = arith.constant dense<0.000000e+00> : vector<2x32xf32>
    %553 = tpu.matmul %550, %6, %cst_89 {dimension_numbers = #tpu.dot_dimension_numbers<[1], [0], [0], [1], [0, 0, 1, 1], [], []>} : vector<2x8xf32>, vector<8x32xf32>, vector<2x32xf32> -> vector<2x32xf32>
    %554 = arith.addf %552, %553 : vector<2x32xf32>
    %555 = arith.negf %554 : vector<2x32xf32>
    %556 = math.exp %555 : vector<2x32xf32>
    %cst_90 = arith.constant 1.000000e+00 : f32
    %557 = vector.broadcast %cst_90 : f32 to vector<2x32xf32>
    %558 = arith.addf %557, %556 : vector<2x32xf32>
    %559 = arith.divf %557, %558 : vector<2x32xf32>
    %560 = math.tanh %554 : vector<2x32xf32>
    %561 = arith.select %12, %560, %559 : vector<2x32xi1>, vector<2x32xf32>
    %562 = vector.extract_strided_slice %561 {offsets = [0, 0], sizes = [2, 8], strides = [1, 1]} : vector<2x32xf32> to vector<2x8xf32>
    %563 = vector.extract_strided_slice %561 {offsets = [0, 8], sizes = [2, 8], strides = [1, 1]} : vector<2x32xf32> to vector<2x8xf32>
    %564 = vector.extract_strided_slice %561 {offsets = [0, 16], sizes = [2, 8], strides = [1, 1]} : vector<2x32xf32> to vector<2x8xf32>
    %565 = vector.extract_strided_slice %561 {offsets = [0, 24], sizes = [2, 8], strides = [1, 1]} : vector<2x32xf32> to vector<2x8xf32>
    %566 = arith.mulf %563, %548 : vector<2x8xf32>
    %567 = arith.mulf %562, %564 : vector<2x8xf32>
    %568 = arith.addf %566, %567 : vector<2x8xf32>
    %569 = math.tanh %568 : vector<2x8xf32>
    %570 = arith.mulf %565, %569 : vector<2x8xf32>
    %c0_91 = arith.constant 0 : index
    %c216 = arith.constant 216 : index
    %571 = vector.load %arg7[%c0_91, %c216] : memref<2x384xf32, #tpu.memory_space<vmem>>, vector<2x8xf32>
    tpu.vector_store %arg7[%c0_91, %c216], %570 {strides = array<i32>} : memref<2x384xf32, #tpu.memory_space<vmem>>, vector<2x8xf32>,
    %572 = vector.extract_strided_slice %5 {offsets = [56, 0], sizes = [2, 32], strides = [1, 1]} : vector<96x32xf32> to vector<2x32xf32>
    %cst_92 = arith.constant dense<0.000000e+00> : vector<2x32xf32>
    %573 = tpu.matmul %570, %6, %cst_92 {dimension_numbers = #tpu.dot_dimension_numbers<[1], [0], [0], [1], [0, 0, 1, 1], [], []>} : vector<2x8xf32>, vector<8x32xf32>, vector<2x32xf32> -> vector<2x32xf32>
    %574 = arith.addf %572, %573 : vector<2x32xf32>
    %575 = arith.negf %574 : vector<2x32xf32>
    %576 = math.exp %575 : vector<2x32xf32>
    %cst_93 = arith.constant 1.000000e+00 : f32
    %577 = vector.broadcast %cst_93 : f32 to vector<2x32xf32>
    %578 = arith.addf %577, %576 : vector<2x32xf32>
    %579 = arith.divf %577, %578 : vector<2x32xf32>
    %580 = math.tanh %574 : vector<2x32xf32>
    %581 = arith.select %12, %580, %579 : vector<2x32xi1>, vector<2x32xf32>
    %582 = vector.extract_strided_slice %581 {offsets = [0, 0], sizes = [2, 8], strides = [1, 1]} : vector<2x32xf32> to vector<2x8xf32>
    %583 = vector.extract_strided_slice %581 {offsets = [0, 8], sizes = [2, 8], strides = [1, 1]} : vector<2x32xf32> to vector<2x8xf32>
    %584 = vector.extract_strided_slice %581 {offsets = [0, 16], sizes = [2, 8], strides = [1, 1]} : vector<2x32xf32> to vector<2x8xf32>
    %585 = vector.extract_strided_slice %581 {offsets = [0, 24], sizes = [2, 8], strides = [1, 1]} : vector<2x32xf32> to vector<2x8xf32>
    %586 = arith.mulf %583, %568 : vector<2x8xf32>
    %587 = arith.mulf %582, %584 : vector<2x8xf32>
    %588 = arith.addf %586, %587 : vector<2x8xf32>
    %589 = math.tanh %588 : vector<2x8xf32>
    %590 = arith.mulf %585, %589 : vector<2x8xf32>
    %c0_94 = arith.constant 0 : index
    %c224 = arith.constant 224 : index
    %591 = vector.load %arg7[%c0_94, %c224] : memref<2x384xf32, #tpu.memory_space<vmem>>, vector<2x8xf32>
    tpu.vector_store %arg7[%c0_94, %c224], %590 {strides = array<i32>} : memref<2x384xf32, #tpu.memory_space<vmem>>, vector<2x8xf32>,
    %592 = vector.extract_strided_slice %5 {offsets = [58, 0], sizes = [2, 32], strides = [1, 1]} : vector<96x32xf32> to vector<2x32xf32>
    %cst_95 = arith.constant dense<0.000000e+00> : vector<2x32xf32>
    %593 = tpu.matmul %590, %6, %cst_95 {dimension_numbers = #tpu.dot_dimension_numbers<[1], [0], [0], [1], [0, 0, 1, 1], [], []>} : vector<2x8xf32>, vector<8x32xf32>, vector<2x32xf32> -> vector<2x32xf32>
    %594 = arith.addf %592, %593 : vector<2x32xf32>
    %595 = arith.negf %594 : vector<2x32xf32>
    %596 = math.exp %595 : vector<2x32xf32>
    %cst_96 = arith.constant 1.000000e+00 : f32
    %597 = vector.broadcast %cst_96 : f32 to vector<2x32xf32>
    %598 = arith.addf %597, %596 : vector<2x32xf32>
    %599 = arith.divf %597, %598 : vector<2x32xf32>
    %600 = math.tanh %594 : vector<2x32xf32>
    %601 = arith.select %12, %600, %599 : vector<2x32xi1>, vector<2x32xf32>
    %602 = vector.extract_strided_slice %601 {offsets = [0, 0], sizes = [2, 8], strides = [1, 1]} : vector<2x32xf32> to vector<2x8xf32>
    %603 = vector.extract_strided_slice %601 {offsets = [0, 8], sizes = [2, 8], strides = [1, 1]} : vector<2x32xf32> to vector<2x8xf32>
    %604 = vector.extract_strided_slice %601 {offsets = [0, 16], sizes = [2, 8], strides = [1, 1]} : vector<2x32xf32> to vector<2x8xf32>
    %605 = vector.extract_strided_slice %601 {offsets = [0, 24], sizes = [2, 8], strides = [1, 1]} : vector<2x32xf32> to vector<2x8xf32>
    %606 = arith.mulf %603, %588 : vector<2x8xf32>
    %607 = arith.mulf %602, %604 : vector<2x8xf32>
    %608 = arith.addf %606, %607 : vector<2x8xf32>
    %609 = math.tanh %608 : vector<2x8xf32>
    %610 = arith.mulf %605, %609 : vector<2x8xf32>
    %c0_97 = arith.constant 0 : index
    %c232 = arith.constant 232 : index
    %611 = vector.load %arg7[%c0_97, %c232] : memref<2x384xf32, #tpu.memory_space<vmem>>, vector<2x8xf32>
    tpu.vector_store %arg7[%c0_97, %c232], %610 {strides = array<i32>} : memref<2x384xf32, #tpu.memory_space<vmem>>, vector<2x8xf32>,
    %612 = vector.extract_strided_slice %5 {offsets = [60, 0], sizes = [2, 32], strides = [1, 1]} : vector<96x32xf32> to vector<2x32xf32>
    %cst_98 = arith.constant dense<0.000000e+00> : vector<2x32xf32>
    %613 = tpu.matmul %610, %6, %cst_98 {dimension_numbers = #tpu.dot_dimension_numbers<[1], [0], [0], [1], [0, 0, 1, 1], [], []>} : vector<2x8xf32>, vector<8x32xf32>, vector<2x32xf32> -> vector<2x32xf32>
    %614 = arith.addf %612, %613 : vector<2x32xf32>
    %615 = arith.negf %614 : vector<2x32xf32>
    %616 = math.exp %615 : vector<2x32xf32>
    %cst_99 = arith.constant 1.000000e+00 : f32
    %617 = vector.broadcast %cst_99 : f32 to vector<2x32xf32>
    %618 = arith.addf %617, %616 : vector<2x32xf32>
    %619 = arith.divf %617, %618 : vector<2x32xf32>
    %620 = math.tanh %614 : vector<2x32xf32>
    %621 = arith.select %12, %620, %619 : vector<2x32xi1>, vector<2x32xf32>
    %622 = vector.extract_strided_slice %621 {offsets = [0, 0], sizes = [2, 8], strides = [1, 1]} : vector<2x32xf32> to vector<2x8xf32>
    %623 = vector.extract_strided_slice %621 {offsets = [0, 8], sizes = [2, 8], strides = [1, 1]} : vector<2x32xf32> to vector<2x8xf32>
    %624 = vector.extract_strided_slice %621 {offsets = [0, 16], sizes = [2, 8], strides = [1, 1]} : vector<2x32xf32> to vector<2x8xf32>
    %625 = vector.extract_strided_slice %621 {offsets = [0, 24], sizes = [2, 8], strides = [1, 1]} : vector<2x32xf32> to vector<2x8xf32>
    %626 = arith.mulf %623, %608 : vector<2x8xf32>
    %627 = arith.mulf %622, %624 : vector<2x8xf32>
    %628 = arith.addf %626, %627 : vector<2x8xf32>
    %629 = math.tanh %628 : vector<2x8xf32>
    %630 = arith.mulf %625, %629 : vector<2x8xf32>
    %c0_100 = arith.constant 0 : index
    %c240 = arith.constant 240 : index
    %631 = vector.load %arg7[%c0_100, %c240] : memref<2x384xf32, #tpu.memory_space<vmem>>, vector<2x8xf32>
    tpu.vector_store %arg7[%c0_100, %c240], %630 {strides = array<i32>} : memref<2x384xf32, #tpu.memory_space<vmem>>, vector<2x8xf32>,
    %632 = vector.extract_strided_slice %5 {offsets = [62, 0], sizes = [2, 32], strides = [1, 1]} : vector<96x32xf32> to vector<2x32xf32>
    %cst_101 = arith.constant dense<0.000000e+00> : vector<2x32xf32>
    %633 = tpu.matmul %630, %6, %cst_101 {dimension_numbers = #tpu.dot_dimension_numbers<[1], [0], [0], [1], [0, 0, 1, 1], [], []>} : vector<2x8xf32>, vector<8x32xf32>, vector<2x32xf32> -> vector<2x32xf32>
    %634 = arith.addf %632, %633 : vector<2x32xf32>
    %635 = arith.negf %634 : vector<2x32xf32>
    %636 = math.exp %635 : vector<2x32xf32>
    %cst_102 = arith.constant 1.000000e+00 : f32
    %637 = vector.broadcast %cst_102 : f32 to vector<2x32xf32>
    %638 = arith.addf %637, %636 : vector<2x32xf32>
    %639 = arith.divf %637, %638 : vector<2x32xf32>
    %640 = math.tanh %634 : vector<2x32xf32>
    %641 = arith.select %12, %640, %639 : vector<2x32xi1>, vector<2x32xf32>
    %642 = vector.extract_strided_slice %641 {offsets = [0, 0], sizes = [2, 8], strides = [1, 1]} : vector<2x32xf32> to vector<2x8xf32>
    %643 = vector.extract_strided_slice %641 {offsets = [0, 8], sizes = [2, 8], strides = [1, 1]} : vector<2x32xf32> to vector<2x8xf32>
    %644 = vector.extract_strided_slice %641 {offsets = [0, 16], sizes = [2, 8], strides = [1, 1]} : vector<2x32xf32> to vector<2x8xf32>
    %645 = vector.extract_strided_slice %641 {offsets = [0, 24], sizes = [2, 8], strides = [1, 1]} : vector<2x32xf32> to vector<2x8xf32>
    %646 = arith.mulf %643, %628 : vector<2x8xf32>
    %647 = arith.mulf %642, %644 : vector<2x8xf32>
    %648 = arith.addf %646, %647 : vector<2x8xf32>
    %649 = math.tanh %648 : vector<2x8xf32>
    %650 = arith.mulf %645, %649 : vector<2x8xf32>
    %c0_103 = arith.constant 0 : index
    %c248 = arith.constant 248 : index
    %651 = vector.load %arg7[%c0_103, %c248] : memref<2x384xf32, #tpu.memory_space<vmem>>, vector<2x8xf32>
    tpu.vector_store %arg7[%c0_103, %c248], %650 {strides = array<i32>} : memref<2x384xf32, #tpu.memory_space<vmem>>, vector<2x8xf32>,
    %652 = vector.extract_strided_slice %5 {offsets = [64, 0], sizes = [2, 32], strides = [1, 1]} : vector<96x32xf32> to vector<2x32xf32>
    %cst_104 = arith.constant dense<0.000000e+00> : vector<2x32xf32>
    %653 = tpu.matmul %650, %6, %cst_104 {dimension_numbers = #tpu.dot_dimension_numbers<[1], [0], [0], [1], [0, 0, 1, 1], [], []>} : vector<2x8xf32>, vector<8x32xf32>, vector<2x32xf32> -> vector<2x32xf32>
    %654 = arith.addf %652, %653 : vector<2x32xf32>
    %655 = arith.negf %654 : vector<2x32xf32>
    %656 = math.exp %655 : vector<2x32xf32>
    %cst_105 = arith.constant 1.000000e+00 : f32
    %657 = vector.broadcast %cst_105 : f32 to vector<2x32xf32>
    %658 = arith.addf %657, %656 : vector<2x32xf32>
    %659 = arith.divf %657, %658 : vector<2x32xf32>
    %660 = math.tanh %654 : vector<2x32xf32>
    %661 = arith.select %12, %660, %659 : vector<2x32xi1>, vector<2x32xf32>
    %662 = vector.extract_strided_slice %661 {offsets = [0, 0], sizes = [2, 8], strides = [1, 1]} : vector<2x32xf32> to vector<2x8xf32>
    %663 = vector.extract_strided_slice %661 {offsets = [0, 8], sizes = [2, 8], strides = [1, 1]} : vector<2x32xf32> to vector<2x8xf32>
    %664 = vector.extract_strided_slice %661 {offsets = [0, 16], sizes = [2, 8], strides = [1, 1]} : vector<2x32xf32> to vector<2x8xf32>
    %665 = vector.extract_strided_slice %661 {offsets = [0, 24], sizes = [2, 8], strides = [1, 1]} : vector<2x32xf32> to vector<2x8xf32>
    %666 = arith.mulf %663, %648 : vector<2x8xf32>
    %667 = arith.mulf %662, %664 : vector<2x8xf32>
    %668 = arith.addf %666, %667 : vector<2x8xf32>
    %669 = math.tanh %668 : vector<2x8xf32>
    %670 = arith.mulf %665, %669 : vector<2x8xf32>
    %c0_106 = arith.constant 0 : index
    %c256 = arith.constant 256 : index
    %671 = vector.load %arg7[%c0_106, %c256] : memref<2x384xf32, #tpu.memory_space<vmem>>, vector<2x8xf32>
    tpu.vector_store %arg7[%c0_106, %c256], %670 {strides = array<i32>} : memref<2x384xf32, #tpu.memory_space<vmem>>, vector<2x8xf32>,
    %672 = vector.extract_strided_slice %5 {offsets = [66, 0], sizes = [2, 32], strides = [1, 1]} : vector<96x32xf32> to vector<2x32xf32>
    %cst_107 = arith.constant dense<0.000000e+00> : vector<2x32xf32>
    %673 = tpu.matmul %670, %6, %cst_107 {dimension_numbers = #tpu.dot_dimension_numbers<[1], [0], [0], [1], [0, 0, 1, 1], [], []>} : vector<2x8xf32>, vector<8x32xf32>, vector<2x32xf32> -> vector<2x32xf32>
    %674 = arith.addf %672, %673 : vector<2x32xf32>
    %675 = arith.negf %674 : vector<2x32xf32>
    %676 = math.exp %675 : vector<2x32xf32>
    %cst_108 = arith.constant 1.000000e+00 : f32
    %677 = vector.broadcast %cst_108 : f32 to vector<2x32xf32>
    %678 = arith.addf %677, %676 : vector<2x32xf32>
    %679 = arith.divf %677, %678 : vector<2x32xf32>
    %680 = math.tanh %674 : vector<2x32xf32>
    %681 = arith.select %12, %680, %679 : vector<2x32xi1>, vector<2x32xf32>
    %682 = vector.extract_strided_slice %681 {offsets = [0, 0], sizes = [2, 8], strides = [1, 1]} : vector<2x32xf32> to vector<2x8xf32>
    %683 = vector.extract_strided_slice %681 {offsets = [0, 8], sizes = [2, 8], strides = [1, 1]} : vector<2x32xf32> to vector<2x8xf32>
    %684 = vector.extract_strided_slice %681 {offsets = [0, 16], sizes = [2, 8], strides = [1, 1]} : vector<2x32xf32> to vector<2x8xf32>
    %685 = vector.extract_strided_slice %681 {offsets = [0, 24], sizes = [2, 8], strides = [1, 1]} : vector<2x32xf32> to vector<2x8xf32>
    %686 = arith.mulf %683, %668 : vector<2x8xf32>
    %687 = arith.mulf %682, %684 : vector<2x8xf32>
    %688 = arith.addf %686, %687 : vector<2x8xf32>
    %689 = math.tanh %688 : vector<2x8xf32>
    %690 = arith.mulf %685, %689 : vector<2x8xf32>
    %c0_109 = arith.constant 0 : index
    %c264 = arith.constant 264 : index
    %691 = vector.load %arg7[%c0_109, %c264] : memref<2x384xf32, #tpu.memory_space<vmem>>, vector<2x8xf32>
    tpu.vector_store %arg7[%c0_109, %c264], %690 {strides = array<i32>} : memref<2x384xf32, #tpu.memory_space<vmem>>, vector<2x8xf32>,
    %692 = vector.extract_strided_slice %5 {offsets = [68, 0], sizes = [2, 32], strides = [1, 1]} : vector<96x32xf32> to vector<2x32xf32>
    %cst_110 = arith.constant dense<0.000000e+00> : vector<2x32xf32>
    %693 = tpu.matmul %690, %6, %cst_110 {dimension_numbers = #tpu.dot_dimension_numbers<[1], [0], [0], [1], [0, 0, 1, 1], [], []>} : vector<2x8xf32>, vector<8x32xf32>, vector<2x32xf32> -> vector<2x32xf32>
    %694 = arith.addf %692, %693 : vector<2x32xf32>
    %695 = arith.negf %694 : vector<2x32xf32>
    %696 = math.exp %695 : vector<2x32xf32>
    %cst_111 = arith.constant 1.000000e+00 : f32
    %697 = vector.broadcast %cst_111 : f32 to vector<2x32xf32>
    %698 = arith.addf %697, %696 : vector<2x32xf32>
    %699 = arith.divf %697, %698 : vector<2x32xf32>
    %700 = math.tanh %694 : vector<2x32xf32>
    %701 = arith.select %12, %700, %699 : vector<2x32xi1>, vector<2x32xf32>
    %702 = vector.extract_strided_slice %701 {offsets = [0, 0], sizes = [2, 8], strides = [1, 1]} : vector<2x32xf32> to vector<2x8xf32>
    %703 = vector.extract_strided_slice %701 {offsets = [0, 8], sizes = [2, 8], strides = [1, 1]} : vector<2x32xf32> to vector<2x8xf32>
    %704 = vector.extract_strided_slice %701 {offsets = [0, 16], sizes = [2, 8], strides = [1, 1]} : vector<2x32xf32> to vector<2x8xf32>
    %705 = vector.extract_strided_slice %701 {offsets = [0, 24], sizes = [2, 8], strides = [1, 1]} : vector<2x32xf32> to vector<2x8xf32>
    %706 = arith.mulf %703, %688 : vector<2x8xf32>
    %707 = arith.mulf %702, %704 : vector<2x8xf32>
    %708 = arith.addf %706, %707 : vector<2x8xf32>
    %709 = math.tanh %708 : vector<2x8xf32>
    %710 = arith.mulf %705, %709 : vector<2x8xf32>
    %c0_112 = arith.constant 0 : index
    %c272 = arith.constant 272 : index
    %711 = vector.load %arg7[%c0_112, %c272] : memref<2x384xf32, #tpu.memory_space<vmem>>, vector<2x8xf32>
    tpu.vector_store %arg7[%c0_112, %c272], %710 {strides = array<i32>} : memref<2x384xf32, #tpu.memory_space<vmem>>, vector<2x8xf32>,
    %712 = vector.extract_strided_slice %5 {offsets = [70, 0], sizes = [2, 32], strides = [1, 1]} : vector<96x32xf32> to vector<2x32xf32>
    %cst_113 = arith.constant dense<0.000000e+00> : vector<2x32xf32>
    %713 = tpu.matmul %710, %6, %cst_113 {dimension_numbers = #tpu.dot_dimension_numbers<[1], [0], [0], [1], [0, 0, 1, 1], [], []>} : vector<2x8xf32>, vector<8x32xf32>, vector<2x32xf32> -> vector<2x32xf32>
    %714 = arith.addf %712, %713 : vector<2x32xf32>
    %715 = arith.negf %714 : vector<2x32xf32>
    %716 = math.exp %715 : vector<2x32xf32>
    %cst_114 = arith.constant 1.000000e+00 : f32
    %717 = vector.broadcast %cst_114 : f32 to vector<2x32xf32>
    %718 = arith.addf %717, %716 : vector<2x32xf32>
    %719 = arith.divf %717, %718 : vector<2x32xf32>
    %720 = math.tanh %714 : vector<2x32xf32>
    %721 = arith.select %12, %720, %719 : vector<2x32xi1>, vector<2x32xf32>
    %722 = vector.extract_strided_slice %721 {offsets = [0, 0], sizes = [2, 8], strides = [1, 1]} : vector<2x32xf32> to vector<2x8xf32>
    %723 = vector.extract_strided_slice %721 {offsets = [0, 8], sizes = [2, 8], strides = [1, 1]} : vector<2x32xf32> to vector<2x8xf32>
    %724 = vector.extract_strided_slice %721 {offsets = [0, 16], sizes = [2, 8], strides = [1, 1]} : vector<2x32xf32> to vector<2x8xf32>
    %725 = vector.extract_strided_slice %721 {offsets = [0, 24], sizes = [2, 8], strides = [1, 1]} : vector<2x32xf32> to vector<2x8xf32>
    %726 = arith.mulf %723, %708 : vector<2x8xf32>
    %727 = arith.mulf %722, %724 : vector<2x8xf32>
    %728 = arith.addf %726, %727 : vector<2x8xf32>
    %729 = math.tanh %728 : vector<2x8xf32>
    %730 = arith.mulf %725, %729 : vector<2x8xf32>
    %c0_115 = arith.constant 0 : index
    %c280 = arith.constant 280 : index
    %731 = vector.load %arg7[%c0_115, %c280] : memref<2x384xf32, #tpu.memory_space<vmem>>, vector<2x8xf32>
    tpu.vector_store %arg7[%c0_115, %c280], %730 {strides = array<i32>} : memref<2x384xf32, #tpu.memory_space<vmem>>, vector<2x8xf32>,
    %732 = vector.extract_strided_slice %5 {offsets = [72, 0], sizes = [2, 32], strides = [1, 1]} : vector<96x32xf32> to vector<2x32xf32>
    %cst_116 = arith.constant dense<0.000000e+00> : vector<2x32xf32>
    %733 = tpu.matmul %730, %6, %cst_116 {dimension_numbers = #tpu.dot_dimension_numbers<[1], [0], [0], [1], [0, 0, 1, 1], [], []>} : vector<2x8xf32>, vector<8x32xf32>, vector<2x32xf32> -> vector<2x32xf32>
    %734 = arith.addf %732, %733 : vector<2x32xf32>
    %735 = arith.negf %734 : vector<2x32xf32>
    %736 = math.exp %735 : vector<2x32xf32>
    %cst_117 = arith.constant 1.000000e+00 : f32
    %737 = vector.broadcast %cst_117 : f32 to vector<2x32xf32>
    %738 = arith.addf %737, %736 : vector<2x32xf32>
    %739 = arith.divf %737, %738 : vector<2x32xf32>
    %740 = math.tanh %734 : vector<2x32xf32>
    %741 = arith.select %12, %740, %739 : vector<2x32xi1>, vector<2x32xf32>
    %742 = vector.extract_strided_slice %741 {offsets = [0, 0], sizes = [2, 8], strides = [1, 1]} : vector<2x32xf32> to vector<2x8xf32>
    %743 = vector.extract_strided_slice %741 {offsets = [0, 8], sizes = [2, 8], strides = [1, 1]} : vector<2x32xf32> to vector<2x8xf32>
    %744 = vector.extract_strided_slice %741 {offsets = [0, 16], sizes = [2, 8], strides = [1, 1]} : vector<2x32xf32> to vector<2x8xf32>
    %745 = vector.extract_strided_slice %741 {offsets = [0, 24], sizes = [2, 8], strides = [1, 1]} : vector<2x32xf32> to vector<2x8xf32>
    %746 = arith.mulf %743, %728 : vector<2x8xf32>
    %747 = arith.mulf %742, %744 : vector<2x8xf32>
    %748 = arith.addf %746, %747 : vector<2x8xf32>
    %749 = math.tanh %748 : vector<2x8xf32>
    %750 = arith.mulf %745, %749 : vector<2x8xf32>
    %c0_118 = arith.constant 0 : index
    %c288 = arith.constant 288 : index
    %751 = vector.load %arg7[%c0_118, %c288] : memref<2x384xf32, #tpu.memory_space<vmem>>, vector<2x8xf32>
    tpu.vector_store %arg7[%c0_118, %c288], %750 {strides = array<i32>} : memref<2x384xf32, #tpu.memory_space<vmem>>, vector<2x8xf32>,
    %752 = vector.extract_strided_slice %5 {offsets = [74, 0], sizes = [2, 32], strides = [1, 1]} : vector<96x32xf32> to vector<2x32xf32>
    %cst_119 = arith.constant dense<0.000000e+00> : vector<2x32xf32>
    %753 = tpu.matmul %750, %6, %cst_119 {dimension_numbers = #tpu.dot_dimension_numbers<[1], [0], [0], [1], [0, 0, 1, 1], [], []>} : vector<2x8xf32>, vector<8x32xf32>, vector<2x32xf32> -> vector<2x32xf32>
    %754 = arith.addf %752, %753 : vector<2x32xf32>
    %755 = arith.negf %754 : vector<2x32xf32>
    %756 = math.exp %755 : vector<2x32xf32>
    %cst_120 = arith.constant 1.000000e+00 : f32
    %757 = vector.broadcast %cst_120 : f32 to vector<2x32xf32>
    %758 = arith.addf %757, %756 : vector<2x32xf32>
    %759 = arith.divf %757, %758 : vector<2x32xf32>
    %760 = math.tanh %754 : vector<2x32xf32>
    %761 = arith.select %12, %760, %759 : vector<2x32xi1>, vector<2x32xf32>
    %762 = vector.extract_strided_slice %761 {offsets = [0, 0], sizes = [2, 8], strides = [1, 1]} : vector<2x32xf32> to vector<2x8xf32>
    %763 = vector.extract_strided_slice %761 {offsets = [0, 8], sizes = [2, 8], strides = [1, 1]} : vector<2x32xf32> to vector<2x8xf32>
    %764 = vector.extract_strided_slice %761 {offsets = [0, 16], sizes = [2, 8], strides = [1, 1]} : vector<2x32xf32> to vector<2x8xf32>
    %765 = vector.extract_strided_slice %761 {offsets = [0, 24], sizes = [2, 8], strides = [1, 1]} : vector<2x32xf32> to vector<2x8xf32>
    %766 = arith.mulf %763, %748 : vector<2x8xf32>
    %767 = arith.mulf %762, %764 : vector<2x8xf32>
    %768 = arith.addf %766, %767 : vector<2x8xf32>
    %769 = math.tanh %768 : vector<2x8xf32>
    %770 = arith.mulf %765, %769 : vector<2x8xf32>
    %c0_121 = arith.constant 0 : index
    %c296 = arith.constant 296 : index
    %771 = vector.load %arg7[%c0_121, %c296] : memref<2x384xf32, #tpu.memory_space<vmem>>, vector<2x8xf32>
    tpu.vector_store %arg7[%c0_121, %c296], %770 {strides = array<i32>} : memref<2x384xf32, #tpu.memory_space<vmem>>, vector<2x8xf32>,
    %772 = vector.extract_strided_slice %5 {offsets = [76, 0], sizes = [2, 32], strides = [1, 1]} : vector<96x32xf32> to vector<2x32xf32>
    %cst_122 = arith.constant dense<0.000000e+00> : vector<2x32xf32>
    %773 = tpu.matmul %770, %6, %cst_122 {dimension_numbers = #tpu.dot_dimension_numbers<[1], [0], [0], [1], [0, 0, 1, 1], [], []>} : vector<2x8xf32>, vector<8x32xf32>, vector<2x32xf32> -> vector<2x32xf32>
    %774 = arith.addf %772, %773 : vector<2x32xf32>
    %775 = arith.negf %774 : vector<2x32xf32>
    %776 = math.exp %775 : vector<2x32xf32>
    %cst_123 = arith.constant 1.000000e+00 : f32
    %777 = vector.broadcast %cst_123 : f32 to vector<2x32xf32>
    %778 = arith.addf %777, %776 : vector<2x32xf32>
    %779 = arith.divf %777, %778 : vector<2x32xf32>
    %780 = math.tanh %774 : vector<2x32xf32>
    %781 = arith.select %12, %780, %779 : vector<2x32xi1>, vector<2x32xf32>
    %782 = vector.extract_strided_slice %781 {offsets = [0, 0], sizes = [2, 8], strides = [1, 1]} : vector<2x32xf32> to vector<2x8xf32>
    %783 = vector.extract_strided_slice %781 {offsets = [0, 8], sizes = [2, 8], strides = [1, 1]} : vector<2x32xf32> to vector<2x8xf32>
    %784 = vector.extract_strided_slice %781 {offsets = [0, 16], sizes = [2, 8], strides = [1, 1]} : vector<2x32xf32> to vector<2x8xf32>
    %785 = vector.extract_strided_slice %781 {offsets = [0, 24], sizes = [2, 8], strides = [1, 1]} : vector<2x32xf32> to vector<2x8xf32>
    %786 = arith.mulf %783, %768 : vector<2x8xf32>
    %787 = arith.mulf %782, %784 : vector<2x8xf32>
    %788 = arith.addf %786, %787 : vector<2x8xf32>
    %789 = math.tanh %788 : vector<2x8xf32>
    %790 = arith.mulf %785, %789 : vector<2x8xf32>
    %c0_124 = arith.constant 0 : index
    %c304 = arith.constant 304 : index
    %791 = vector.load %arg7[%c0_124, %c304] : memref<2x384xf32, #tpu.memory_space<vmem>>, vector<2x8xf32>
    tpu.vector_store %arg7[%c0_124, %c304], %790 {strides = array<i32>} : memref<2x384xf32, #tpu.memory_space<vmem>>, vector<2x8xf32>,
    %792 = vector.extract_strided_slice %5 {offsets = [78, 0], sizes = [2, 32], strides = [1, 1]} : vector<96x32xf32> to vector<2x32xf32>
    %cst_125 = arith.constant dense<0.000000e+00> : vector<2x32xf32>
    %793 = tpu.matmul %790, %6, %cst_125 {dimension_numbers = #tpu.dot_dimension_numbers<[1], [0], [0], [1], [0, 0, 1, 1], [], []>} : vector<2x8xf32>, vector<8x32xf32>, vector<2x32xf32> -> vector<2x32xf32>
    %794 = arith.addf %792, %793 : vector<2x32xf32>
    %795 = arith.negf %794 : vector<2x32xf32>
    %796 = math.exp %795 : vector<2x32xf32>
    %cst_126 = arith.constant 1.000000e+00 : f32
    %797 = vector.broadcast %cst_126 : f32 to vector<2x32xf32>
    %798 = arith.addf %797, %796 : vector<2x32xf32>
    %799 = arith.divf %797, %798 : vector<2x32xf32>
    %800 = math.tanh %794 : vector<2x32xf32>
    %801 = arith.select %12, %800, %799 : vector<2x32xi1>, vector<2x32xf32>
    %802 = vector.extract_strided_slice %801 {offsets = [0, 0], sizes = [2, 8], strides = [1, 1]} : vector<2x32xf32> to vector<2x8xf32>
    %803 = vector.extract_strided_slice %801 {offsets = [0, 8], sizes = [2, 8], strides = [1, 1]} : vector<2x32xf32> to vector<2x8xf32>
    %804 = vector.extract_strided_slice %801 {offsets = [0, 16], sizes = [2, 8], strides = [1, 1]} : vector<2x32xf32> to vector<2x8xf32>
    %805 = vector.extract_strided_slice %801 {offsets = [0, 24], sizes = [2, 8], strides = [1, 1]} : vector<2x32xf32> to vector<2x8xf32>
    %806 = arith.mulf %803, %788 : vector<2x8xf32>
    %807 = arith.mulf %802, %804 : vector<2x8xf32>
    %808 = arith.addf %806, %807 : vector<2x8xf32>
    %809 = math.tanh %808 : vector<2x8xf32>
    %810 = arith.mulf %805, %809 : vector<2x8xf32>
    %c0_127 = arith.constant 0 : index
    %c312 = arith.constant 312 : index
    %811 = vector.load %arg7[%c0_127, %c312] : memref<2x384xf32, #tpu.memory_space<vmem>>, vector<2x8xf32>
    tpu.vector_store %arg7[%c0_127, %c312], %810 {strides = array<i32>} : memref<2x384xf32, #tpu.memory_space<vmem>>, vector<2x8xf32>,
    %812 = vector.extract_strided_slice %5 {offsets = [80, 0], sizes = [2, 32], strides = [1, 1]} : vector<96x32xf32> to vector<2x32xf32>
    %cst_128 = arith.constant dense<0.000000e+00> : vector<2x32xf32>
    %813 = tpu.matmul %810, %6, %cst_128 {dimension_numbers = #tpu.dot_dimension_numbers<[1], [0], [0], [1], [0, 0, 1, 1], [], []>} : vector<2x8xf32>, vector<8x32xf32>, vector<2x32xf32> -> vector<2x32xf32>
    %814 = arith.addf %812, %813 : vector<2x32xf32>
    %815 = arith.negf %814 : vector<2x32xf32>
    %816 = math.exp %815 : vector<2x32xf32>
    %cst_129 = arith.constant 1.000000e+00 : f32
    %817 = vector.broadcast %cst_129 : f32 to vector<2x32xf32>
    %818 = arith.addf %817, %816 : vector<2x32xf32>
    %819 = arith.divf %817, %818 : vector<2x32xf32>
    %820 = math.tanh %814 : vector<2x32xf32>
    %821 = arith.select %12, %820, %819 : vector<2x32xi1>, vector<2x32xf32>
    %822 = vector.extract_strided_slice %821 {offsets = [0, 0], sizes = [2, 8], strides = [1, 1]} : vector<2x32xf32> to vector<2x8xf32>
    %823 = vector.extract_strided_slice %821 {offsets = [0, 8], sizes = [2, 8], strides = [1, 1]} : vector<2x32xf32> to vector<2x8xf32>
    %824 = vector.extract_strided_slice %821 {offsets = [0, 16], sizes = [2, 8], strides = [1, 1]} : vector<2x32xf32> to vector<2x8xf32>
    %825 = vector.extract_strided_slice %821 {offsets = [0, 24], sizes = [2, 8], strides = [1, 1]} : vector<2x32xf32> to vector<2x8xf32>
    %826 = arith.mulf %823, %808 : vector<2x8xf32>
    %827 = arith.mulf %822, %824 : vector<2x8xf32>
    %828 = arith.addf %826, %827 : vector<2x8xf32>
    %829 = math.tanh %828 : vector<2x8xf32>
    %830 = arith.mulf %825, %829 : vector<2x8xf32>
    %c0_130 = arith.constant 0 : index
    %c320 = arith.constant 320 : index
    %831 = vector.load %arg7[%c0_130, %c320] : memref<2x384xf32, #tpu.memory_space<vmem>>, vector<2x8xf32>
    tpu.vector_store %arg7[%c0_130, %c320], %830 {strides = array<i32>} : memref<2x384xf32, #tpu.memory_space<vmem>>, vector<2x8xf32>,
    %832 = vector.extract_strided_slice %5 {offsets = [82, 0], sizes = [2, 32], strides = [1, 1]} : vector<96x32xf32> to vector<2x32xf32>
    %cst_131 = arith.constant dense<0.000000e+00> : vector<2x32xf32>
    %833 = tpu.matmul %830, %6, %cst_131 {dimension_numbers = #tpu.dot_dimension_numbers<[1], [0], [0], [1], [0, 0, 1, 1], [], []>} : vector<2x8xf32>, vector<8x32xf32>, vector<2x32xf32> -> vector<2x32xf32>
    %834 = arith.addf %832, %833 : vector<2x32xf32>
    %835 = arith.negf %834 : vector<2x32xf32>
    %836 = math.exp %835 : vector<2x32xf32>
    %cst_132 = arith.constant 1.000000e+00 : f32
    %837 = vector.broadcast %cst_132 : f32 to vector<2x32xf32>
    %838 = arith.addf %837, %836 : vector<2x32xf32>
    %839 = arith.divf %837, %838 : vector<2x32xf32>
    %840 = math.tanh %834 : vector<2x32xf32>
    %841 = arith.select %12, %840, %839 : vector<2x32xi1>, vector<2x32xf32>
    %842 = vector.extract_strided_slice %841 {offsets = [0, 0], sizes = [2, 8], strides = [1, 1]} : vector<2x32xf32> to vector<2x8xf32>
    %843 = vector.extract_strided_slice %841 {offsets = [0, 8], sizes = [2, 8], strides = [1, 1]} : vector<2x32xf32> to vector<2x8xf32>
    %844 = vector.extract_strided_slice %841 {offsets = [0, 16], sizes = [2, 8], strides = [1, 1]} : vector<2x32xf32> to vector<2x8xf32>
    %845 = vector.extract_strided_slice %841 {offsets = [0, 24], sizes = [2, 8], strides = [1, 1]} : vector<2x32xf32> to vector<2x8xf32>
    %846 = arith.mulf %843, %828 : vector<2x8xf32>
    %847 = arith.mulf %842, %844 : vector<2x8xf32>
    %848 = arith.addf %846, %847 : vector<2x8xf32>
    %849 = math.tanh %848 : vector<2x8xf32>
    %850 = arith.mulf %845, %849 : vector<2x8xf32>
    %c0_133 = arith.constant 0 : index
    %c328 = arith.constant 328 : index
    %851 = vector.load %arg7[%c0_133, %c328] : memref<2x384xf32, #tpu.memory_space<vmem>>, vector<2x8xf32>
    tpu.vector_store %arg7[%c0_133, %c328], %850 {strides = array<i32>} : memref<2x384xf32, #tpu.memory_space<vmem>>, vector<2x8xf32>,
    %852 = vector.extract_strided_slice %5 {offsets = [84, 0], sizes = [2, 32], strides = [1, 1]} : vector<96x32xf32> to vector<2x32xf32>
    %cst_134 = arith.constant dense<0.000000e+00> : vector<2x32xf32>
    %853 = tpu.matmul %850, %6, %cst_134 {dimension_numbers = #tpu.dot_dimension_numbers<[1], [0], [0], [1], [0, 0, 1, 1], [], []>} : vector<2x8xf32>, vector<8x32xf32>, vector<2x32xf32> -> vector<2x32xf32>
    %854 = arith.addf %852, %853 : vector<2x32xf32>
    %855 = arith.negf %854 : vector<2x32xf32>
    %856 = math.exp %855 : vector<2x32xf32>
    %cst_135 = arith.constant 1.000000e+00 : f32
    %857 = vector.broadcast %cst_135 : f32 to vector<2x32xf32>
    %858 = arith.addf %857, %856 : vector<2x32xf32>
    %859 = arith.divf %857, %858 : vector<2x32xf32>
    %860 = math.tanh %854 : vector<2x32xf32>
    %861 = arith.select %12, %860, %859 : vector<2x32xi1>, vector<2x32xf32>
    %862 = vector.extract_strided_slice %861 {offsets = [0, 0], sizes = [2, 8], strides = [1, 1]} : vector<2x32xf32> to vector<2x8xf32>
    %863 = vector.extract_strided_slice %861 {offsets = [0, 8], sizes = [2, 8], strides = [1, 1]} : vector<2x32xf32> to vector<2x8xf32>
    %864 = vector.extract_strided_slice %861 {offsets = [0, 16], sizes = [2, 8], strides = [1, 1]} : vector<2x32xf32> to vector<2x8xf32>
    %865 = vector.extract_strided_slice %861 {offsets = [0, 24], sizes = [2, 8], strides = [1, 1]} : vector<2x32xf32> to vector<2x8xf32>
    %866 = arith.mulf %863, %848 : vector<2x8xf32>
    %867 = arith.mulf %862, %864 : vector<2x8xf32>
    %868 = arith.addf %866, %867 : vector<2x8xf32>
    %869 = math.tanh %868 : vector<2x8xf32>
    %870 = arith.mulf %865, %869 : vector<2x8xf32>
    %c0_136 = arith.constant 0 : index
    %c336 = arith.constant 336 : index
    %871 = vector.load %arg7[%c0_136, %c336] : memref<2x384xf32, #tpu.memory_space<vmem>>, vector<2x8xf32>
    tpu.vector_store %arg7[%c0_136, %c336], %870 {strides = array<i32>} : memref<2x384xf32, #tpu.memory_space<vmem>>, vector<2x8xf32>,
    %872 = vector.extract_strided_slice %5 {offsets = [86, 0], sizes = [2, 32], strides = [1, 1]} : vector<96x32xf32> to vector<2x32xf32>
    %cst_137 = arith.constant dense<0.000000e+00> : vector<2x32xf32>
    %873 = tpu.matmul %870, %6, %cst_137 {dimension_numbers = #tpu.dot_dimension_numbers<[1], [0], [0], [1], [0, 0, 1, 1], [], []>} : vector<2x8xf32>, vector<8x32xf32>, vector<2x32xf32> -> vector<2x32xf32>
    %874 = arith.addf %872, %873 : vector<2x32xf32>
    %875 = arith.negf %874 : vector<2x32xf32>
    %876 = math.exp %875 : vector<2x32xf32>
    %cst_138 = arith.constant 1.000000e+00 : f32
    %877 = vector.broadcast %cst_138 : f32 to vector<2x32xf32>
    %878 = arith.addf %877, %876 : vector<2x32xf32>
    %879 = arith.divf %877, %878 : vector<2x32xf32>
    %880 = math.tanh %874 : vector<2x32xf32>
    %881 = arith.select %12, %880, %879 : vector<2x32xi1>, vector<2x32xf32>
    %882 = vector.extract_strided_slice %881 {offsets = [0, 0], sizes = [2, 8], strides = [1, 1]} : vector<2x32xf32> to vector<2x8xf32>
    %883 = vector.extract_strided_slice %881 {offsets = [0, 8], sizes = [2, 8], strides = [1, 1]} : vector<2x32xf32> to vector<2x8xf32>
    %884 = vector.extract_strided_slice %881 {offsets = [0, 16], sizes = [2, 8], strides = [1, 1]} : vector<2x32xf32> to vector<2x8xf32>
    %885 = vector.extract_strided_slice %881 {offsets = [0, 24], sizes = [2, 8], strides = [1, 1]} : vector<2x32xf32> to vector<2x8xf32>
    %886 = arith.mulf %883, %868 : vector<2x8xf32>
    %887 = arith.mulf %882, %884 : vector<2x8xf32>
    %888 = arith.addf %886, %887 : vector<2x8xf32>
    %889 = math.tanh %888 : vector<2x8xf32>
    %890 = arith.mulf %885, %889 : vector<2x8xf32>
    %c0_139 = arith.constant 0 : index
    %c344 = arith.constant 344 : index
    %891 = vector.load %arg7[%c0_139, %c344] : memref<2x384xf32, #tpu.memory_space<vmem>>, vector<2x8xf32>
    tpu.vector_store %arg7[%c0_139, %c344], %890 {strides = array<i32>} : memref<2x384xf32, #tpu.memory_space<vmem>>, vector<2x8xf32>,
    %892 = vector.extract_strided_slice %5 {offsets = [88, 0], sizes = [2, 32], strides = [1, 1]} : vector<96x32xf32> to vector<2x32xf32>
    %cst_140 = arith.constant dense<0.000000e+00> : vector<2x32xf32>
    %893 = tpu.matmul %890, %6, %cst_140 {dimension_numbers = #tpu.dot_dimension_numbers<[1], [0], [0], [1], [0, 0, 1, 1], [], []>} : vector<2x8xf32>, vector<8x32xf32>, vector<2x32xf32> -> vector<2x32xf32>
    %894 = arith.addf %892, %893 : vector<2x32xf32>
    %895 = arith.negf %894 : vector<2x32xf32>
    %896 = math.exp %895 : vector<2x32xf32>
    %cst_141 = arith.constant 1.000000e+00 : f32
    %897 = vector.broadcast %cst_141 : f32 to vector<2x32xf32>
    %898 = arith.addf %897, %896 : vector<2x32xf32>
    %899 = arith.divf %897, %898 : vector<2x32xf32>
    %900 = math.tanh %894 : vector<2x32xf32>
    %901 = arith.select %12, %900, %899 : vector<2x32xi1>, vector<2x32xf32>
    %902 = vector.extract_strided_slice %901 {offsets = [0, 0], sizes = [2, 8], strides = [1, 1]} : vector<2x32xf32> to vector<2x8xf32>
    %903 = vector.extract_strided_slice %901 {offsets = [0, 8], sizes = [2, 8], strides = [1, 1]} : vector<2x32xf32> to vector<2x8xf32>
    %904 = vector.extract_strided_slice %901 {offsets = [0, 16], sizes = [2, 8], strides = [1, 1]} : vector<2x32xf32> to vector<2x8xf32>
    %905 = vector.extract_strided_slice %901 {offsets = [0, 24], sizes = [2, 8], strides = [1, 1]} : vector<2x32xf32> to vector<2x8xf32>
    %906 = arith.mulf %903, %888 : vector<2x8xf32>
    %907 = arith.mulf %902, %904 : vector<2x8xf32>
    %908 = arith.addf %906, %907 : vector<2x8xf32>
    %909 = math.tanh %908 : vector<2x8xf32>
    %910 = arith.mulf %905, %909 : vector<2x8xf32>
    %c0_142 = arith.constant 0 : index
    %c352 = arith.constant 352 : index
    %911 = vector.load %arg7[%c0_142, %c352] : memref<2x384xf32, #tpu.memory_space<vmem>>, vector<2x8xf32>
    tpu.vector_store %arg7[%c0_142, %c352], %910 {strides = array<i32>} : memref<2x384xf32, #tpu.memory_space<vmem>>, vector<2x8xf32>,
    %912 = vector.extract_strided_slice %5 {offsets = [90, 0], sizes = [2, 32], strides = [1, 1]} : vector<96x32xf32> to vector<2x32xf32>
    %cst_143 = arith.constant dense<0.000000e+00> : vector<2x32xf32>
    %913 = tpu.matmul %910, %6, %cst_143 {dimension_numbers = #tpu.dot_dimension_numbers<[1], [0], [0], [1], [0, 0, 1, 1], [], []>} : vector<2x8xf32>, vector<8x32xf32>, vector<2x32xf32> -> vector<2x32xf32>
    %914 = arith.addf %912, %913 : vector<2x32xf32>
    %915 = arith.negf %914 : vector<2x32xf32>
    %916 = math.exp %915 : vector<2x32xf32>
    %cst_144 = arith.constant 1.000000e+00 : f32
    %917 = vector.broadcast %cst_144 : f32 to vector<2x32xf32>
    %918 = arith.addf %917, %916 : vector<2x32xf32>
    %919 = arith.divf %917, %918 : vector<2x32xf32>
    %920 = math.tanh %914 : vector<2x32xf32>
    %921 = arith.select %12, %920, %919 : vector<2x32xi1>, vector<2x32xf32>
    %922 = vector.extract_strided_slice %921 {offsets = [0, 0], sizes = [2, 8], strides = [1, 1]} : vector<2x32xf32> to vector<2x8xf32>
    %923 = vector.extract_strided_slice %921 {offsets = [0, 8], sizes = [2, 8], strides = [1, 1]} : vector<2x32xf32> to vector<2x8xf32>
    %924 = vector.extract_strided_slice %921 {offsets = [0, 16], sizes = [2, 8], strides = [1, 1]} : vector<2x32xf32> to vector<2x8xf32>
    %925 = vector.extract_strided_slice %921 {offsets = [0, 24], sizes = [2, 8], strides = [1, 1]} : vector<2x32xf32> to vector<2x8xf32>
    %926 = arith.mulf %923, %908 : vector<2x8xf32>
    %927 = arith.mulf %922, %924 : vector<2x8xf32>
    %928 = arith.addf %926, %927 : vector<2x8xf32>
    %929 = math.tanh %928 : vector<2x8xf32>
    %930 = arith.mulf %925, %929 : vector<2x8xf32>
    %c0_145 = arith.constant 0 : index
    %c360 = arith.constant 360 : index
    %931 = vector.load %arg7[%c0_145, %c360] : memref<2x384xf32, #tpu.memory_space<vmem>>, vector<2x8xf32>
    tpu.vector_store %arg7[%c0_145, %c360], %930 {strides = array<i32>} : memref<2x384xf32, #tpu.memory_space<vmem>>, vector<2x8xf32>,
    %932 = vector.extract_strided_slice %5 {offsets = [92, 0], sizes = [2, 32], strides = [1, 1]} : vector<96x32xf32> to vector<2x32xf32>
    %cst_146 = arith.constant dense<0.000000e+00> : vector<2x32xf32>
    %933 = tpu.matmul %930, %6, %cst_146 {dimension_numbers = #tpu.dot_dimension_numbers<[1], [0], [0], [1], [0, 0, 1, 1], [], []>} : vector<2x8xf32>, vector<8x32xf32>, vector<2x32xf32> -> vector<2x32xf32>
    %934 = arith.addf %932, %933 : vector<2x32xf32>
    %935 = arith.negf %934 : vector<2x32xf32>
    %936 = math.exp %935 : vector<2x32xf32>
    %cst_147 = arith.constant 1.000000e+00 : f32
    %937 = vector.broadcast %cst_147 : f32 to vector<2x32xf32>
    %938 = arith.addf %937, %936 : vector<2x32xf32>
    %939 = arith.divf %937, %938 : vector<2x32xf32>
    %940 = math.tanh %934 : vector<2x32xf32>
    %941 = arith.select %12, %940, %939 : vector<2x32xi1>, vector<2x32xf32>
    %942 = vector.extract_strided_slice %941 {offsets = [0, 0], sizes = [2, 8], strides = [1, 1]} : vector<2x32xf32> to vector<2x8xf32>
    %943 = vector.extract_strided_slice %941 {offsets = [0, 8], sizes = [2, 8], strides = [1, 1]} : vector<2x32xf32> to vector<2x8xf32>
    %944 = vector.extract_strided_slice %941 {offsets = [0, 16], sizes = [2, 8], strides = [1, 1]} : vector<2x32xf32> to vector<2x8xf32>
    %945 = vector.extract_strided_slice %941 {offsets = [0, 24], sizes = [2, 8], strides = [1, 1]} : vector<2x32xf32> to vector<2x8xf32>
    %946 = arith.mulf %943, %928 : vector<2x8xf32>
    %947 = arith.mulf %942, %944 : vector<2x8xf32>
    %948 = arith.addf %946, %947 : vector<2x8xf32>
    %949 = math.tanh %948 : vector<2x8xf32>
    %950 = arith.mulf %945, %949 : vector<2x8xf32>
    %c0_148 = arith.constant 0 : index
    %c368 = arith.constant 368 : index
    %951 = vector.load %arg7[%c0_148, %c368] : memref<2x384xf32, #tpu.memory_space<vmem>>, vector<2x8xf32>
    tpu.vector_store %arg7[%c0_148, %c368], %950 {strides = array<i32>} : memref<2x384xf32, #tpu.memory_space<vmem>>, vector<2x8xf32>,
    %952 = vector.extract_strided_slice %5 {offsets = [94, 0], sizes = [2, 32], strides = [1, 1]} : vector<96x32xf32> to vector<2x32xf32>
    %cst_149 = arith.constant dense<0.000000e+00> : vector<2x32xf32>
    %953 = tpu.matmul %950, %6, %cst_149 {dimension_numbers = #tpu.dot_dimension_numbers<[1], [0], [0], [1], [0, 0, 1, 1], [], []>} : vector<2x8xf32>, vector<8x32xf32>, vector<2x32xf32> -> vector<2x32xf32>
    %954 = arith.addf %952, %953 : vector<2x32xf32>
    %955 = arith.negf %954 : vector<2x32xf32>
    %956 = math.exp %955 : vector<2x32xf32>
    %cst_150 = arith.constant 1.000000e+00 : f32
    %957 = vector.broadcast %cst_150 : f32 to vector<2x32xf32>
    %958 = arith.addf %957, %956 : vector<2x32xf32>
    %959 = arith.divf %957, %958 : vector<2x32xf32>
    %960 = math.tanh %954 : vector<2x32xf32>
    %961 = arith.select %12, %960, %959 : vector<2x32xi1>, vector<2x32xf32>
    %962 = vector.extract_strided_slice %961 {offsets = [0, 0], sizes = [2, 8], strides = [1, 1]} : vector<2x32xf32> to vector<2x8xf32>
    %963 = vector.extract_strided_slice %961 {offsets = [0, 8], sizes = [2, 8], strides = [1, 1]} : vector<2x32xf32> to vector<2x8xf32>
    %964 = vector.extract_strided_slice %961 {offsets = [0, 16], sizes = [2, 8], strides = [1, 1]} : vector<2x32xf32> to vector<2x8xf32>
    %965 = vector.extract_strided_slice %961 {offsets = [0, 24], sizes = [2, 8], strides = [1, 1]} : vector<2x32xf32> to vector<2x8xf32>
    %966 = arith.mulf %963, %948 : vector<2x8xf32>
    %967 = arith.mulf %962, %964 : vector<2x8xf32>
    %968 = arith.addf %966, %967 : vector<2x8xf32>
    %969 = math.tanh %968 : vector<2x8xf32>
    %970 = arith.mulf %965, %969 : vector<2x8xf32>
    %c0_151 = arith.constant 0 : index
    %c376 = arith.constant 376 : index
    %971 = vector.load %arg7[%c0_151, %c376] : memref<2x384xf32, #tpu.memory_space<vmem>>, vector<2x8xf32>
    tpu.vector_store %arg7[%c0_151, %c376], %970 {strides = array<i32>} : memref<2x384xf32, #tpu.memory_space<vmem>>, vector<2x8xf32>,
    %c0_152 = arith.constant 0 : index
    %c0_153 = arith.constant 0 : index
    %972 = vector.load %arg7[%c0_152, %c0_153] : memref<2x384xf32, #tpu.memory_space<vmem>>, vector<2x384xf32>
    %c0_154 = arith.constant 0 : index
    %c0_155 = arith.constant 0 : index
    %973 = vector.load %arg4[%c0_154, %c0_155] : memref<384x2xf32, #tpu.memory_space<vmem>>, vector<384x2xf32>
    %cst_156 = arith.constant dense<0.000000e+00> : vector<2x2xf32>
    %974 = tpu.matmul %972, %973, %cst_156 {dimension_numbers = #tpu.dot_dimension_numbers<[1], [0], [0], [1], [0, 0, 1, 1], [], []>} : vector<2x384xf32>, vector<384x2xf32>, vector<2x2xf32> -> vector<2x2xf32>
    %c0_157 = arith.constant 0 : index
    %c0_158 = arith.constant 0 : index
    %975 = vector.load %arg5[%c0_157, %c0_158] : memref<1x2xf32, #tpu.memory_space<vmem>>, vector<1x2xf32>
    %976 = vector.broadcast %975 : vector<1x2xf32> to vector<2x2xf32>
    %977 = arith.addf %974, %976 : vector<2x2xf32>
    %c0_159 = arith.constant 0 : index
    %c0_160 = arith.constant 0 : index
    %978 = vector.load %arg6[%c0_159, %c0_160] : memref<2x2xf32, #tpu.memory_space<vmem>>, vector<2x2xf32>
    tpu.vector_store %arg6[%c0_159, %c0_160], %977 {strides = array<i32>} : memref<2x2xf32, #tpu.memory_space<vmem>>, vector<2x2xf32>,
    return
  }
}

</mosaic_0001>

<bundles_post_ra>
// kernel: tpu_custom_call.1
= control target key start
LH: loop header
LB: loop body
LE: loop exit
PB: predicated region body
PF: predicated region fallthrough
CT: control target
= control target key end

     0   :  { %vm81_vm0 = vcmask 1044480   ;;  %vm44_vm1 = vcmask 39936   ;;  %s8370_s0 = inlined_call_operand.vmem [shape: f32[96,5], index: 0, kind: input, shape index: {}]   ;;  %s8371_s1 = inlined_call_operand.vmem [shape: f32[5,32], index: 1, kind: input, shape index: {}]   ;;  %s8372_s2 = inlined_call_operand.vmem [shape: f32[8,32], index: 2, kind: input, shape index: {}]   ;;  %s8373_s3 = inlined_call_operand.vmem [shape: f32[1,32], index: 3, kind: input, shape index: {}]   ;;  %s8374_s4 = inlined_call_operand.vmem [shape: f32[384,2], index: 4, kind: input, shape index: {}]   ;;  %s8375_s5 = inlined_call_operand.vmem [shape: f32[1,2], index: 5, kind: input, shape index: {}]   ;;  %s8376_s6 = inlined_call_operand.hbm [shape: f32[2,2], index: 6, kind: output, shape index: {}]  }
   0x1   :  { %v36_v0 = vld [vmem:[%s8371_s1] sm:$0x1f]  ;;  %v25_v2 = vld [vmem:[%s8370_s0 + $0x8] sm:$0xff] }
   0x2   :  { %v24_v1 = vld [vmem:[%s8370_s0] sm:$0xff]  ;;  %6361 = vmatprep.subr.msk.mxu0 %vm81_vm0, %v36_v0 }
   0x3   :  { %6363 = vmatprep.mubr.msk.f32.mxu0 %vm44_vm1, %v24_v1 }
   0x4   :  { %11 = vsyncpa [#allocation4], 0  ;;  %6362 = vmatpush3.msk.msra.mxu0 %vm81_vm0, %v36_v0  ;;  %v7151_v4 = vld [vmem:[%s8373_s3] ss:$0 sm:$0xff]  ;;  %v211_v10 = vlaneseq  ;;  %s7081_s28 = smov 112   ;;  %s7082_s29 = smov 8  }
   0x5   :  { %6364 = vmatmul.mubr.msk.f32.vlgmr.msra.gmra.mxu0 %vm44_vm1, %v25_v2  ;;  %v7170_v21 = vld [vmem:[%s8372_s2] sm:$0xff]  ;;  %v8378_v22 = vmov 0.0   ;;  %vm7084_vm5 = vmmov 0   ;;  %s7085_s8 = smov 16   ;;  %s7086_s9 = smov 104   ;;  %vm256_vm6 = vcmask 64512  }
   0x6   :  { %v212_v11 = vand.u32 127, %v211_v10  ;;  %6381 = vmatprep.subr.mxu1 %v8378_v22  ;;  %6383 = vmatprep.mubr.msk.f32.mxu1 %vm7084_vm5, %v8378_v22  ;;  %vm252_vm7 = vcmask 58368   ;;  %s7092_s16 = smov 48   ;;  %s7093_s17 = smov 56   ;;  %vm373_vm8 = vcmask 123968   ;;  %vm494_vm9 = vcmask 189568  }
   0x7   :  { %6382 = vmatpush3.msra.mxu1 %v7170_v21  ;;  %6411 = vmatprep.subr.mxu0 %v8378_v22  ;;  %s7094_s18 = smov 64   ;;  %s7095_s19 = smov 72   ;;  %vm614_vm10 = vcmask 255168   ;;  %vm731_vm11 = vcmask 320768   ;;  %vm851_vm12 = vcmask 386368   ;;  %vm972_vm13 = vcmask 451968  }
   0x8   :  { %vm213_vm2 = vcmp.ge.s32.totalorder %v212_v11, 16  ;;  %vm214_vm3 = vcmp.lt.s32.totalorder %v212_v11, 24  ;;  %6386 = vmatprep.subr.mxu1 %v8378_v22  ;;  %6412 = vmatpush3.msra.mxu0 %v7170_v21  ;;  %s7096_s20 = smov 80   ;;  %s7097_s21 = smov 88   ;;  %vm1094_vm14 = vcmask 517568   ;;  %vm1211_vm15 = vcmask 583168  }
   0x9   :  { %vm7159_vm4 = vmand %vm213_vm2, %vm214_vm3  ;;  %6421 = vmatprep.subr.mxu0 %v8378_v22  ;;  %s7098_s22 = smov 96   ;;  %vm1331_vm0 = vcmask 648768   ;;  %vm1574_vm2 = vcmask 779968   ;;  %vm1691_vm3 = vcmask 845568   ;;  %s7099_s14 = smov [#allocation3]  }
   0xa   :  { %s6084_s15 = sshll.u32 %s7099_s14, 4  ;;  %s6085_s15 = int_to_ptr.vmem [resolvable:$true] %s6084_s15 }
   0xb   :  { %p7064_p1 = scmp.lt.s32.totalorder %s6085_s15, %s6085_s15 }
  0xc5   :  { %v7146_v3 = vpop.f32.mrf.mxu0 }
  0xc7   :  { %v151_v5 = vpop.f32.mrf.mxu0 }
  0xc8   :  { %v7154_v6 = vadd.f32 %v7151_v4, %v151_v5 }
  0xca   :  { %v6106_v7 = vmul.f32 -1.442695, %v7154_v6 }
  0xcc   :  { %6671 = vpow2.f32 %v6106_v7 }
  0xcd   :  { %6673 = vtanh.f32 %v7154_v6 }
  0xd9   :  { %v6672_v8 = vpop.eup %6671 }
  0xda   :  { %v219_v9 = vadd.f32 1.0, %v6672_v8  ;;  %v6674_v13 = vpop.eup %6673 }
  0xdc   :  { %6675 = vrcp.f32 %v219_v9 }
  0xe9   :  { %v6676_v14 = vpop.eup %6675 }
  0xea   :  { %v223_v15 = vsel %vm7159_vm4, %v6674_v13, %v6676_v14 }
  0xeb   :  { %226 = vrot.lane.b32.xlu0 %v223_v15, %s7081_s28  ;;  %v224_v18 = vmul.f32 0.0, %v223_v15 }
 0x15d   :  { %v227_v16 = vpop.permute.xlu0 %226 }
 0x15e   :  { %v229_v17 = vmul.f32 %v227_v16, %v223_v15 }
 0x160   :  { %231 = vrot.lane.b32.xlu0 %v229_v17, %s7082_s29 }
 0x1d2   :  { %v232_v19 = vpop.permute.xlu0 %231 }
 0x1d3   :  { %v234_v20 = vadd.f32 %v232_v19, %v224_v18 }
 0x1d5   :  { %6677 = vtanh.f32 %v234_v20  ;;  %v342_v39 = vrot.slane %v234_v20, 6 }
 0x1e2   :  { %v6678_v23 = vpop.eup %6677 }
 0x1e3   :  { %237 = vrot.lane.b32.xlu1 %v6678_v23, %s7085_s8 }
 0x255   :  { %v238_v24 = vpop.permute.xlu1 %237 }
 0x256   :  { %v7181_v25 = vmul.f32 %v238_v24, %v223_v15 }
 0x258   :  { %254 = vrot.lane.b32.xlu1 %v7181_v25, %s7086_s9 }
 0x2ca   :  { %v255_v26 = vpop.permute.xlu1 %254 }
 0x2cb   :  { %6384 = vmatmul.mubr.msk.f32.vlgmr.msra.gmra.mxu1 %vm256_vm6, %v255_v26 }
 0x2cc   :  { %6387 = vmatpush3.msra.mxu1 %v7170_v21  ;;  %6388 = vmatprep.mubr.msk.f32.mxu1 %vm7084_vm5, %v8378_v22 }
 0x2cd   :  { %6391 = vmatprep.subr.mxu1 %v8378_v22 }
 0x38b   :  { %v325_v27 = vpop.f32.mrf.mxu1 }
 0x38c   :  { %v330_v28 = vrot.slane %v325_v27, 6 }
 0x38d   :  { %v6385_v29 = vpop.f32.mrf.mxu1 }
 0x38e   :  { %v332_v30 = vadd.f32 %v330_v28, %v7154_v6 }
 0x390   :  { %v6108_v31 = vmul.f32 -1.442695, %v332_v30 }
 0x392   :  { %6679 = vpow2.f32 %v6108_v31 }
 0x393   :  { %6681 = vtanh.f32 %v332_v30 }
 0x39f   :  { %v6680_v32 = vpop.eup %6679 }
 0x3a0   :  { %v336_v33 = vadd.f32 1.0, %v6680_v32  ;;  %v6682_v34 = vpop.eup %6681 }
 0x3a2   :  { %6683 = vrcp.f32 %v336_v33  ;;  %v7237_v33 = vadd.f32 %v7146_v3, %v7151_v4 }
 0x3af   :  { %v6684_v35 = vpop.eup %6683 }
 0x3b0   :  { %v340_v36 = vsel %vm7159_vm4, %v6682_v34, %v6684_v35 }
 0x3b1   :  { %346 = vrot.lane.b32.xlu0 %v340_v36, %s7081_s28  ;;  %v344_v40 = vmul.f32 %v342_v39, %v340_v36 }
 0x423   :  { %v347_v37 = vpop.permute.xlu0 %346 }
 0x424   :  { %v349_v38 = vmul.f32 %v347_v37, %v340_v36 }
 0x426   :  { %351 = vrot.lane.b32.xlu1 %v349_v38, %s7082_s29 }
 0x498   :  { %v352_v41 = vpop.permute.xlu1 %351 }
 0x499   :  { %v354_v42 = vadd.f32 %v352_v41, %v344_v40 }
 0x49b   :  { %6685 = vtanh.f32 %v354_v42  ;;  %v463_v60 = vrot.slane %v354_v42, 6 }
 0x4a8   :  { %v6686_v43 = vpop.eup %6685 }
 0x4a9   :  { %357 = vrot.lane.b32.xlu0 %v6686_v43, %s7085_s8 }
 0x51b   :  { %v358_v44 = vpop.permute.xlu0 %357 }
 0x51c   :  { %v7196_v45 = vmul.f32 %v358_v44, %v340_v36 }
 0x51e   :  { %v375_v46 = vrot.slane %v7196_v45, 2 }
 0x520   :  { %376 = vrot.lane.b32.xlu1 %v375_v46, %s7086_s9 }
 0x592   :  { %v377_v47 = vpop.permute.xlu1 %376 }
 0x593   :  { %6389 = vmatmul.mubr.msk.f32.vlgmr.msra.gmra.mxu1 %vm256_vm6, %v377_v47 }
 0x594   :  { %6392 = vmatpush3.msra.mxu1 %v7170_v21  ;;  %6393 = vmatprep.mubr.msk.f32.mxu1 %vm7084_vm5, %v8378_v22 }
 0x595   :  { %6396 = vmatprep.subr.mxu1 %v8378_v22 }
 0x653   :  { %v446_v48 = vpop.f32.mrf.mxu1 }
 0x654   :  { %v451_v49 = vrot.slane %v446_v48, 4 }
 0x655   :  { %v6390_v50 = vpop.f32.mrf.mxu1 }
 0x656   :  { %v453_v51 = vadd.f32 %v451_v49, %v7154_v6 }
 0x658   :  { %v6110_v52 = vmul.f32 -1.442695, %v453_v51 }
 0x65a   :  { %6687 = vpow2.f32 %v6110_v52 }
 0x65b   :  { %6689 = vtanh.f32 %v453_v51 }
 0x667   :  { %v6688_v53 = vpop.eup %6687 }
 0x668   :  { %v457_v54 = vadd.f32 1.0, %v6688_v53  ;;  %v6690_v55 = vpop.eup %6689 }
 0x66a   :  { %6691 = vrcp.f32 %v457_v54 }
 0x677   :  { %v6692_v56 = vpop.eup %6691 }
 0x678   :  { %v461_v57 = vsel %vm7159_vm4, %v6690_v55, %v6692_v56 }
 0x679   :  { %467 = vrot.lane.b32.xlu0 %v461_v57, %s7081_s28  ;;  %v465_v61 = vmul.f32 %v463_v60, %v461_v57 }
 0x6eb   :  { %v468_v58 = vpop.permute.xlu0 %467 }
 0x6ec   :  { %v470_v59 = vmul.f32 %v468_v58, %v461_v57 }
 0x6ee   :  { %472 = vrot.lane.b32.xlu1 %v470_v59, %s7082_s29 }
 0x760   :  { %v473_v62 = vpop.permute.xlu1 %472 }
 0x761   :  { %v475_v63 = vadd.f32 %v473_v62, %v465_v61 }
 0x763   :  { %6693 = vtanh.f32 %v475_v63  ;;  %v584_v24 = vrot.slane %v475_v63, 6 }
 0x770   :  { %v6694_v0 = vpop.eup %6693 }
 0x771   :  { %478 = vrot.lane.b32.xlu0 %v6694_v0, %s7085_s8 }
 0x7e3   :  { %v479_v1 = vpop.permute.xlu0 %478 }
 0x7e4   :  { %v7211_v2 = vmul.f32 %v479_v1, %v461_v57 }
 0x7e6   :  { %v496_v5 = vrot.slane %v7211_v2, 4 }
 0x7e8   :  { %497 = vrot.lane.b32.xlu1 %v496_v5, %s7086_s9 }
 0x85a   :  { %v498_v7 = vpop.permute.xlu1 %497 }
 0x85b   :  { %6394 = vmatmul.mubr.msk.f32.vlgmr.msra.gmra.mxu1 %vm256_vm6, %v498_v7 }
 0x85c   :  { %6397 = vmatpush3.msra.mxu1 %v7170_v21  ;;  %6398 = vmatprep.mubr.msk.f32.mxu1 %vm7084_vm5, %v8378_v22 }
 0x85d   :  { %6401 = vmatprep.subr.mxu1 %v8378_v22 }
 0x91b   :  { %v567_v8 = vpop.f32.mrf.mxu1 }
 0x91c   :  { %v572_v9 = vrot.slane %v567_v8, 2 }
 0x91d   :  { %v6395_v11 = vpop.f32.mrf.mxu1 }
 0x91e   :  { %v574_v13 = vadd.f32 %v572_v9, %v7154_v6 }
 0x920   :  { %v6112_v14 = vmul.f32 -1.442695, %v574_v13 }
 0x922   :  { %6695 = vpow2.f32 %v6112_v14 }
 0x923   :  { %6697 = vtanh.f32 %v574_v13 }
 0x92f   :  { %v6696_v15 = vpop.eup %6695 }
 0x930   :  { %v578_v16 = vadd.f32 1.0, %v6696_v15  ;;  %v6698_v17 = vpop.eup %6697 }
 0x932   :  { %6699 = vrcp.f32 %v578_v16 }
 0x93f   :  { %v6700_v18 = vpop.eup %6699 }
 0x940   :  { %v582_v19 = vsel %vm7159_vm4, %v6698_v17, %v6700_v18 }
 0x941   :  { %588 = vrot.lane.b32.xlu0 %v582_v19, %s7081_s28  ;;  %v586_v26 = vmul.f32 %v584_v24, %v582_v19 }
 0x9b3   :  { %v589_v20 = vpop.permute.xlu0 %588 }
 0x9b4   :  { %v591_v23 = vmul.f32 %v589_v20, %v582_v19 }
 0x9b6   :  { %593 = vrot.lane.b32.xlu1 %v591_v23, %s7082_s29 }
 0xa28   :  { %v594_v6 = vpop.permute.xlu1 %593 }
 0xa29   :  { %v596_v27 = vadd.f32 %v594_v6, %v586_v26 }
 0xa2b   :  { %6701 = vtanh.f32 %v596_v27  ;;  %v701_v44 = vrot.slane %v596_v27, 6 }
 0xa38   :  { %v6702_v28 = vpop.eup %6701 }
 0xa39   :  { %599 = vrot.lane.b32.xlu0 %v6702_v28, %s7085_s8 }
 0xaab   :  { %v600_v29 = vpop.permute.xlu0 %599 }
 0xaac   :  { %v7226_v30 = vmul.f32 %v600_v29, %v582_v19 }
 0xaae   :  { %v616_v31 = vrot.slane %v7226_v30, 6 }
 0xab0   :  { %617 = vrot.lane.b32.xlu1 %v616_v31, %s7086_s9 }
 0xb22   :  { %v618_v32 = vpop.permute.xlu1 %617 }
 0xb23   :  { %6399 = vmatmul.mubr.msk.f32.vlgmr.msra.gmra.mxu1 %vm256_vm6, %v618_v32 }
 0xb24   :  { %6402 = vmatpush3.msra.mxu1 %v7170_v21  ;;  %6403 = vmatprep.mubr.msk.f32.mxu1 %vm7084_vm5, %v8378_v22 }
 0xb25   :  { %6406 = vmatprep.subr.mxu1 %v8378_v22 }
 0xbe3   :  { %v687_v34 = vpop.f32.mrf.mxu1 }
 0xbe4   :  { %v691_v35 = vadd.f32 %v687_v34, %v7237_v33 }
 0xbe5   :  { %v6400_v36 = vpop.f32.mrf.mxu1 }
 0xbe6   :  { %v6114_v37 = vmul.f32 -1.442695, %v691_v35  ;;  %v26_v36 = vld [vmem:[%s8370_s0 + $0x10] sm:$0xff] }
 0xbe7   :  { %6366 = vmatprep.mubr.msk.f32.mxu0 %vm44_vm1, %v26_v36 }
 0xbe8   :  { %6703 = vpow2.f32 %v6114_v37  ;;  %v27_v37 = vld [vmem:[%s8370_s0 + $0x18] sm:$0xff] }
 0xbe9   :  { %6705 = vtanh.f32 %v691_v35  ;;  %6367 = vmatmul.mubr.msk.f32.gmra.mxu0 %vm44_vm1, %v27_v37 }
 0xbf5   :  { %v6704_v38 = vpop.eup %6703 }
 0xbf6   :  { %v695_v39 = vadd.f32 1.0, %v6704_v38  ;;  %v6706_v40 = vpop.eup %6705  ;;  %v28_v38 = vld [vmem:[%s8370_s0 + $0x20] sm:$0xff] }
 0xbf7   :  { %6369 = vmatprep.mubr.msk.f32.mxu0 %vm44_vm1, %v28_v38 }
 0xbf8   :  { %6707 = vrcp.f32 %v695_v39  ;;  %v29_v39 = vld [vmem:[%s8370_s0 + $0x28] sm:$0xff] }
 0xbf9   :  { %6370 = vmatmul.mubr.msk.f32.gmra.mxu0 %vm44_vm1, %v29_v39 }
 0xc05   :  { %v6708_v41 = vpop.eup %6707 }
 0xc06   :  { %v699_v42 = vsel %vm7159_vm4, %v6706_v40, %v6708_v41  ;;  %v30_v40 = vld [vmem:[%s8370_s0 + $0x30] sm:$0xff]  ;;  %v31_v41 = vld [vmem:[%s8370_s0 + $0x38] sm:$0xff] }
 0xc07   :  { %705 = vrot.lane.b32.xlu0 %v699_v42, %s7081_s28  ;;  %v703_v46 = vmul.f32 %v701_v44, %v699_v42  ;;  %6372 = vmatprep.mubr.msk.f32.mxu0 %vm44_vm1, %v30_v40  ;;  %v34_v44 = vld [vmem:[%s8370_s0 + $0x50] sm:$0xff] }
 0xc08   :  { %6373 = vmatmul.mubr.msk.f32.gmra.mxu0 %vm44_vm1, %v31_v41 }
 0xc79   :  { %v706_v43 = vpop.permute.xlu0 %705 }
 0xc7a   :  { %v708_v3 = vmul.f32 %v706_v43, %v699_v42  ;;  %v32_v43 = vld [vmem:[%s8370_s0 + $0x40] sm:$0xff] }
 0xc7b   :  { %6375 = vmatprep.mubr.msk.f32.mxu0 %vm44_vm1, %v32_v43 }
 0xc7c   :  { %710 = vrot.lane.b32.xlu1 %v708_v3, %s7082_s29  ;;  %v33_v3 = vld [vmem:[%s8370_s0 + $0x48] sm:$0xff] }
 0xc7d   :  { %6376 = vmatmul.mubr.msk.f32.gmra.mxu0 %vm44_vm1, %v33_v3 }
 0xc7e   :  { %6378 = vmatprep.mubr.msk.f32.mxu0 %vm44_vm1, %v34_v44 }
 0xcee   :  { %v711_v47 = vpop.permute.xlu1 %710 }
 0xcef   :  { %v713_v48 = vadd.f32 %v711_v47, %v703_v46  ;;  %v35_v46 = vld [vmem:[%s8370_s0 + $0x58] sm:$0xff] }
 0xcf0   :  { %6379 = vmatmul.mubr.msk.f32.gmra.mxu0 %vm44_vm1, %v35_v46  ;;  %vm1452_vm1 = vcmask 714368  }
 0xcf1   :  { %6709 = vtanh.f32 %v713_v48  ;;  %v820_v1 = vrot.slane %v713_v48, 6  ;;  %6413 = vmatprep.mubr.msk.f32.mxu0 %vm7084_vm5, %v8378_v22 }
 0xcfe   :  { %v6710_v49 = vpop.eup %6709 }
 0xcff   :  { %716 = vrot.lane.b32.xlu0 %v6710_v49, %s7085_s8 }
 0xd71   :  { %v717_v50 = vpop.permute.xlu0 %716 }
 0xd72   :  { %v7245_v51 = vmul.f32 %v717_v50, %v699_v42 }
 0xd74   :  { %733 = vrot.lane.b32.xlu1 %v7245_v51, %s7086_s9 }
 0xde6   :  { %v734_v52 = vpop.permute.xlu1 %733 }
 0xde7   :  { %6404 = vmatmul.mubr.msk.f32.vlgmr.msra.gmra.mxu1 %vm256_vm6, %v734_v52  ;;  %v7329_v52 = vpop.f32.mrf.mxu0 }
 0xde8   :  { %6407 = vmatpush3.msra.mxu1 %v7170_v21  ;;  %6408 = vmatprep.mubr.msk.f32.mxu1 %vm7084_vm5, %v8378_v22 }
 0xde9   :  { %6416 = vmatprep.subr.mxu1 %v8378_v22 }
 0xea7   :  { %v803_v53 = vpop.f32.mrf.mxu1 }
 0xea8   :  { %v808_v54 = vrot.slane %v803_v53, 6  ;;  %v161_v53 = vpop.f32.mrf.mxu0 }
 0xea9   :  { %v6405_v55 = vpop.f32.mrf.mxu1 }
 0xeaa   :  { %v810_v56 = vadd.f32 %v808_v54, %v7237_v33  ;;  %v7331_v54 = vpop.f32.mrf.mxu0 }
 0xeac   :  { %v6116_v57 = vmul.f32 -1.442695, %v810_v56  ;;  %v7333_v55 = vpop.f32.mrf.mxu0 }
 0xeae   :  { %6711 = vpow2.f32 %v6116_v57 }
 0xeaf   :  { %6713 = vtanh.f32 %v810_v56  ;;  %v7335_v56 = vpop.f32.mrf.mxu0 }
 0xeb1   :  { %v7337_v57 = vpop.f32.mrf.mxu0 }
 0xebb   :  { %v6712_v58 = vpop.eup %6711 }
 0xebc   :  { %v814_v59 = vadd.f32 1.0, %v6712_v58  ;;  %v6714_v60 = vpop.eup %6713  ;;  %v7339_v58 = vpop.f32.mrf.mxu0 }
 0xebe   :  { %6715 = vrcp.f32 %v814_v59  ;;  %v7341_v59 = vpop.f32.mrf.mxu0 }
 0xecb   :  { %v6716_v61 = vpop.eup %6715 }
 0xecc   :  { %v818_v62 = vsel %vm7159_vm4, %v6714_v60, %v6716_v61  ;;  %v7343_v60 = vpop.f32.mrf.mxu0 }
 0xecd   :  { %824 = vrot.lane.b32.xlu0 %v818_v62, %s7081_s28  ;;  %v822_v5 = vmul.f32 %v820_v1, %v818_v62 }
 0xece   :  { %v7345_v61 = vpop.f32.mrf.mxu0 }
 0xf3f   :  { %v825_v63 = vpop.permute.xlu0 %824 }
 0xf40   :  { %v827_v0 = vmul.f32 %v825_v63, %v818_v62 }
 0xf42   :  { %829 = vrot.lane.b32.xlu1 %v827_v0, %s7082_s29 }
 0xfb4   :  { %v830_v7 = vpop.permute.xlu1 %829 }
 0xfb5   :  { %v832_v8 = vadd.f32 %v830_v7, %v822_v5 }
 0xfb7   :  { %6717 = vtanh.f32 %v832_v8  ;;  %v941_v31 = vrot.slane %v832_v8, 6 }
 0xfc4   :  { %v6718_v9 = vpop.eup %6717 }
 0xfc5   :  { %835 = vrot.lane.b32.xlu0 %v6718_v9, %s7085_s8 }
0x1037   :  { %v836_v11 = vpop.permute.xlu0 %835 }
0x1038   :  { %v7260_v13 = vmul.f32 %v836_v11, %v818_v62 }
0x103a   :  { %v853_v14 = vrot.slane %v7260_v13, 2 }
0x103c   :  { %854 = vrot.lane.b32.xlu1 %v853_v14, %s7086_s9 }
0x10ae   :  { %v855_v15 = vpop.permute.xlu1 %854 }
0x10af   :  { %6409 = vmatmul.mubr.msk.f32.vlgmr.msra.gmra.mxu1 %vm256_vm6, %v855_v15 }
0x10b0   :  { %6417 = vmatpush3.msra.mxu1 %v7170_v21  ;;  %6418 = vmatprep.mubr.msk.f32.mxu1 %vm7084_vm5, %v8378_v22 }
0x10b1   :  { %6426 = vmatprep.subr.mxu1 %v8378_v22 }
0x116f   :  { %v924_v16 = vpop.f32.mrf.mxu1 }
0x1170   :  { %v929_v17 = vrot.slane %v924_v16, 4 }
0x1171   :  { %v6410_v18 = vpop.f32.mrf.mxu1 }
0x1172   :  { %v931_v19 = vadd.f32 %v929_v17, %v7237_v33 }
0x1174   :  { %v6118_v20 = vmul.f32 -1.442695, %v931_v19 }
0x1176   :  { %6719 = vpow2.f32 %v6118_v20 }
0x1177   :  { %6721 = vtanh.f32 %v931_v19 }
0x1183   :  { %v6720_v23 = vpop.eup %6719 }
0x1184   :  { %v935_v24 = vadd.f32 1.0, %v6720_v23  ;;  %v6722_v26 = vpop.eup %6721 }
0x1186   :  { %6723 = vrcp.f32 %v935_v24 }
0x1193   :  { %v6724_v6 = vpop.eup %6723 }
0x1194   :  { %v939_v27 = vsel %vm7159_vm4, %v6722_v26, %v6724_v6 }
0x1195   :  { %945 = vrot.lane.b32.xlu0 %v939_v27, %s7081_s28  ;;  %v943_v32 = vmul.f32 %v941_v31, %v939_v27 }
0x1207   :  { %v946_v28 = vpop.permute.xlu0 %945 }
0x1208   :  { %v948_v29 = vmul.f32 %v946_v28, %v939_v27 }
0x120a   :  { %950 = vrot.lane.b32.xlu1 %v948_v29, %s7082_s29 }
0x127c   :  { %v951_v34 = vpop.permute.xlu1 %950 }
0x127d   :  { %v7274_v35 = vadd.f32 %v951_v34, %v943_v32 }
0x127f   :  { %6725 = vtanh.f32 %v7274_v35  ;;  %v1062_v17 = vrot.slane %v7274_v35, 6 }
0x128c   :  { %v6726_v42 = vpop.eup %6725 }
0x128d   :  { %956 = vrot.lane.b32.xlu0 %v6726_v42, %s7085_s8 }
0x12ff   :  { %v957_v47 = vpop.permute.xlu0 %956 }
0x1300   :  { %v7320_v48 = vmul.f32 %v957_v47, %v939_v27  ;;  %v7364_v27 = vadd.f32 %v7151_v4, %v161_v53 }
0x1302   :  { %v974_v49 = vrot.slane %v7320_v48, 4 }
0x1304   :  { %975 = vrot.lane.b32.xlu1 %v974_v49, %s7086_s9 }
0x1376   :  { %v976_v50 = vpop.permute.xlu1 %975 }
0x1377   :  { %6414 = vmatmul.mubr.msk.f32.vlgmr.msra.gmra.mxu0 %vm256_vm6, %v976_v50 }
0x1378   :  { %6422 = vmatpush3.msra.mxu0 %v7170_v21  ;;  %6423 = vmatprep.mubr.msk.f32.mxu0 %vm7084_vm5, %v8378_v22 }
0x1379   :  { %6431 = vmatprep.subr.mxu0 %v8378_v22 }
0x1437   :  { %v1045_v62 = vpop.f32.mrf.mxu0 }
0x1438   :  { %v1050_v63 = vrot.slane %v1045_v62, 2 }
0x1439   :  { %v6415_v0 = vpop.f32.mrf.mxu0 }
0x143a   :  { %v1052_v1 = vadd.f32 %v1050_v63, %v7237_v33 }
0x143c   :  { %v6120_v5 = vmul.f32 -1.442695, %v1052_v1 }
0x143e   :  { %6727 = vpow2.f32 %v6120_v5 }
0x143f   :  { %6729 = vtanh.f32 %v1052_v1 }
0x144b   :  { %v6728_v7 = vpop.eup %6727 }
0x144c   :  { %v1056_v8 = vadd.f32 1.0, %v6728_v7  ;;  %v6730_v9 = vpop.eup %6729 }
0x144e   :  { %6731 = vrcp.f32 %v1056_v8 }
0x145b   :  { %v6732_v11 = vpop.eup %6731 }
0x145c   :  { %v1060_v14 = vsel %vm7159_vm4, %v6730_v9, %v6732_v11 }
0x145d   :  { %1066 = vrot.lane.b32.xlu0 %v1060_v14, %s7081_s28  ;;  %v1064_v33 = vmul.f32 %v1062_v17, %v1060_v14 }
0x14cf   :  { %v1067_v15 = vpop.permute.xlu0 %1066 }
0x14d0   :  { %v1069_v16 = vmul.f32 %v1067_v15, %v1060_v14 }
0x14d2   :  { %1071 = vrot.lane.b32.xlu1 %v1069_v16, %s7082_s29 }
0x1544   :  { %v1072_v18 = vpop.permute.xlu1 %1071 }
0x1545   :  { %v1074_v19 = vadd.f32 %v1072_v18, %v1064_v33 }
0x1547   :  { %6733 = vtanh.f32 %v1074_v19  ;;  %v1181_v41 = vrot.slane %v1074_v19, 6 }
0x1554   :  { %v6734_v20 = vpop.eup %6733 }
0x1555   :  { %1077 = vrot.lane.b32.xlu0 %v6734_v20, %s7085_s8 }
0x15c7   :  { %v1078_v23 = vpop.permute.xlu0 %1077 }
0x15c8   :  { %v7354_v24 = vmul.f32 %v1078_v23, %v1060_v14 }
0x15ca   :  { %v1096_v26 = vrot.slane %v7354_v24, 6 }
0x15cc   :  { %1097 = vrot.lane.b32.xlu1 %v1096_v26, %s7086_s9 }
0x163e   :  { %v1098_v6 = vpop.permute.xlu1 %1097 }
0x163f   :  { %6419 = vmatmul.mubr.msk.f32.vlgmr.msra.gmra.mxu1 %vm256_vm6, %v1098_v6 }
0x1640   :  { %6427 = vmatpush3.msra.mxu1 %v7170_v21  ;;  %6428 = vmatprep.mubr.msk.f32.mxu1 %vm7084_vm5, %v8378_v22 }
0x1641   :  { %6436 = vmatprep.subr.mxu1 %v8378_v22 }
0x16ff   :  { %v1167_v28 = vpop.f32.mrf.mxu1 }
0x1700   :  { %v1171_v29 = vadd.f32 %v1167_v28, %v7364_v27 }
0x1701   :  { %v6420_v31 = vpop.f32.mrf.mxu1 }
0x1702   :  { %v6122_v32 = vmul.f32 -1.442695, %v1171_v29 }
0x1704   :  { %6735 = vpow2.f32 %v6122_v32 }
0x1705   :  { %6737 = vtanh.f32 %v1171_v29 }
0x1711   :  { %v6736_v34 = vpop.eup %6735 }
0x1712   :  { %v1175_v35 = vadd.f32 1.0, %v6736_v34  ;;  %v6738_v36 = vpop.eup %6737 }
0x1714   :  { %6739 = vrcp.f32 %v1175_v35 }
0x1721   :  { %v6740_v37 = vpop.eup %6739 }
0x1722   :  { %v1179_v38 = vsel %vm7159_vm4, %v6738_v36, %v6740_v37 }
0x1723   :  { %1185 = vrot.lane.b32.xlu0 %v1179_v38, %s7081_s28  ;;  %v1183_v42 = vmul.f32 %v1181_v41, %v1179_v38 }
0x1795   :  { %v1186_v39 = vpop.permute.xlu0 %1185 }
0x1796   :  { %v1188_v40 = vmul.f32 %v1186_v39, %v1179_v38 }
0x1798   :  { %1190 = vrot.lane.b32.xlu1 %v1188_v40, %s7082_s29 }
0x180a   :  { %v1191_v43 = vpop.permute.xlu1 %1190 }
0x180b   :  { %v1193_v3 = vadd.f32 %v1191_v43, %v1183_v42 }
0x180d   :  { %6741 = vtanh.f32 %v1193_v3  ;;  %v1300_v15 = vrot.slane %v1193_v3, 6 }
0x181a   :  { %v6742_v44 = vpop.eup %6741 }
0x181b   :  { %1196 = vrot.lane.b32.xlu0 %v6742_v44, %s7085_s8 }
0x188d   :  { %v1197_v46 = vpop.permute.xlu0 %1196 }
0x188e   :  { %v7372_v47 = vmul.f32 %v1197_v46, %v1179_v38 }
0x1890   :  { %1213 = vrot.lane.b32.xlu1 %v7372_v47, %s7086_s9 }
0x1902   :  { %v1214_v49 = vpop.permute.xlu1 %1213 }
0x1903   :  { %6424 = vmatmul.mubr.msk.f32.vlgmr.msra.gmra.mxu0 %vm256_vm6, %v1214_v49 }
0x1904   :  { %6432 = vmatpush3.msra.mxu0 %v7170_v21  ;;  %6433 = vmatprep.mubr.msk.f32.mxu0 %vm7084_vm5, %v8378_v22 }
0x1905   :  { %6441 = vmatprep.subr.mxu0 %v8378_v22 }
0x19c3   :  { %v1283_v50 = vpop.f32.mrf.mxu0 }
0x19c4   :  { %v1288_v53 = vrot.slane %v1283_v50, 6 }
0x19c5   :  { %v6425_v62 = vpop.f32.mrf.mxu0 }
0x19c6   :  { %v1290_v63 = vadd.f32 %v1288_v53, %v7364_v27 }
0x19c8   :  { %v6124_v0 = vmul.f32 -1.442695, %v1290_v63 }
0x19ca   :  { %6743 = vpow2.f32 %v6124_v0 }
0x19cb   :  { %6745 = vtanh.f32 %v1290_v63 }
0x19d7   :  { %v6744_v1 = vpop.eup %6743 }
0x19d8   :  { %v1294_v5 = vadd.f32 1.0, %v6744_v1  ;;  %v6746_v7 = vpop.eup %6745 }
0x19da   :  { %6747 = vrcp.f32 %v1294_v5 }
0x19e7   :  { %v6748_v8 = vpop.eup %6747 }
0x19e8   :  { %v1298_v9 = vsel %vm7159_vm4, %v6746_v7, %v6748_v8 }
0x19e9   :  { %1304 = vrot.lane.b32.xlu0 %v1298_v9, %s7081_s28  ;;  %v1302_v16 = vmul.f32 %v1300_v15, %v1298_v9 }
0x1a5b   :  { %v1305_v11 = vpop.permute.xlu0 %1304 }
0x1a5c   :  { %v1307_v14 = vmul.f32 %v1305_v11, %v1298_v9 }
0x1a5e   :  { %1309 = vrot.lane.b32.xlu1 %v1307_v14, %s7082_s29 }
0x1ad0   :  { %v1310_v17 = vpop.permute.xlu1 %1309 }
0x1ad1   :  { %v1312_v33 = vadd.f32 %v1310_v17, %v1302_v16 }
0x1ad3   :  { %6749 = vtanh.f32 %v1312_v33  ;;  %v1421_v41 = vrot.slane %v1312_v33, 6 }
0x1ae0   :  { %v6750_v18 = vpop.eup %6749 }
0x1ae1   :  { %1315 = vrot.lane.b32.xlu0 %v6750_v18, %s7085_s8 }
0x1b53   :  { %v1316_v19 = vpop.permute.xlu0 %1315 }
0x1b54   :  { %v7387_v20 = vmul.f32 %v1316_v19, %v1298_v9 }
0x1b56   :  { %v1333_v23 = vrot.slane %v7387_v20, 2 }
0x1b58   :  { %1334 = vrot.lane.b32.xlu1 %v1333_v23, %s7086_s9 }
0x1bca   :  { %v1335_v26 = vpop.permute.xlu1 %1334 }
0x1bcb   :  { %6429 = vmatmul.mubr.msk.f32.vlgmr.msra.gmra.mxu1 %vm256_vm6, %v1335_v26 }
0x1bcc   :  { %6437 = vmatpush3.msra.mxu1 %v7170_v21  ;;  %6438 = vmatprep.mubr.msk.f32.mxu1 %vm7084_vm5, %v8378_v22 }
0x1bcd   :  { %6446 = vmatprep.subr.mxu1 %v8378_v22 }
0x1c8b   :  { %v1404_v6 = vpop.f32.mrf.mxu1 }
0x1c8c   :  { %v1409_v28 = vrot.slane %v1404_v6, 4 }
0x1c8d   :  { %v6430_v29 = vpop.f32.mrf.mxu1 }
0x1c8e   :  { %v1411_v31 = vadd.f32 %v1409_v28, %v7364_v27  ;;  %v7428_v29 = vadd.f32 %v7329_v52, %v7151_v4 }
0x1c90   :  { %v6126_v32 = vmul.f32 -1.442695, %v1411_v31 }
0x1c92   :  { %6751 = vpow2.f32 %v6126_v32 }
0x1c93   :  { %6753 = vtanh.f32 %v1411_v31 }
0x1c9f   :  { %v6752_v34 = vpop.eup %6751 }
0x1ca0   :  { %v1415_v35 = vadd.f32 1.0, %v6752_v34  ;;  %v6754_v36 = vpop.eup %6753 }
0x1ca2   :  { %6755 = vrcp.f32 %v1415_v35 }
0x1caf   :  { %v6756_v37 = vpop.eup %6755 }
0x1cb0   :  { %v1419_v38 = vsel %vm7159_vm4, %v6754_v36, %v6756_v37 }
0x1cb1   :  { %1425 = vrot.lane.b32.xlu0 %v1419_v38, %s7081_s28  ;;  %v1423_v42 = vmul.f32 %v1421_v41, %v1419_v38 }
0x1d23   :  { %v1426_v39 = vpop.permute.xlu0 %1425 }
0x1d24   :  { %v1428_v40 = vmul.f32 %v1426_v39, %v1419_v38 }
0x1d26   :  { %1430 = vrot.lane.b32.xlu1 %v1428_v40, %s7082_s29 }
0x1d98   :  { %v1431_v43 = vpop.permute.xlu1 %1430 }
0x1d99   :  { %v1433_v3 = vadd.f32 %v1431_v43, %v1423_v42 }
0x1d9b   :  { %6757 = vtanh.f32 %v1433_v3  ;;  %v1542_v17 = vrot.slane %v1433_v3, 6 }
0x1da8   :  { %v6758_v44 = vpop.eup %6757 }
0x1da9   :  { %1436 = vrot.lane.b32.xlu0 %v6758_v44, %s7085_s8 }
0x1e1b   :  { %v1437_v46 = vpop.permute.xlu0 %1436 }
0x1e1c   :  { %v7402_v49 = vmul.f32 %v1437_v46, %v1419_v38 }
0x1e1e   :  { %v1454_v50 = vrot.slane %v7402_v49, 4 }
0x1e20   :  { %1455 = vrot.lane.b32.xlu1 %v1454_v50, %s7086_s9 }
0x1e92   :  { %v1456_v53 = vpop.permute.xlu1 %1455 }
0x1e93   :  { %6434 = vmatmul.mubr.msk.f32.vlgmr.msra.gmra.mxu0 %vm256_vm6, %v1456_v53 }
0x1e94   :  { %6442 = vmatpush3.msra.mxu0 %v7170_v21  ;;  %6443 = vmatprep.mubr.msk.f32.mxu0 %vm7084_vm5, %v8378_v22 }
0x1e95   :  { %6451 = vmatprep.subr.mxu0 %v8378_v22 }
0x1f53   :  { %v1525_v62 = vpop.f32.mrf.mxu0 }
0x1f54   :  { %v1530_v63 = vrot.slane %v1525_v62, 2 }
0x1f55   :  { %v6435_v0 = vpop.f32.mrf.mxu0 }
0x1f56   :  { %v1532_v1 = vadd.f32 %v1530_v63, %v7364_v27 }
0x1f58   :  { %v6128_v5 = vmul.f32 -1.442695, %v1532_v1 }
0x1f5a   :  { %6759 = vpow2.f32 %v6128_v5 }
0x1f5b   :  { %6761 = vtanh.f32 %v1532_v1 }
0x1f67   :  { %v6760_v7 = vpop.eup %6759 }
0x1f68   :  { %v1536_v8 = vadd.f32 1.0, %v6760_v7  ;;  %v6762_v9 = vpop.eup %6761 }
0x1f6a   :  { %6763 = vrcp.f32 %v1536_v8 }
0x1f77   :  { %v6764_v11 = vpop.eup %6763 }
0x1f78   :  { %v1540_v14 = vsel %vm7159_vm4, %v6762_v9, %v6764_v11 }
0x1f79   :  { %1546 = vrot.lane.b32.xlu0 %v1540_v14, %s7081_s28  ;;  %v1544_v33 = vmul.f32 %v1542_v17, %v1540_v14 }
0x1feb   :  { %v1547_v15 = vpop.permute.xlu0 %1546 }
0x1fec   :  { %v1549_v16 = vmul.f32 %v1547_v15, %v1540_v14 }
0x1fee   :  { %1551 = vrot.lane.b32.xlu1 %v1549_v16, %s7082_s29 }
0x2060   :  { %v1552_v27 = vpop.permute.xlu1 %1551 }
0x2061   :  { %v1554_v18 = vadd.f32 %v1552_v27, %v1544_v33 }
0x2063   :  { %6765 = vtanh.f32 %v1554_v18  ;;  %v1661_v52 = vrot.slane %v1554_v18, 6 }
0x2070   :  { %v6766_v19 = vpop.eup %6765 }
0x2071   :  { %1557 = vrot.lane.b32.xlu0 %v6766_v19, %s7085_s8 }
0x20e3   :  { %v1558_v23 = vpop.permute.xlu0 %1557 }
0x20e4   :  { %v7417_v26 = vmul.f32 %v1558_v23, %v1540_v14 }
0x20e6   :  { %v1576_v6 = vrot.slane %v7417_v26, 6 }
0x20e8   :  { %1577 = vrot.lane.b32.xlu1 %v1576_v6, %s7086_s9 }
0x215a   :  { %v1578_v28 = vpop.permute.xlu1 %1577 }
0x215b   :  { %6439 = vmatmul.mubr.msk.f32.vlgmr.msra.gmra.mxu1 %vm256_vm6, %v1578_v28 }
0x215c   :  { %6447 = vmatpush3.msra.mxu1 %v7170_v21  ;;  %6448 = vmatprep.mubr.msk.f32.mxu1 %vm7084_vm5, %v8378_v22 }
0x215d   :  { %6456 = vmatprep.subr.mxu1 %v8378_v22 }
0x221b   :  { %v1647_v31 = vpop.f32.mrf.mxu1 }
0x221c   :  { %v1651_v32 = vadd.f32 %v1647_v31, %v7428_v29 }
0x221d   :  { %v6440_v34 = vpop.f32.mrf.mxu1 }
0x221e   :  { %v6130_v35 = vmul.f32 -1.442695, %v1651_v32 }
0x2220   :  { %6767 = vpow2.f32 %v6130_v35 }
0x2221   :  { %6769 = vtanh.f32 %v1651_v32 }
0x222d   :  { %v6768_v36 = vpop.eup %6767 }
0x222e   :  { %v1655_v37 = vadd.f32 1.0, %v6768_v36  ;;  %v6770_v38 = vpop.eup %6769 }
0x2230   :  { %6771 = vrcp.f32 %v1655_v37 }
0x223d   :  { %v6772_v39 = vpop.eup %6771 }
0x223e   :  { %v1659_v40 = vsel %vm7159_vm4, %v6770_v38, %v6772_v39 }
0x223f   :  { %1665 = vrot.lane.b32.xlu0 %v1659_v40, %s7081_s28  ;;  %v1663_v42 = vmul.f32 %v1661_v52, %v1659_v40 }
0x22b1   :  { %v1666_v41 = vpop.permute.xlu0 %1665 }
0x22b2   :  { %v1668_v4 = vmul.f32 %v1666_v41, %v1659_v40 }
0x22b4   :  { %1670 = vrot.lane.b32.xlu1 %v1668_v4, %s7082_s29 }
0x2326   :  { %v1671_v43 = vpop.permute.xlu1 %1670 }
0x2327   :  { %v1673_v3 = vadd.f32 %v1671_v43, %v1663_v42 }
0x2329   :  { %6773 = vtanh.f32 %v1673_v3  ;;  %v1780_v17 = vrot.slane %v1673_v3, 6 }
0x2336   :  { %v6774_v44 = vpop.eup %6773 }
0x2337   :  { %1676 = vrot.lane.b32.xlu0 %v6774_v44, %s7085_s8 }
0x23a9   :  { %v1677_v46 = vpop.permute.xlu0 %1676 }
0x23aa   :  { %v7436_v50 = vmul.f32 %v1677_v46, %v1659_v40 }
0x23ac   :  { %1693 = vrot.lane.b32.xlu1 %v7436_v50, %s7086_s9 }
0x241e   :  { %v1694_v53 = vpop.permute.xlu1 %1693 }
0x241f   :  { %6444 = vmatmul.mubr.msk.f32.vlgmr.msra.gmra.mxu0 %vm256_vm6, %v1694_v53 }
0x2420   :  { %6452 = vmatpush3.msra.mxu0 %v7170_v21  ;;  %6453 = vmatprep.mubr.msk.f32.mxu0 %vm7084_vm5, %v8378_v22 }
0x2421   :  { %6461 = vmatprep.subr.mxu0 %v8378_v22 }
0x24df   :  { %v1763_v62 = vpop.f32.mrf.mxu0 }
0x24e0   :  { %v1768_v63 = vrot.slane %v1763_v62, 6 }
0x24e1   :  { %v6445_v0 = vpop.f32.mrf.mxu0 }
0x24e2   :  { %v1770_v1 = vadd.f32 %v1768_v63, %v7428_v29 }
0x24e4   :  { %v6132_v5 = vmul.f32 -1.442695, %v1770_v1 }
0x24e6   :  { %6775 = vpow2.f32 %v6132_v5 }
0x24e7   :  { %6777 = vtanh.f32 %v1770_v1 }
0x24f3   :  { %v6776_v7 = vpop.eup %6775 }
0x24f4   :  { %v1774_v8 = vadd.f32 1.0, %v6776_v7  ;;  %v6778_v9 = vpop.eup %6777 }
0x24f6   :  { %6779 = vrcp.f32 %v1774_v8 }
0x2503   :  { %v6780_v11 = vpop.eup %6779 }
0x2504   :  { %v1778_v14 = vsel %vm7159_vm4, %v6778_v9, %v6780_v11 }
0x2505   :  { %1784 = vrot.lane.b32.xlu0 %v1778_v14, %s7081_s28  ;;  %v1782_v33 = vmul.f32 %v1780_v17, %v1778_v14 }
0x2577   :  { %v1785_v15 = vpop.permute.xlu0 %1784 }
0x2578   :  { %v1787_v16 = vmul.f32 %v1785_v15, %v1778_v14 }
0x257a   :  { %1789 = vrot.lane.b32.xlu1 %v1787_v16, %s7082_s29 }
0x25ec   :  { %v1790_v27 = vpop.permute.xlu1 %1789 }
0x25ed   :  { %v1792_v18 = vadd.f32 %v1790_v27, %v1782_v33 }
0x25ef   :  { %6781 = vtanh.f32 %v1792_v18  ;;  %v1901_v43 = vrot.slane %v1792_v18, 6 }
0x25fc   :  { %v6782_v19 = vpop.eup %6781 }
0x25fd   :  { %1795 = vrot.lane.b32.xlu0 %v6782_v19, %s7085_s8 }
0x266f   :  { %v1796_v23 = vpop.permute.xlu0 %1795 }
0x2670   :  { %v7451_v6 = vmul.f32 %v1796_v23, %v1778_v14 }
0x2672   :  { %v1813_v28 = vrot.slane %v7451_v6, 2 }
0x2674   :  { %1814 = vrot.lane.b32.xlu1 %v1813_v28, %s7086_s9 }
0x26e6   :  { %v1815_v31 = vpop.permute.xlu1 %1814 }
0x26e7   :  { %6449 = vmatmul.mubr.msk.f32.vlgmr.msra.gmra.mxu1 %vm256_vm6, %v1815_v31 }
0x26e8   :  { %6457 = vmatpush3.msra.mxu1 %v7170_v21  ;;  %6458 = vmatprep.mubr.msk.f32.mxu1 %vm7084_vm5, %v8378_v22 }
0x26e9   :  { %6466 = vmatprep.subr.mxu1 %v8378_v22 }
0x27a7   :  { %v1884_v32 = vpop.f32.mrf.mxu1 }
0x27a8   :  { %v1889_v34 = vrot.slane %v1884_v32, 4 }
0x27a9   :  { %v6450_v35 = vpop.f32.mrf.mxu1 }
0x27aa   :  { %v1891_v36 = vadd.f32 %v1889_v34, %v7428_v29 }
0x27ac   :  { %v6134_v37 = vmul.f32 -1.442695, %v1891_v36 }
0x27ae   :  { %6783 = vpow2.f32 %v6134_v37  ;;  %v7498_v37 = vld [vmem:[%s8373_s3] ss:$0 sm:$0xff] }
0x27af   :  { %6785 = vtanh.f32 %v1891_v36  ;;  %v7489_v36 = vld [vmem:[%s8372_s2] sm:$0xff] }
0x27bb   :  { %v6784_v38 = vpop.eup %6783 }
0x27bc   :  { %v1895_v39 = vadd.f32 1.0, %v6784_v38  ;;  %v6786_v40 = vpop.eup %6785  ;;  %v7502_v38 = vadd.f32 %v7498_v37, %v7333_v55 }
0x27be   :  { %6787 = vrcp.f32 %v1895_v39 }
0x27cb   :  { %v6788_v41 = vpop.eup %6787 }
0x27cc   :  { %v1899_v4 = vsel %vm7159_vm4, %v6786_v40, %v6788_v41 }
0x27cd   :  { %1905 = vrot.lane.b32.xlu0 %v1899_v4, %s7081_s28  ;;  %v1903_v3 = vmul.f32 %v1901_v43, %v1899_v4 }
0x283f   :  { %v1906_v52 = vpop.permute.xlu0 %1905 }
0x2840   :  { %v1908_v42 = vmul.f32 %v1906_v52, %v1899_v4 }
0x2842   :  { %1910 = vrot.lane.b32.xlu1 %v1908_v42, %s7082_s29 }
0x28b4   :  { %v1911_v44 = vpop.permute.xlu1 %1910 }
0x28b5   :  { %v1913_v46 = vadd.f32 %v1911_v44, %v1903_v3 }
0x28b7   :  { %6789 = vtanh.f32 %v1913_v46  ;;  %v2022_v18 = vrot.slane %v1913_v46, 6 }
0x28c4   :  { %v6790_v53 = vpop.eup %6789 }
0x28c5   :  { %1916 = vrot.lane.b32.xlu0 %v6790_v53, %s7085_s8 }
0x2937   :  { %v1917_v62 = vpop.permute.xlu0 %1916 }
0x2938   :  { %v7466_v63 = vmul.f32 %v1917_v62, %v1899_v4 }
0x293a   :  { %v1934_v0 = vrot.slane %v7466_v63, 4 }
0x293c   :  { %1935 = vrot.lane.b32.xlu1 %v1934_v0, %s7086_s9 }
0x29ae   :  { %v1936_v1 = vpop.permute.xlu1 %1935 }
0x29af   :  { %6454 = vmatmul.mubr.msk.f32.vlgmr.msra.gmra.mxu0 %vm256_vm6, %v1936_v1 }
0x29b0   :  { %6462 = vmatpush3.msra.mxu0 %v7170_v21  ;;  %6463 = vmatprep.mubr.msk.f32.mxu0 %vm7084_vm5, %v8378_v22 }
0x29b1   :  { %6471 = vmatprep.subr.mxu0 %v8378_v22 }
0x2a6f   :  { %v2005_v5 = vpop.f32.mrf.mxu0 }
0x2a70   :  { %v2010_v7 = vrot.slane %v2005_v5, 2 }
0x2a71   :  { %v6455_v8 = vpop.f32.mrf.mxu0 }
0x2a72   :  { %v2012_v9 = vadd.f32 %v2010_v7, %v7428_v29 }
0x2a74   :  { %v6136_v11 = vmul.f32 -1.442695, %v2012_v9 }
0x2a76   :  { %6791 = vpow2.f32 %v6136_v11 }
0x2a77   :  { %6793 = vtanh.f32 %v2012_v9 }
0x2a83   :  { %v6792_v14 = vpop.eup %6791 }
0x2a84   :  { %v2016_v15 = vadd.f32 1.0, %v6792_v14  ;;  %v6794_v16 = vpop.eup %6793 }
0x2a86   :  { %6795 = vrcp.f32 %v2016_v15 }
0x2a93   :  { %v6796_v17 = vpop.eup %6795 }
0x2a94   :  { %v2020_v21 = vsel %vm7159_vm4, %v6794_v16, %v6796_v17 }
0x2a95   :  { %2026 = vrot.lane.b32.xlu0 %v2020_v21, %s7081_s28  ;;  %v2024_v19 = vmul.f32 %v2022_v18, %v2020_v21 }
0x2b07   :  { %v2027_v33 = vpop.permute.xlu0 %2026 }
0x2b08   :  { %v2029_v27 = vmul.f32 %v2027_v33, %v2020_v21 }
0x2b0a   :  { %2031 = vrot.lane.b32.xlu1 %v2029_v27, %s7082_s29 }
0x2b7c   :  { %v2032_v29 = vpop.permute.xlu1 %2031 }
0x2b7d   :  { %v2034_v23 = vadd.f32 %v2032_v29, %v2024_v19 }
0x2b7f   :  { %6797 = vtanh.f32 %v2034_v23  ;;  %v2141_v53 = vrot.slane %v2034_v23, 6 }
0x2b8c   :  { %v6798_v28 = vpop.eup %6797 }
0x2b8d   :  { %2037 = vrot.lane.b32.xlu0 %v6798_v28, %s7085_s8 }
0x2bff   :  { %v2038_v31 = vpop.permute.xlu0 %2037 }
0x2c00   :  { %v7481_v32 = vmul.f32 %v2038_v31, %v2020_v21 }
0x2c02   :  { %v2056_v34 = vrot.slane %v7481_v32, 6 }
0x2c04   :  { %2057 = vrot.lane.b32.xlu1 %v2056_v34, %s7086_s9 }
0x2c76   :  { %v2058_v35 = vpop.permute.xlu1 %2057 }
0x2c77   :  { %6459 = vmatmul.mubr.msk.f32.vlgmr.msra.gmra.mxu1 %vm256_vm6, %v2058_v35 }
0x2c78   :  { %6467 = vmatpush3.msra.mxu1 %v7489_v36  ;;  %6468 = vmatprep.mubr.msk.f32.mxu1 %vm7084_vm5, %v8378_v22 }
0x2c79   :  { %6476 = vmatprep.subr.mxu1 %v8378_v22 }
0x2d37   :  { %v2127_v39 = vpop.f32.mrf.mxu1 }
0x2d38   :  { %v2131_v40 = vadd.f32 %v2127_v39, %v7502_v38 }
0x2d39   :  { %v6460_v41 = vpop.f32.mrf.mxu1 }
0x2d3a   :  { %v6138_v4 = vmul.f32 -1.442695, %v2131_v40 }
0x2d3c   :  { %6799 = vpow2.f32 %v6138_v4 }
0x2d3d   :  { %6801 = vtanh.f32 %v2131_v40 }
0x2d49   :  { %v6800_v52 = vpop.eup %6799 }
0x2d4a   :  { %v2135_v42 = vadd.f32 1.0, %v6800_v52  ;;  %v6802_v43 = vpop.eup %6801 }
0x2d4c   :  { %6803 = vrcp.f32 %v2135_v42 }
0x2d59   :  { %v6804_v3 = vpop.eup %6803 }
0x2d5a   :  { %v2139_v44 = vsel %vm7159_vm4, %v6802_v43, %v6804_v3 }
0x2d5b   :  { %2145 = vrot.lane.b32.xlu0 %v2139_v44, %s7081_s28  ;;  %v2143_v62 = vmul.f32 %v2141_v53, %v2139_v44 }
0x2dcd   :  { %v2146_v46 = vpop.permute.xlu0 %2145 }
0x2dce   :  { %v2148_v55 = vmul.f32 %v2146_v46, %v2139_v44 }
0x2dd0   :  { %2150 = vrot.lane.b32.xlu1 %v2148_v55, %s7082_s29 }
0x2e42   :  { %v2151_v0 = vpop.permute.xlu1 %2150 }
0x2e43   :  { %v2153_v1 = vadd.f32 %v2151_v0, %v2143_v62 }
0x2e45   :  { %6805 = vtanh.f32 %v2153_v1  ;;  %v2259_v28 = vrot.slane %v2153_v1, 6 }
0x2e52   :  { %v6806_v5 = vpop.eup %6805 }
0x2e53   :  { %2156 = vrot.lane.b32.xlu0 %v6806_v5, %s7085_s8 }
0x2ec5   :  { %v2157_v7 = vpop.permute.xlu0 %2156 }
0x2ec6   :  { %v7510_v8 = vmul.f32 %v2157_v7, %v2139_v44 }
0x2ec8   :  { %2172 = vrot.lane.b32.xlu1 %v7510_v8, %s7086_s9 }
0x2f3a   :  { %v2173_v9 = vpop.permute.xlu1 %2172 }
0x2f3b   :  { %6464 = vmatmul.mubr.msk.f32.vlgmr.msra.gmra.mxu0 %vm256_vm6, %v2173_v9 }
0x2f3c   :  { %6472 = vmatpush3.msra.mxu0 %v7489_v36  ;;  %6473 = vmatprep.mubr.msk.f32.mxu0 %vm7084_vm5, %v8378_v22 }
0x2f3d   :  { %6481 = vmatprep.subr.mxu0 %v8378_v22 }
0x2ffb   :  { %v2242_v11 = vpop.f32.mrf.mxu0 }
0x2ffc   :  { %v2247_v14 = vrot.slane %v2242_v11, 6 }
0x2ffd   :  { %v6465_v15 = vpop.f32.mrf.mxu0 }
0x2ffe   :  { %v2249_v16 = vadd.f32 %v2247_v14, %v7502_v38 }
0x3000   :  { %v6140_v17 = vmul.f32 -1.442695, %v2249_v16 }
0x3002   :  { %6807 = vpow2.f32 %v6140_v17 }
0x3003   :  { %6809 = vtanh.f32 %v2249_v16 }
0x300f   :  { %v6808_v21 = vpop.eup %6807 }
0x3010   :  { %v2253_v33 = vadd.f32 1.0, %v6808_v21  ;;  %v6810_v27 = vpop.eup %6809 }
0x3012   :  { %6811 = vrcp.f32 %v2253_v33 }
0x301f   :  { %v6812_v18 = vpop.eup %6811 }
0x3020   :  { %v2257_v19 = vsel %vm7159_vm4, %v6810_v27, %v6812_v18 }
0x3021   :  { %2263 = vrot.lane.b32.xlu0 %v2257_v19, %s7081_s28  ;;  %v2261_v31 = vmul.f32 %v2259_v28, %v2257_v19 }
0x3093   :  { %v2264_v29 = vpop.permute.xlu0 %2263 }
0x3094   :  { %v2266_v23 = vmul.f32 %v2264_v29, %v2257_v19 }
0x3096   :  { %2268 = vrot.lane.b32.xlu1 %v2266_v23, %s7082_s29 }
0x3108   :  { %v2269_v34 = vpop.permute.xlu1 %2268 }
0x3109   :  { %v2271_v35 = vadd.f32 %v2269_v34, %v2261_v31 }
0x310b   :  { %6813 = vtanh.f32 %v2271_v35  ;;  %v2379_v9 = vrot.slane %v2271_v35, 6 }
0x3118   :  { %v6814_v39 = vpop.eup %6813 }
0x3119   :  { %2274 = vrot.lane.b32.xlu0 %v6814_v39, %s7085_s8 }
0x318b   :  { %v2275_v40 = vpop.permute.xlu0 %2274 }
0x318c   :  { %v7525_v41 = vmul.f32 %v2275_v40, %v2257_v19 }
0x318e   :  { %v2291_v4 = vrot.slane %v7525_v41, 2 }
0x3190   :  { %2292 = vrot.lane.b32.xlu1 %v2291_v4, %s7086_s9 }
0x3202   :  { %v2293_v52 = vpop.permute.xlu1 %2292 }
0x3203   :  { %6469 = vmatmul.mubr.msk.f32.vlgmr.msra.gmra.mxu1 %vm256_vm6, %v2293_v52 }
0x3204   :  { %6477 = vmatpush3.msra.mxu1 %v7489_v36  ;;  %6478 = vmatprep.mubr.msk.f32.mxu1 %vm7084_vm5, %v8378_v22 }
0x3205   :  { %6486 = vmatprep.subr.mxu1 %v8378_v22 }
0x32c3   :  { %v2362_v42 = vpop.f32.mrf.mxu1 }
0x32c4   :  { %v2367_v43 = vrot.slane %v2362_v42, 4 }
0x32c5   :  { %v6470_v3 = vpop.f32.mrf.mxu1 }
0x32c6   :  { %v2369_v44 = vadd.f32 %v2367_v43, %v7502_v38 }
0x32c8   :  { %v6142_v46 = vmul.f32 -1.442695, %v2369_v44 }
0x32ca   :  { %6815 = vpow2.f32 %v6142_v46 }
0x32cb   :  { %6817 = vtanh.f32 %v2369_v44 }
0x32d7   :  { %v6816_v55 = vpop.eup %6815 }
0x32d8   :  { %v2373_v53 = vadd.f32 1.0, %v6816_v55  ;;  %v6818_v62 = vpop.eup %6817 }
0x32da   :  { %6819 = vrcp.f32 %v2373_v53 }
0x32e7   :  { %v6820_v0 = vpop.eup %6819 }
0x32e8   :  { %v2377_v1 = vsel %vm7159_vm4, %v6818_v62, %v6820_v0  ;;  %v7566_v0 = vadd.f32 %v7498_v37, %v7331_v54 }
0x32e9   :  { %2383 = vrot.lane.b32.xlu0 %v2377_v1, %s7081_s28  ;;  %v2381_v11 = vmul.f32 %v2379_v9, %v2377_v1 }
0x335b   :  { %v2384_v5 = vpop.permute.xlu0 %2383 }
0x335c   :  { %v2386_v7 = vmul.f32 %v2384_v5, %v2377_v1 }
0x335e   :  { %2388 = vrot.lane.b32.xlu1 %v2386_v7, %s7082_s29 }
0x33d0   :  { %v2389_v14 = vpop.permute.xlu1 %2388 }
0x33d1   :  { %v2391_v15 = vadd.f32 %v2389_v14, %v2381_v11 }
0x33d3   :  { %6821 = vtanh.f32 %v2391_v15  ;;  %v2499_v42 = vrot.slane %v2391_v15, 6 }
0x33e0   :  { %v6822_v16 = vpop.eup %6821 }
0x33e1   :  { %2394 = vrot.lane.b32.xlu0 %v6822_v16, %s7085_s8 }
0x3453   :  { %v2395_v17 = vpop.permute.xlu0 %2394 }
0x3454   :  { %v7540_v21 = vmul.f32 %v2395_v17, %v2377_v1 }
0x3456   :  { %v2411_v33 = vrot.slane %v7540_v21, 4  ;;  %v2399_v12 = vcombine.high %v7540_v21, %v7540_v21 }
0x3458   :  { %2412 = vrot.lane.b32.xlu1 %v2411_v33, %s7086_s9 }
0x34ca   :  { %v2413_v27 = vpop.permute.xlu1 %2412 }
0x34cb   :  { %6474 = vmatmul.mubr.msk.f32.vlgmr.msra.gmra.mxu0 %vm256_vm6, %v2413_v27 }
0x34cc   :  { %6482 = vmatpush3.msra.mxu0 %v7489_v36  ;;  %6483 = vmatprep.mubr.msk.f32.mxu0 %vm7084_vm5, %v8378_v22 }
0x34cd   :  { %6491 = vmatprep.subr.mxu0 %v8378_v22 }
0x358b   :  { %v2482_v18 = vpop.f32.mrf.mxu0 }
0x358c   :  { %v2487_v19 = vrot.slane %v2482_v18, 2 }
0x358d   :  { %v6475_v29 = vpop.f32.mrf.mxu0 }
0x358e   :  { %v2489_v23 = vadd.f32 %v2487_v19, %v7502_v38 }
0x3590   :  { %v6144_v28 = vmul.f32 -1.442695, %v2489_v23 }
0x3592   :  { %6823 = vpow2.f32 %v6144_v28 }
0x3593   :  { %6825 = vtanh.f32 %v2489_v23 }
0x359f   :  { %v6824_v31 = vpop.eup %6823 }
0x35a0   :  { %v2493_v34 = vadd.f32 1.0, %v6824_v31  ;;  %v6826_v35 = vpop.eup %6825 }
0x35a2   :  { %6827 = vrcp.f32 %v2493_v34 }
0x35af   :  { %v6828_v39 = vpop.eup %6827 }
0x35b0   :  { %v2497_v40 = vsel %vm7159_vm4, %v6826_v35, %v6828_v39 }
0x35b1   :  { %2503 = vrot.lane.b32.xlu0 %v2497_v40, %s7081_s28  ;;  %v2501_v43 = vmul.f32 %v2499_v42, %v2497_v40 }
0x3623   :  { %v2504_v4 = vpop.permute.xlu0 %2503 }
0x3624   :  { %v2506_v52 = vmul.f32 %v2504_v4, %v2497_v40 }
0x3626   :  { %2508 = vrot.lane.b32.xlu1 %v2506_v52, %s7082_s29 }
0x3698   :  { %v2509_v38 = vpop.permute.xlu1 %2508 }
0x3699   :  { %v2511_v3 = vadd.f32 %v2509_v38, %v2501_v43 }
0x369b   :  { %6829 = vtanh.f32 %v2511_v3  ;;  %v2615_v27 = vrot.slane %v2511_v3, 6 }
0x36a8   :  { %v6830_v44 = vpop.eup %6829 }
0x36a9   :  { %2514 = vrot.lane.b32.xlu0 %v6830_v44, %s7085_s8 }
0x371b   :  { %v2515_v46 = vpop.permute.xlu0 %2514 }
0x371c   :  { %v7555_v55 = vmul.f32 %v2515_v46, %v2497_v40 }
0x371e   :  { %v2530_v53 = vrot.slane %v7555_v55, 6 }
0x3720   :  { %2531 = vrot.lane.b32.xlu1 %v2530_v53, %s7086_s9 }
0x3792   :  { %v2532_v62 = vpop.permute.xlu1 %2531 }
0x3793   :  { %6479 = vmatmul.mubr.msk.f32.vlgmr.msra.gmra.mxu1 %vm256_vm6, %v2532_v62 }
0x3794   :  { %6487 = vmatpush3.msra.mxu1 %v7489_v36  ;;  %6488 = vmatprep.mubr.msk.f32.mxu1 %vm7084_vm5, %v8378_v22 }
0x3795   :  { %6496 = vmatprep.subr.mxu1 %v8378_v22 }
0x3853   :  { %v2601_v1 = vpop.f32.mrf.mxu1 }
0x3854   :  { %v2605_v5 = vadd.f32 %v2601_v1, %v7566_v0 }
0x3855   :  { %v6480_v7 = vpop.f32.mrf.mxu1 }
0x3856   :  { %v6146_v9 = vmul.f32 -1.442695, %v2605_v5 }
0x3858   :  { %6831 = vpow2.f32 %v6146_v9 }
0x3859   :  { %6833 = vtanh.f32 %v2605_v5 }
0x3865   :  { %v6832_v11 = vpop.eup %6831 }
0x3866   :  { %v2609_v14 = vadd.f32 1.0, %v6832_v11  ;;  %v6834_v15 = vpop.eup %6833 }
0x3868   :  { %6835 = vrcp.f32 %v2609_v14 }
0x3875   :  { %v6836_v16 = vpop.eup %6835 }
0x3876   :  { %v2613_v17 = vsel %vm7159_vm4, %v6834_v15, %v6836_v16 }
0x3877   :  { %2619 = vrot.lane.b32.xlu0 %v2613_v17, %s7081_s28  ;;  %v2617_v18 = vmul.f32 %v2615_v27, %v2613_v17 }
0x38e9   :  { %v2620_v33 = vpop.permute.xlu0 %2619 }
0x38ea   :  { %v2622_v54 = vmul.f32 %v2620_v33, %v2613_v17 }
0x38ec   :  { %2624 = vrot.lane.b32.xlu1 %v2622_v54, %s7082_s29 }
0x395e   :  { %v2625_v19 = vpop.permute.xlu1 %2624 }
0x395f   :  { %v2627_v29 = vadd.f32 %v2625_v19, %v2617_v18 }
0x3961   :  { %6837 = vtanh.f32 %v2627_v29  ;;  %v2733_v62 = vrot.slane %v2627_v29, 6 }
0x396e   :  { %v6838_v23 = vpop.eup %6837 }
0x396f   :  { %2630 = vrot.lane.b32.xlu0 %v6838_v23, %s7085_s8 }
0x39e1   :  { %v2631_v28 = vpop.permute.xlu0 %2630 }
0x39e2   :  { %v7574_v31 = vmul.f32 %v2631_v28, %v2613_v17 }
0x39e4   :  { %2646 = vrot.lane.b32.xlu1 %v7574_v31, %s7086_s9 }
0x3a56   :  { %v2647_v34 = vpop.permute.xlu1 %2646 }
0x3a57   :  { %6484 = vmatmul.mubr.msk.f32.vlgmr.msra.gmra.mxu0 %vm256_vm6, %v2647_v34 }
0x3a58   :  { %6492 = vmatpush3.msra.mxu0 %v7489_v36  ;;  %6493 = vmatprep.mubr.msk.f32.mxu0 %vm7084_vm5, %v8378_v22 }
0x3a59   :  { %6501 = vmatprep.subr.mxu0 %v8378_v22 }
0x3b17   :  { %v2716_v35 = vpop.f32.mrf.mxu0 }
0x3b18   :  { %v2721_v39 = vrot.slane %v2716_v35, 6 }
0x3b19   :  { %v6485_v40 = vpop.f32.mrf.mxu0 }
0x3b1a   :  { %v2723_v4 = vadd.f32 %v2721_v39, %v7566_v0 }
0x3b1c   :  { %v6148_v52 = vmul.f32 -1.442695, %v2723_v4 }
0x3b1e   :  { %6839 = vpow2.f32 %v6148_v52 }
0x3b1f   :  { %6841 = vtanh.f32 %v2723_v4 }
0x3b2b   :  { %v6840_v42 = vpop.eup %6839 }
0x3b2c   :  { %v2727_v43 = vadd.f32 1.0, %v6840_v42  ;;  %v6842_v38 = vpop.eup %6841 }
0x3b2e   :  { %6843 = vrcp.f32 %v2727_v43 }
0x3b3b   :  { %v6844_v3 = vpop.eup %6843 }
0x3b3c   :  { %v2731_v44 = vsel %vm7159_vm4, %v6842_v38, %v6844_v3 }
0x3b3d   :  { %2737 = vrot.lane.b32.xlu0 %v2731_v44, %s7081_s28  ;;  %v2735_v1 = vmul.f32 %v2733_v62, %v2731_v44 }
0x3baf   :  { %v2738_v46 = vpop.permute.xlu0 %2737 }
0x3bb0   :  { %v2740_v53 = vmul.f32 %v2738_v46, %v2731_v44 }
0x3bb2   :  { %2742 = vrot.lane.b32.xlu1 %v2740_v53, %s7082_s29 }
0x3c24   :  { %v2743_v5 = vpop.permute.xlu1 %2742 }
0x3c25   :  { %v2745_v7 = vadd.f32 %v2743_v5, %v2735_v1 }
0x3c27   :  { %6845 = vtanh.f32 %v2745_v7  ;;  %v2853_v40 = vrot.slane %v2745_v7, 6 }
0x3c34   :  { %v6846_v9 = vpop.eup %6845 }
0x3c35   :  { %2748 = vrot.lane.b32.xlu0 %v6846_v9, %s7085_s8 }
0x3ca7   :  { %v2749_v11 = vpop.permute.xlu0 %2748 }
0x3ca8   :  { %v7589_v14 = vmul.f32 %v2749_v11, %v2731_v44 }
0x3caa   :  { %v2765_v15 = vrot.slane %v7589_v14, 2 }
0x3cac   :  { %2766 = vrot.lane.b32.xlu1 %v2765_v15, %s7086_s9 }
0x3d1e   :  { %v2767_v16 = vpop.permute.xlu1 %2766 }
0x3d1f   :  { %6489 = vmatmul.mubr.msk.f32.vlgmr.msra.gmra.mxu1 %vm256_vm6, %v2767_v16 }
0x3d20   :  { %6497 = vmatpush3.msra.mxu1 %v7489_v36  ;;  %6498 = vmatprep.mubr.msk.f32.mxu1 %vm7084_vm5, %v8378_v22 }
0x3d21   :  { %6506 = vmatprep.subr.mxu1 %v8378_v22 }
0x3ddf   :  { %v2836_v17 = vpop.f32.mrf.mxu1 }
0x3de0   :  { %v2841_v33 = vrot.slane %v2836_v17, 4 }
0x3de1   :  { %v6490_v54 = vpop.f32.mrf.mxu1 }
0x3de2   :  { %v2843_v27 = vadd.f32 %v2841_v33, %v7566_v0 }
0x3de4   :  { %v6150_v18 = vmul.f32 -1.442695, %v2843_v27 }
0x3de6   :  { %6847 = vpow2.f32 %v6150_v18 }
0x3de7   :  { %6849 = vtanh.f32 %v2843_v27 }
0x3df3   :  { %v6848_v19 = vpop.eup %6847 }
0x3df4   :  { %v2847_v29 = vadd.f32 1.0, %v6848_v19  ;;  %v6850_v23 = vpop.eup %6849 }
0x3df6   :  { %6851 = vrcp.f32 %v2847_v29 }
0x3e03   :  { %v6852_v28 = vpop.eup %6851 }
0x3e04   :  { %v2851_v34 = vsel %vm7159_vm4, %v6850_v23, %v6852_v28 }
0x3e05   :  { %2857 = vrot.lane.b32.xlu0 %v2851_v34, %s7081_s28  ;;  %v2855_v4 = vmul.f32 %v2853_v40, %v2851_v34 }
0x3e77   :  { %v2858_v35 = vpop.permute.xlu0 %2857 }
0x3e78   :  { %v2860_v39 = vmul.f32 %v2858_v35, %v2851_v34 }
0x3e7a   :  { %2862 = vrot.lane.b32.xlu1 %v2860_v39, %s7082_s29  ;;  %v7630_v39 = vadd.f32 %v7498_v37, %v7337_v57 }
0x3eec   :  { %v2863_v52 = vpop.permute.xlu1 %2862 }
0x3eed   :  { %v2865_v42 = vadd.f32 %v2863_v52, %v2855_v4 }
0x3eef   :  { %6853 = vtanh.f32 %v2865_v42  ;;  %v2973_v27 = vrot.slane %v2865_v42, 6 }
0x3efc   :  { %v6854_v43 = vpop.eup %6853 }
0x3efd   :  { %2868 = vrot.lane.b32.xlu0 %v6854_v43, %s7085_s8 }
0x3f6f   :  { %v2869_v38 = vpop.permute.xlu0 %2868 }
0x3f70   :  { %v7604_v3 = vmul.f32 %v2869_v38, %v2851_v34 }
0x3f72   :  { %v2885_v44 = vrot.slane %v7604_v3, 4 }
0x3f74   :  { %2886 = vrot.lane.b32.xlu1 %v2885_v44, %s7086_s9 }
0x3fe6   :  { %v2887_v46 = vpop.permute.xlu1 %2886 }
0x3fe7   :  { %6494 = vmatmul.mubr.msk.f32.vlgmr.msra.gmra.mxu0 %vm256_vm6, %v2887_v46 }
0x3fe8   :  { %6502 = vmatpush3.msra.mxu0 %v7489_v36  ;;  %6503 = vmatprep.mubr.msk.f32.mxu0 %vm7084_vm5, %v8378_v22 }
0x3fe9   :  { %6511 = vmatprep.subr.mxu0 %v8378_v22 }
0x40a7   :  { %v2956_v53 = vpop.f32.mrf.mxu0 }
0x40a8   :  { %v2961_v62 = vrot.slane %v2956_v53, 2 }
0x40a9   :  { %v6495_v1 = vpop.f32.mrf.mxu0 }
0x40aa   :  { %v2963_v5 = vadd.f32 %v2961_v62, %v7566_v0 }
0x40ac   :  { %v6152_v7 = vmul.f32 -1.442695, %v2963_v5 }
0x40ae   :  { %6855 = vpow2.f32 %v6152_v7 }
0x40af   :  { %6857 = vtanh.f32 %v2963_v5 }
0x40bb   :  { %v6856_v9 = vpop.eup %6855 }
0x40bc   :  { %v2967_v11 = vadd.f32 1.0, %v6856_v9  ;;  %v6858_v15 = vpop.eup %6857 }
0x40be   :  { %6859 = vrcp.f32 %v2967_v11 }
0x40cb   :  { %v6860_v16 = vpop.eup %6859 }
0x40cc   :  { %v2971_v17 = vsel %vm7159_vm4, %v6858_v15, %v6860_v16 }
0x40cd   :  { %2977 = vrot.lane.b32.xlu0 %v2971_v17, %s7081_s28  ;;  %v2975_v18 = vmul.f32 %v2973_v27, %v2971_v17 }
0x413f   :  { %v2978_v33 = vpop.permute.xlu0 %2977 }
0x4140   :  { %v2980_v54 = vmul.f32 %v2978_v33, %v2971_v17 }
0x4142   :  { %2982 = vrot.lane.b32.xlu1 %v2980_v54, %s7082_s29 }
0x41b4   :  { %v2983_v0 = vpop.permute.xlu1 %2982 }
0x41b5   :  { %v2985_v19 = vadd.f32 %v2983_v0, %v2975_v18 }
0x41b7   :  { %6861 = vtanh.f32 %v2985_v19  ;;  %v3091_v1 = vrot.slane %v2985_v19, 6 }
0x41c4   :  { %v6862_v29 = vpop.eup %6861 }
0x41c5   :  { %2988 = vrot.lane.b32.xlu0 %v6862_v29, %s7085_s8 }
0x4237   :  { %v2989_v23 = vpop.permute.xlu0 %2988 }
0x4238   :  { %v7619_v28 = vmul.f32 %v2989_v23, %v2971_v17 }
0x423a   :  { %v3006_v34 = vrot.slane %v7619_v28, 6 }
0x423c   :  { %3007 = vrot.lane.b32.xlu1 %v3006_v34, %s7086_s9 }
0x42ae   :  { %v3008_v35 = vpop.permute.xlu1 %3007 }
0x42af   :  { %6499 = vmatmul.mubr.msk.f32.vlgmr.msra.gmra.mxu1 %vm256_vm6, %v3008_v35 }
0x42b0   :  { %6507 = vmatpush3.msra.mxu1 %v7489_v36  ;;  %6508 = vmatprep.mubr.msk.f32.mxu1 %vm7084_vm5, %v8378_v22 }
0x42b1   :  { %6516 = vmatprep.subr.mxu1 %v8378_v22 }
0x436f   :  { %v3077_v40 = vpop.f32.mrf.mxu1 }
0x4370   :  { %v3081_v4 = vadd.f32 %v3077_v40, %v7630_v39 }
0x4371   :  { %v6500_v52 = vpop.f32.mrf.mxu1 }
0x4372   :  { %v6154_v42 = vmul.f32 -1.442695, %v3081_v4 }
0x4374   :  { %6863 = vpow2.f32 %v6154_v42 }
0x4375   :  { %6865 = vtanh.f32 %v3081_v4 }
0x4381   :  { %v6864_v43 = vpop.eup %6863 }
0x4382   :  { %v3085_v38 = vadd.f32 1.0, %v6864_v43  ;;  %v6866_v44 = vpop.eup %6865 }
0x4384   :  { %6867 = vrcp.f32 %v3085_v38 }
0x4391   :  { %v6868_v46 = vpop.eup %6867 }
0x4392   :  { %v3089_v53 = vsel %vm7159_vm4, %v6866_v44, %v6868_v46 }
0x4393   :  { %3095 = vrot.lane.b32.xlu0 %v3089_v53, %s7081_s28  ;;  %v3093_v5 = vmul.f32 %v3091_v1, %v3089_v53 }
0x4405   :  { %v3096_v62 = vpop.permute.xlu0 %3095 }
0x4406   :  { %v3098_v57 = vmul.f32 %v3096_v62, %v3089_v53 }
0x4408   :  { %3100 = vrot.lane.b32.xlu1 %v3098_v57, %s7082_s29 }
0x447a   :  { %v3101_v7 = vpop.permute.xlu1 %3100 }
0x447b   :  { %v3103_v9 = vadd.f32 %v3101_v7, %v3093_v5 }
0x447d   :  { %6869 = vtanh.f32 %v3103_v9  ;;  %v3209_v52 = vrot.slane %v3103_v9, 6 }
0x448a   :  { %v6870_v11 = vpop.eup %6869 }
0x448b   :  { %3106 = vrot.lane.b32.xlu0 %v6870_v11, %s7085_s8 }
0x44fd   :  { %v3107_v15 = vpop.permute.xlu0 %3106 }
0x44fe   :  { %v7638_v16 = vmul.f32 %v3107_v15, %v3089_v53 }
0x4500   :  { %3122 = vrot.lane.b32.xlu1 %v7638_v16, %s7086_s9 }
0x4572   :  { %v3123_v17 = vpop.permute.xlu1 %3122 }
0x4573   :  { %6504 = vmatmul.mubr.msk.f32.vlgmr.msra.gmra.mxu0 %vm256_vm6, %v3123_v17 }
0x4574   :  { %6512 = vmatpush3.msra.mxu0 %v7489_v36  ;;  %6513 = vmatprep.mubr.msk.f32.mxu0 %vm7084_vm5, %v8378_v22 }
0x4575   :  { %6521 = vmatprep.subr.mxu0 %v8378_v22 }
0x4633   :  { %v3192_v33 = vpop.f32.mrf.mxu0 }
0x4634   :  { %v3197_v54 = vrot.slane %v3192_v33, 6 }
0x4635   :  { %v6505_v27 = vpop.f32.mrf.mxu0 }
0x4636   :  { %v3199_v18 = vadd.f32 %v3197_v54, %v7630_v39 }
0x4638   :  { %v6156_v0 = vmul.f32 -1.442695, %v3199_v18 }
0x463a   :  { %6871 = vpow2.f32 %v6156_v0 }
0x463b   :  { %6873 = vtanh.f32 %v3199_v18 }
0x4647   :  { %v6872_v19 = vpop.eup %6871 }
0x4648   :  { %v3203_v29 = vadd.f32 1.0, %v6872_v19  ;;  %v6874_v23 = vpop.eup %6873 }
0x464a   :  { %6875 = vrcp.f32 %v3203_v29 }
0x4657   :  { %v6876_v34 = vpop.eup %6875 }
0x4658   :  { %v3207_v35 = vsel %vm7159_vm4, %v6874_v23, %v6876_v34 }
0x4659   :  { %3213 = vrot.lane.b32.xlu0 %v3207_v35, %s7081_s28  ;;  %v3211_v42 = vmul.f32 %v3209_v52, %v3207_v35 }
0x46cb   :  { %v3214_v40 = vpop.permute.xlu0 %3213 }
0x46cc   :  { %v3216_v4 = vmul.f32 %v3214_v40, %v3207_v35 }
0x46ce   :  { %3218 = vrot.lane.b32.xlu1 %v3216_v4, %s7082_s29 }
0x4740   :  { %v3219_v43 = vpop.permute.xlu1 %3218 }
0x4741   :  { %v3221_v38 = vadd.f32 %v3219_v43, %v3211_v42 }
0x4743   :  { %6877 = vtanh.f32 %v3221_v38  ;;  %v3329_v19 = vrot.slane %v3221_v38, 6 }
0x4750   :  { %v6878_v44 = vpop.eup %6877 }
0x4751   :  { %3224 = vrot.lane.b32.xlu0 %v6878_v44, %s7085_s8 }
0x47c3   :  { %v3225_v46 = vpop.permute.xlu0 %3224 }
0x47c4   :  { %v7653_v53 = vmul.f32 %v3225_v46, %v3207_v35 }
0x47c6   :  { %v3241_v62 = vrot.slane %v7653_v53, 2 }
0x47c8   :  { %3242 = vrot.lane.b32.xlu1 %v3241_v62, %s7086_s9 }
0x483a   :  { %v3243_v57 = vpop.permute.xlu1 %3242 }
0x483b   :  { %6509 = vmatmul.mubr.msk.f32.vlgmr.msra.gmra.mxu1 %vm256_vm6, %v3243_v57 }
0x483c   :  { %6517 = vmatpush3.msra.mxu1 %v7489_v36  ;;  %6518 = vmatprep.mubr.msk.f32.mxu1 %vm7084_vm5, %v8378_v22 }
0x483d   :  { %6526 = vmatprep.subr.mxu1 %v8378_v22 }
0x48fb   :  { %v3312_v1 = vpop.f32.mrf.mxu1 }
0x48fc   :  { %v3317_v5 = vrot.slane %v3312_v1, 4 }
0x48fd   :  { %v6510_v7 = vpop.f32.mrf.mxu1 }
0x48fe   :  { %v3319_v9 = vadd.f32 %v3317_v5, %v7630_v39 }
0x4900   :  { %v6158_v11 = vmul.f32 -1.442695, %v3319_v9 }
0x4902   :  { %6879 = vpow2.f32 %v6158_v11 }
0x4903   :  { %6881 = vtanh.f32 %v3319_v9 }
0x490f   :  { %v6880_v15 = vpop.eup %6879 }
0x4910   :  { %v3323_v17 = vadd.f32 1.0, %v6880_v15  ;;  %v6882_v33 = vpop.eup %6881 }
0x4912   :  { %6883 = vrcp.f32 %v3323_v17 }
0x491f   :  { %v6884_v54 = vpop.eup %6883 }
0x4920   :  { %v3327_v27 = vsel %vm7159_vm4, %v6882_v33, %v6884_v54 }
0x4921   :  { %3333 = vrot.lane.b32.xlu0 %v3327_v27, %s7081_s28  ;;  %v3331_v29 = vmul.f32 %v3329_v19, %v3327_v27 }
0x4993   :  { %v3334_v18 = vpop.permute.xlu0 %3333 }
0x4994   :  { %v3336_v0 = vmul.f32 %v3334_v18, %v3327_v27 }
0x4996   :  { %3338 = vrot.lane.b32.xlu1 %v3336_v0, %s7082_s29 }
0x4a08   :  { %v3339_v23 = vpop.permute.xlu1 %3338 }
0x4a09   :  { %v3341_v34 = vadd.f32 %v3339_v23, %v3331_v29  ;;  %v7694_v23 = vadd.f32 %v7498_v37, %v7335_v56 }
0x4a0b   :  { %6885 = vtanh.f32 %v3341_v34  ;;  %v3449_v17 = vrot.slane %v3341_v34, 6 }
0x4a18   :  { %v6886_v35 = vpop.eup %6885 }
0x4a19   :  { %3344 = vrot.lane.b32.xlu0 %v6886_v35, %s7085_s8 }
0x4a8b   :  { %v3345_v40 = vpop.permute.xlu0 %3344 }
0x4a8c   :  { %v7668_v4 = vmul.f32 %v3345_v40, %v3327_v27 }
0x4a8e   :  { %v3361_v52 = vrot.slane %v7668_v4, 4 }
0x4a90   :  { %3362 = vrot.lane.b32.xlu1 %v3361_v52, %s7086_s9 }
0x4b02   :  { %v3363_v42 = vpop.permute.xlu1 %3362 }
0x4b03   :  { %6514 = vmatmul.mubr.msk.f32.vlgmr.msra.gmra.mxu0 %vm256_vm6, %v3363_v42 }
0x4b04   :  { %6522 = vmatpush3.msra.mxu0 %v7489_v36  ;;  %6523 = vmatprep.mubr.msk.f32.mxu0 %vm7084_vm5, %v8378_v22 }
0x4b05   :  { %6531 = vmatprep.subr.mxu0 %v8378_v22 }
0x4bc3   :  { %v3432_v43 = vpop.f32.mrf.mxu0 }
0x4bc4   :  { %v3437_v38 = vrot.slane %v3432_v43, 2 }
0x4bc5   :  { %v6515_v44 = vpop.f32.mrf.mxu0 }
0x4bc6   :  { %v3439_v46 = vadd.f32 %v3437_v38, %v7630_v39 }
0x4bc8   :  { %v6160_v62 = vmul.f32 -1.442695, %v3439_v46 }
0x4bca   :  { %6887 = vpow2.f32 %v6160_v62 }
0x4bcb   :  { %6889 = vtanh.f32 %v3439_v46 }
0x4bd7   :  { %v6888_v57 = vpop.eup %6887 }
0x4bd8   :  { %v3443_v1 = vadd.f32 1.0, %v6888_v57  ;;  %v6890_v5 = vpop.eup %6889 }
0x4bda   :  { %6891 = vrcp.f32 %v3443_v1 }
0x4be7   :  { %v6892_v7 = vpop.eup %6891 }
0x4be8   :  { %v3447_v9 = vsel %vm7159_vm4, %v6890_v5, %v6892_v7 }
0x4be9   :  { %3453 = vrot.lane.b32.xlu0 %v3447_v9, %s7081_s28  ;;  %v3451_v33 = vmul.f32 %v3449_v17, %v3447_v9 }
0x4c5b   :  { %v3454_v11 = vpop.permute.xlu0 %3453 }
0x4c5c   :  { %v3456_v15 = vmul.f32 %v3454_v11, %v3447_v9 }
0x4c5e   :  { %3458 = vrot.lane.b32.xlu1 %v3456_v15, %s7082_s29 }
0x4cd0   :  { %v3459_v39 = vpop.permute.xlu1 %3458 }
0x4cd1   :  { %v3461_v54 = vadd.f32 %v3459_v39, %v3451_v33 }
0x4cd3   :  { %6893 = vtanh.f32 %v3461_v54  ;;  %v3567_v37 = vrot.slane %v3461_v54, 6 }
0x4ce0   :  { %v6894_v27 = vpop.eup %6893 }
0x4ce1   :  { %3464 = vrot.lane.b32.xlu0 %v6894_v27, %s7085_s8 }
0x4d53   :  { %v3465_v18 = vpop.permute.xlu0 %3464 }
0x4d54   :  { %v7683_v0 = vmul.f32 %v3465_v18, %v3447_v9 }
0x4d56   :  { %v3482_v19 = vrot.slane %v7683_v0, 6 }
0x4d58   :  { %3483 = vrot.lane.b32.xlu1 %v3482_v19, %s7086_s9 }
0x4dca   :  { %v3484_v29 = vpop.permute.xlu1 %3483 }
0x4dcb   :  { %6519 = vmatmul.mubr.msk.f32.vlgmr.msra.gmra.mxu1 %vm256_vm6, %v3484_v29 }
0x4dcc   :  { %6527 = vmatpush3.msra.mxu1 %v7489_v36  ;;  %6528 = vmatprep.mubr.msk.f32.mxu1 %vm7084_vm5, %v8378_v22 }
0x4dcd   :  { %6536 = vmatprep.subr.mxu1 %v8378_v22 }
0x4e8b   :  { %v3553_v34 = vpop.f32.mrf.mxu1 }
0x4e8c   :  { %v3557_v35 = vadd.f32 %v3553_v34, %v7694_v23 }
0x4e8d   :  { %v6520_v40 = vpop.f32.mrf.mxu1 }
0x4e8e   :  { %v6162_v52 = vmul.f32 -1.442695, %v3557_v35 }
0x4e90   :  { %6895 = vpow2.f32 %v6162_v52 }
0x4e91   :  { %6897 = vtanh.f32 %v3557_v35 }
0x4e9d   :  { %v6896_v42 = vpop.eup %6895 }
0x4e9e   :  { %v3561_v43 = vadd.f32 1.0, %v6896_v42  ;;  %v6898_v38 = vpop.eup %6897 }
0x4ea0   :  { %6899 = vrcp.f32 %v3561_v43 }
0x4ead   :  { %v6900_v44 = vpop.eup %6899 }
0x4eae   :  { %v3565_v46 = vsel %vm7159_vm4, %v6898_v38, %v6900_v44 }
0x4eaf   :  { %3571 = vrot.lane.b32.xlu0 %v3565_v46, %s7081_s28  ;;  %v3569_v57 = vmul.f32 %v3567_v37, %v3565_v46 }
0x4f21   :  { %v3572_v62 = vpop.permute.xlu0 %3571 }
0x4f22   :  { %v3574_v56 = vmul.f32 %v3572_v62, %v3565_v46 }
0x4f24   :  { %3576 = vrot.lane.b32.xlu1 %v3574_v56, %s7082_s29 }
0x4f96   :  { %v3577_v1 = vpop.permute.xlu1 %3576 }
0x4f97   :  { %v3579_v5 = vadd.f32 %v3577_v1, %v3569_v57 }
0x4f99   :  { %6901 = vtanh.f32 %v3579_v5  ;;  %v3685_v42 = vrot.slane %v3579_v5, 6 }
0x4fa6   :  { %v6902_v7 = vpop.eup %6901 }
0x4fa7   :  { %3582 = vrot.lane.b32.xlu0 %v6902_v7, %s7085_s8 }
0x5019   :  { %v3583_v9 = vpop.permute.xlu0 %3582 }
0x501a   :  { %v7702_v11 = vmul.f32 %v3583_v9, %v3565_v46 }
0x501c   :  { %3598 = vrot.lane.b32.xlu1 %v7702_v11, %s7086_s9 }
0x508e   :  { %v3599_v15 = vpop.permute.xlu1 %3598 }
0x508f   :  { %6524 = vmatmul.mubr.msk.f32.vlgmr.msra.gmra.mxu0 %vm256_vm6, %v3599_v15 }
0x5090   :  { %6532 = vmatpush3.msra.mxu0 %v7489_v36  ;;  %6533 = vmatprep.mubr.msk.f32.mxu0 %vm7084_vm5, %v8378_v22 }
0x5091   :  { %6541 = vmatprep.subr.mxu0 %v8378_v22 }
0x514f   :  { %v3668_v17 = vpop.f32.mrf.mxu0 }
0x5150   :  { %v3673_v33 = vrot.slane %v3668_v17, 6 }
0x5151   :  { %v6525_v39 = vpop.f32.mrf.mxu0 }
0x5152   :  { %v3675_v54 = vadd.f32 %v3673_v33, %v7694_v23 }
0x5154   :  { %v6164_v27 = vmul.f32 -1.442695, %v3675_v54 }
0x5156   :  { %6903 = vpow2.f32 %v6164_v27 }
0x5157   :  { %6905 = vtanh.f32 %v3675_v54 }
0x5163   :  { %v6904_v18 = vpop.eup %6903 }
0x5164   :  { %v3679_v19 = vadd.f32 1.0, %v6904_v18  ;;  %v6906_v29 = vpop.eup %6905 }
0x5166   :  { %6907 = vrcp.f32 %v3679_v19 }
0x5173   :  { %v6908_v34 = vpop.eup %6907 }
0x5174   :  { %v3683_v35 = vsel %vm7159_vm4, %v6906_v29, %v6908_v34 }
0x5175   :  { %3689 = vrot.lane.b32.xlu0 %v3683_v35, %s7081_s28  ;;  %v3687_v43 = vmul.f32 %v3685_v42, %v3683_v35 }
0x51e7   :  { %v3690_v40 = vpop.permute.xlu0 %3689 }
0x51e8   :  { %v3692_v52 = vmul.f32 %v3690_v40, %v3683_v35 }
0x51ea   :  { %3694 = vrot.lane.b32.xlu1 %v3692_v52, %s7082_s29 }
0x525c   :  { %v3695_v38 = vpop.permute.xlu1 %3694 }
0x525d   :  { %v3697_v44 = vadd.f32 %v3695_v38, %v3687_v43 }
0x525f   :  { %6909 = vtanh.f32 %v3697_v44  ;;  %v3805_v29 = vrot.slane %v3697_v44, 6 }
0x526c   :  { %v6910_v46 = vpop.eup %6909 }
0x526d   :  { %3700 = vrot.lane.b32.xlu0 %v6910_v46, %s7085_s8 }
0x52df   :  { %v3701_v62 = vpop.permute.xlu0 %3700 }
0x52e0   :  { %v7717_v56 = vmul.f32 %v3701_v62, %v3683_v35 }
0x52e2   :  { %v3717_v37 = vrot.slane %v7717_v56, 2 }
0x52e4   :  { %3718 = vrot.lane.b32.xlu1 %v3717_v37, %s7086_s9 }
0x5356   :  { %v3719_v57 = vpop.permute.xlu1 %3718 }
0x5357   :  { %6529 = vmatmul.mubr.msk.f32.vlgmr.msra.gmra.mxu1 %vm256_vm6, %v3719_v57 }
0x5358   :  { %6537 = vmatpush3.msra.mxu1 %v7489_v36  ;;  %6538 = vmatprep.mubr.msk.f32.mxu1 %vm7084_vm5, %v8378_v22 }
0x5359   :  { %6546 = vmatprep.subr.mxu1 %v8378_v22 }
0x5417   :  { %v3788_v1 = vpop.f32.mrf.mxu1 }
0x5418   :  { %v3793_v5 = vrot.slane %v3788_v1, 4 }
0x5419   :  { %v6530_v7 = vpop.f32.mrf.mxu1 }
0x541a   :  { %v3795_v9 = vadd.f32 %v3793_v5, %v7694_v23 }
0x541c   :  { %v6166_v15 = vmul.f32 -1.442695, %v3795_v9 }
0x541e   :  { %6911 = vpow2.f32 %v6166_v15 }
0x541f   :  { %6913 = vtanh.f32 %v3795_v9 }
0x542b   :  { %v6912_v17 = vpop.eup %6911 }
0x542c   :  { %v3799_v33 = vadd.f32 1.0, %v6912_v17  ;;  %v6914_v39 = vpop.eup %6913 }
0x542e   :  { %6915 = vrcp.f32 %v3799_v33 }
0x543b   :  { %v6916_v54 = vpop.eup %6915 }
0x543c   :  { %v3803_v27 = vsel %vm7159_vm4, %v6914_v39, %v6916_v54 }
0x543d   :  { %3809 = vrot.lane.b32.xlu0 %v3803_v27, %s7081_s28  ;;  %v3807_v34 = vmul.f32 %v3805_v29, %v3803_v27 }
0x54af   :  { %v3810_v18 = vpop.permute.xlu0 %3809 }
0x54b0   :  { %v3812_v19 = vmul.f32 %v3810_v18, %v3803_v27 }
0x54b2   :  { %3814 = vrot.lane.b32.xlu1 %v3812_v19, %s7082_s29 }
0x5524   :  { %v3815_v35 = vpop.permute.xlu1 %3814 }
0x5525   :  { %v3817_v40 = vadd.f32 %v3815_v35, %v3807_v34 }
0x5527   :  { %6917 = vtanh.f32 %v3817_v40  ;;  %v3925_v39 = vrot.slane %v3817_v40, 6  ;;  %v7755_v40 = vld [vmem:[%s8372_s2] sm:$0xff]  ;;  %s7088_s2 = smov 120  }
0x5534   :  { %v6918_v52 = vpop.eup %6917 }
0x5535   :  { %3820 = vrot.lane.b32.xlu0 %v6918_v52, %s7085_s8  ;;  %v7764_v52 = vld [vmem:[%s8373_s3] ss:$0 sm:$0xff]  ;;  %s7089_s3 = smov 24  }
0x55a7   :  { %v3821_v42 = vpop.permute.xlu0 %3820 }
0x55a8   :  { %v7732_v43 = vmul.f32 %v3821_v42, %v3803_v27  ;;  %v7768_v42 = vadd.f32 %v7764_v52, %v7341_v59 }
0x55aa   :  { %v3837_v38 = vrot.slane %v7732_v43, 4 }
0x55ac   :  { %3838 = vrot.lane.b32.xlu1 %v3837_v38, %s7086_s9 }
0x561e   :  { %v3839_v46 = vpop.permute.xlu1 %3838 }
0x561f   :  { %6534 = vmatmul.mubr.msk.f32.vlgmr.msra.gmra.mxu0 %vm256_vm6, %v3839_v46 }
0x5620   :  { %6542 = vmatpush3.msra.mxu0 %v7489_v36  ;;  %6543 = vmatprep.mubr.msk.f32.mxu0 %vm7084_vm5, %v8378_v22 }
0x5621   :  { %6551 = vmatprep.subr.mxu0 %v8378_v22 }
0x56df   :  { %v3908_v44 = vpop.f32.mrf.mxu0 }
0x56e0   :  { %v3913_v62 = vrot.slane %v3908_v44, 2 }
0x56e1   :  { %v6535_v37 = vpop.f32.mrf.mxu0 }
0x56e2   :  { %v3915_v57 = vadd.f32 %v3913_v62, %v7694_v23 }
0x56e4   :  { %v6168_v1 = vmul.f32 -1.442695, %v3915_v57 }
0x56e6   :  { %6919 = vpow2.f32 %v6168_v1 }
0x56e7   :  { %6921 = vtanh.f32 %v3915_v57 }
0x56f3   :  { %v6920_v5 = vpop.eup %6919 }
0x56f4   :  { %v3919_v7 = vadd.f32 1.0, %v6920_v5  ;;  %v6922_v9 = vpop.eup %6921 }
0x56f6   :  { %6923 = vrcp.f32 %v3919_v7 }
0x5703   :  { %v6924_v15 = vpop.eup %6923 }
0x5704   :  { %v3923_v36 = vsel %vm7159_vm4, %v6922_v9, %v6924_v15 }
0x5705   :  { %3929 = vrot.lane.b32.xlu0 %v3923_v36, %s7081_s28  ;;  %v3927_v54 = vmul.f32 %v3925_v39, %v3923_v36 }
0x5777   :  { %v3930_v17 = vpop.permute.xlu0 %3929 }
0x5778   :  { %v3932_v33 = vmul.f32 %v3930_v17, %v3923_v36 }
0x577a   :  { %3934 = vrot.lane.b32.xlu1 %v3932_v33, %s7082_s29 }
0x57ec   :  { %v3935_v23 = vpop.permute.xlu1 %3934 }
0x57ed   :  { %v3937_v27 = vadd.f32 %v3935_v23, %v3927_v54 }
0x57ef   :  { %6925 = vtanh.f32 %v3937_v27  ;;  %v4043_v15 = vrot.slane %v3937_v27, 6 }
0x57fc   :  { %v6926_v18 = vpop.eup %6925 }
0x57fd   :  { %3940 = vrot.lane.b32.xlu0 %v6926_v18, %s7085_s8 }
0x586f   :  { %v3941_v19 = vpop.permute.xlu0 %3940 }
0x5870   :  { %v7747_v29 = vmul.f32 %v3941_v19, %v3923_v36 }
0x5872   :  { %v3958_v34 = vrot.slane %v7747_v29, 6 }
0x5874   :  { %3959 = vrot.lane.b32.xlu1 %v3958_v34, %s7086_s9 }
0x58e6   :  { %v3960_v35 = vpop.permute.xlu1 %3959 }
0x58e7   :  { %6539 = vmatmul.mubr.msk.f32.vlgmr.msra.gmra.mxu1 %vm256_vm6, %v3960_v35 }
0x58e8   :  { %6547 = vmatpush3.msra.mxu1 %v7755_v40  ;;  %6548 = vmatprep.mubr.msk.f32.mxu1 %vm7084_vm5, %v8378_v22 }
0x58e9   :  { %6556 = vmatprep.subr.mxu1 %v8378_v22 }
0x59a7   :  { %v4029_v38 = vpop.f32.mrf.mxu1 }
0x59a8   :  { %v4033_v46 = vadd.f32 %v4029_v38, %v7768_v42 }
0x59a9   :  { %v6540_v44 = vpop.f32.mrf.mxu1 }
0x59aa   :  { %v6170_v62 = vmul.f32 -1.442695, %v4033_v46 }
0x59ac   :  { %6927 = vpow2.f32 %v6170_v62 }
0x59ad   :  { %6929 = vtanh.f32 %v4033_v46 }
0x59b9   :  { %v6928_v37 = vpop.eup %6927 }
0x59ba   :  { %v4037_v57 = vadd.f32 1.0, %v6928_v37  ;;  %v6930_v1 = vpop.eup %6929 }
0x59bc   :  { %6931 = vrcp.f32 %v4037_v57 }
0x59c9   :  { %v6932_v5 = vpop.eup %6931 }
0x59ca   :  { %v4041_v7 = vsel %vm7159_vm4, %v6930_v1, %v6932_v5 }
0x59cb   :  { %4047 = vrot.lane.b32.xlu0 %v4041_v7, %s7081_s28  ;;  %v4045_v36 = vmul.f32 %v4043_v15, %v4041_v7 }
0x5a3d   :  { %v4048_v9 = vpop.permute.xlu0 %4047 }
0x5a3e   :  { %v4050_v59 = vmul.f32 %v4048_v9, %v4041_v7 }
0x5a40   :  { %4052 = vrot.lane.b32.xlu1 %v4050_v59, %s7082_s29 }
0x5ab2   :  { %v4053_v17 = vpop.permute.xlu1 %4052 }
0x5ab3   :  { %v4055_v33 = vadd.f32 %v4053_v17, %v4045_v36 }
0x5ab5   :  { %6933 = vtanh.f32 %v4055_v33 }
0x5ac2   :  { %v6934_v39 = vpop.eup %6933 }
0x5ac3   :  { %4058 = vrot.lane.b32.xlu0 %v6934_v39, %s7085_s8 }
0x5b35   :  { %v4059_v54 = vpop.permute.xlu0 %4058 }
0x5b36   :  { %v7776_v23 = vmul.f32 %v4059_v54, %v4041_v7  ;;  %v4161_v7 = vrot.slane %v4055_v33, 6 }
0x5b38   :  { %4074 = vrot.lane.b32.xlu1 %v7776_v23, %s7086_s9 }
0x5baa   :  { %v4075_v18 = vpop.permute.xlu1 %4074 }
0x5bab   :  { %6544 = vmatmul.mubr.msk.f32.vlgmr.msra.gmra.mxu0 %vm256_vm6, %v4075_v18 }
0x5bac   :  { %6552 = vmatpush3.msra.mxu0 %v7755_v40  ;;  %6553 = vmatprep.mubr.msk.f32.mxu0 %vm7084_vm5, %v8378_v22 }
0x5bad   :  { %6561 = vmatprep.subr.mxu0 %v8378_v22 }
0x5c6b   :  { %v4144_v27 = vpop.f32.mrf.mxu0 }
0x5c6c   :  { %v4149_v19 = vrot.slane %v4144_v27, 6 }
0x5c6d   :  { %v6545_v34 = vpop.f32.mrf.mxu0 }
0x5c6e   :  { %v4151_v35 = vadd.f32 %v4149_v19, %v7768_v42 }
0x5c70   :  { %v6172_v38 = vmul.f32 -1.442695, %v4151_v35 }
0x5c72   :  { %6935 = vpow2.f32 %v6172_v38 }
0x5c73   :  { %6937 = vtanh.f32 %v4151_v35 }
0x5c7f   :  { %v6936_v46 = vpop.eup %6935 }
0x5c80   :  { %v4155_v44 = vadd.f32 1.0, %v6936_v46  ;;  %v6938_v62 = vpop.eup %6937 }
0x5c82   :  { %6939 = vrcp.f32 %v4155_v44 }
0x5c8f   :  { %v6940_v37 = vpop.eup %6939 }
0x5c90   :  { %v4159_v57 = vsel %vm7159_vm4, %v6938_v62, %v6940_v37 }
0x5c91   :  { %4165 = vrot.lane.b32.xlu0 %v4159_v57, %s7081_s28  ;;  %v4163_v9 = vmul.f32 %v4161_v7, %v4159_v57 }
0x5d03   :  { %v4166_v1 = vpop.permute.xlu0 %4165 }
0x5d04   :  { %v4168_v5 = vmul.f32 %v4166_v1, %v4159_v57 }
0x5d06   :  { %4170 = vrot.lane.b32.xlu1 %v4168_v5, %s7082_s29 }
0x5d78   :  { %v4171_v59 = vpop.permute.xlu1 %4170 }
0x5d79   :  { %v4173_v15 = vadd.f32 %v4171_v59, %v4163_v9 }
0x5d7b   :  { %6941 = vtanh.f32 %v4173_v15  ;;  %v4281_v5 = vrot.slane %v4173_v15, 6 }
0x5d88   :  { %v6942_v36 = vpop.eup %6941 }
0x5d89   :  { %4176 = vrot.lane.b32.xlu0 %v6942_v36, %s7085_s8 }
0x5dfb   :  { %v4177_v17 = vpop.permute.xlu0 %4176 }
0x5dfc   :  { %v7791_v39 = vmul.f32 %v4177_v17, %v4159_v57 }
0x5dfe   :  { %v4193_v54 = vrot.slane %v7791_v39, 2 }
0x5e00   :  { %4194 = vrot.lane.b32.xlu1 %v4193_v54, %s7086_s9 }
0x5e72   :  { %v4195_v18 = vpop.permute.xlu1 %4194 }
0x5e73   :  { %6549 = vmatmul.mubr.msk.f32.vlgmr.msra.gmra.mxu1 %vm256_vm6, %v4195_v18 }
0x5e74   :  { %6557 = vmatpush3.msra.mxu1 %v7755_v40  ;;  %6558 = vmatprep.mubr.msk.f32.mxu1 %vm7084_vm5, %v8378_v22 }
0x5e75   :  { %6566 = vmatprep.subr.mxu1 %v8378_v22 }
0x5f33   :  { %v4264_v33 = vpop.f32.mrf.mxu1 }
0x5f34   :  { %v4269_v27 = vrot.slane %v4264_v33, 4 }
0x5f35   :  { %v6550_v19 = vpop.f32.mrf.mxu1 }
0x5f36   :  { %v4271_v34 = vadd.f32 %v4269_v27, %v7768_v42 }
0x5f38   :  { %v6174_v35 = vmul.f32 -1.442695, %v4271_v34 }
0x5f3a   :  { %6943 = vpow2.f32 %v6174_v35 }
0x5f3b   :  { %6945 = vtanh.f32 %v4271_v34 }
0x5f47   :  { %v6944_v38 = vpop.eup %6943 }
0x5f48   :  { %v4275_v46 = vadd.f32 1.0, %v6944_v38  ;;  %v6946_v44 = vpop.eup %6945 }
0x5f4a   :  { %6947 = vrcp.f32 %v4275_v46 }
0x5f57   :  { %v6948_v62 = vpop.eup %6947 }
0x5f58   :  { %v4279_v37 = vsel %vm7159_vm4, %v6946_v44, %v6948_v62 }
0x5f59   :  { %4285 = vrot.lane.b32.xlu0 %v4279_v37, %s7081_s28  ;;  %v4283_v7 = vmul.f32 %v4281_v5, %v4279_v37 }
0x5fcb   :  { %v4286_v57 = vpop.permute.xlu0 %4285 }
0x5fcc   :  { %v4288_v1 = vmul.f32 %v4286_v57, %v4279_v37 }
0x5fce   :  { %4290 = vrot.lane.b32.xlu1 %v4288_v1, %s7082_s29 }
0x6040   :  { %v4291_v9 = vpop.permute.xlu1 %4290 }
0x6041   :  { %v4293_v59 = vadd.f32 %v4291_v9, %v4283_v7 }
0x6043   :  { %6949 = vtanh.f32 %v4293_v59  ;;  %v4401_v5 = vrot.slane %v4293_v59, 6  ;;  %v7832_v59 = vadd.f32 %v7764_v52, %v7339_v58 }
0x6050   :  { %v6950_v36 = vpop.eup %6949 }
0x6051   :  { %4296 = vrot.lane.b32.xlu0 %v6950_v36, %s7085_s8 }
0x60c3   :  { %v4297_v17 = vpop.permute.xlu0 %4296 }
0x60c4   :  { %v7806_v54 = vmul.f32 %v4297_v17, %v4279_v37 }
0x60c6   :  { %v4313_v18 = vrot.slane %v7806_v54, 4 }
0x60c8   :  { %4314 = vrot.lane.b32.xlu1 %v4313_v18, %s7086_s9 }
0x613a   :  { %v4315_v33 = vpop.permute.xlu1 %4314 }
0x613b   :  { %6554 = vmatmul.mubr.msk.f32.vlgmr.msra.gmra.mxu0 %vm256_vm6, %v4315_v33 }
0x613c   :  { %6562 = vmatpush3.msra.mxu0 %v7755_v40  ;;  %6563 = vmatprep.mubr.msk.f32.mxu0 %vm7084_vm5, %v8378_v22 }
0x613d   :  { %6571 = vmatprep.subr.mxu0 %v8378_v22 }
0x61fb   :  { %v4384_v15 = vpop.f32.mrf.mxu0 }
0x61fc   :  { %v4389_v27 = vrot.slane %v4384_v15, 2 }
0x61fd   :  { %v6555_v19 = vpop.f32.mrf.mxu0 }
0x61fe   :  { %v4391_v34 = vadd.f32 %v4389_v27, %v7768_v42 }
0x6200   :  { %v6176_v35 = vmul.f32 -1.442695, %v4391_v34 }
0x6202   :  { %6951 = vpow2.f32 %v6176_v35 }
0x6203   :  { %6953 = vtanh.f32 %v4391_v34 }
0x620f   :  { %v6952_v38 = vpop.eup %6951 }
0x6210   :  { %v4395_v46 = vadd.f32 1.0, %v6952_v38  ;;  %v6954_v44 = vpop.eup %6953 }
0x6212   :  { %6955 = vrcp.f32 %v4395_v46 }
0x621f   :  { %v6956_v62 = vpop.eup %6955 }
0x6220   :  { %v4399_v37 = vsel %vm7159_vm4, %v6954_v44, %v6956_v62 }
0x6221   :  { %4405 = vrot.lane.b32.xlu0 %v4399_v37, %s7081_s28  ;;  %v4403_v7 = vmul.f32 %v4401_v5, %v4399_v37 }
0x6293   :  { %v4406_v57 = vpop.permute.xlu0 %4405 }
0x6294   :  { %v4408_v1 = vmul.f32 %v4406_v57, %v4399_v37 }
0x6296   :  { %4410 = vrot.lane.b32.xlu1 %v4408_v1, %s7082_s29 }
0x6308   :  { %v4411_v42 = vpop.permute.xlu1 %4410 }
0x6309   :  { %v4413_v9 = vadd.f32 %v4411_v42, %v4403_v7 }
0x630b   :  { %6957 = vtanh.f32 %v4413_v9  ;;  %v4517_v1 = vrot.slane %v4413_v9, 6 }
0x6318   :  { %v6958_v36 = vpop.eup %6957 }
0x6319   :  { %4416 = vrot.lane.b32.xlu0 %v6958_v36, %s7085_s8 }
0x638b   :  { %v4417_v17 = vpop.permute.xlu0 %4416 }
0x638c   :  { %v7821_v18 = vmul.f32 %v4417_v17, %v4399_v37 }
0x638e   :  { %v4432_v33 = vrot.slane %v7821_v18, 6 }
0x6390   :  { %4433 = vrot.lane.b32.xlu1 %v4432_v33, %s7086_s9 }
0x6402   :  { %v4434_v15 = vpop.permute.xlu1 %4433 }
0x6403   :  { %6559 = vmatmul.mubr.msk.f32.vlgmr.msra.gmra.mxu1 %vm256_vm6, %v4434_v15 }
0x6404   :  { %6567 = vmatpush3.msra.mxu1 %v7755_v40  ;;  %6568 = vmatprep.mubr.msk.f32.mxu1 %vm7084_vm5, %v8378_v22 }
0x6405   :  { %6576 = vmatprep.subr.mxu1 %v8378_v22 }
0x64c3   :  { %v4503_v27 = vpop.f32.mrf.mxu1 }
0x64c4   :  { %v4507_v19 = vadd.f32 %v4503_v27, %v7832_v59 }
0x64c5   :  { %v6560_v34 = vpop.f32.mrf.mxu1 }
0x64c6   :  { %v6178_v35 = vmul.f32 -1.442695, %v4507_v19 }
0x64c8   :  { %6959 = vpow2.f32 %v6178_v35 }
0x64c9   :  { %6961 = vtanh.f32 %v4507_v19 }
0x64d5   :  { %v6960_v38 = vpop.eup %6959 }
0x64d6   :  { %v4511_v46 = vadd.f32 1.0, %v6960_v38  ;;  %v6962_v44 = vpop.eup %6961 }
0x64d8   :  { %6963 = vrcp.f32 %v4511_v46 }
0x64e5   :  { %v6964_v62 = vpop.eup %6963 }
0x64e6   :  { %v4515_v37 = vsel %vm7159_vm4, %v6962_v44, %v6964_v62 }
0x64e7   :  { %4521 = vrot.lane.b32.xlu0 %v4515_v37, %s7081_s28  ;;  %v4519_v5 = vmul.f32 %v4517_v1, %v4515_v37 }
0x6559   :  { %v4522_v57 = vpop.permute.xlu0 %4521 }
0x655a   :  { %v4524_v58 = vmul.f32 %v4522_v57, %v4515_v37 }
0x655c   :  { %4526 = vrot.lane.b32.xlu1 %v4524_v58, %s7082_s29 }
0x65ce   :  { %v4527_v7 = vpop.permute.xlu1 %4526 }
0x65cf   :  { %v4529_v42 = vadd.f32 %v4527_v7, %v4519_v5 }
0x65d1   :  { %6965 = vtanh.f32 %v4529_v42  ;;  %v4635_v1 = vrot.slane %v4529_v42, 6 }
0x65de   :  { %v6966_v36 = vpop.eup %6965 }
0x65df   :  { %4532 = vrot.lane.b32.xlu0 %v6966_v36, %s7085_s8 }
0x6651   :  { %v4533_v17 = vpop.permute.xlu0 %4532 }
0x6652   :  { %v7840_v33 = vmul.f32 %v4533_v17, %v4515_v37 }
0x6654   :  { %4548 = vrot.lane.b32.xlu1 %v7840_v33, %s7086_s9 }
0x66c6   :  { %v4549_v15 = vpop.permute.xlu1 %4548 }
0x66c7   :  { %6564 = vmatmul.mubr.msk.f32.vlgmr.msra.gmra.mxu0 %vm256_vm6, %v4549_v15 }
0x66c8   :  { %6572 = vmatpush3.msra.mxu0 %v7755_v40  ;;  %6573 = vmatprep.mubr.msk.f32.mxu0 %vm7084_vm5, %v8378_v22 }
0x66c9   :  { %6581 = vmatprep.subr.mxu0 %v8378_v22 }
0x6787   :  { %v4618_v9 = vpop.f32.mrf.mxu0 }
0x6788   :  { %v4623_v27 = vrot.slane %v4618_v9, 6 }
0x6789   :  { %v6565_v19 = vpop.f32.mrf.mxu0 }
0x678a   :  { %v4625_v34 = vadd.f32 %v4623_v27, %v7832_v59 }
0x678c   :  { %v6180_v35 = vmul.f32 -1.442695, %v4625_v34 }
0x678e   :  { %6967 = vpow2.f32 %v6180_v35 }
0x678f   :  { %6969 = vtanh.f32 %v4625_v34 }
0x679b   :  { %v6968_v38 = vpop.eup %6967 }
0x679c   :  { %v4629_v46 = vadd.f32 1.0, %v6968_v38  ;;  %v6970_v44 = vpop.eup %6969 }
0x679e   :  { %6971 = vrcp.f32 %v4629_v46 }
0x67ab   :  { %v6972_v62 = vpop.eup %6971 }
0x67ac   :  { %v4633_v37 = vsel %vm7159_vm4, %v6970_v44, %v6972_v62 }
0x67ad   :  { %4639 = vrot.lane.b32.xlu0 %v4633_v37, %s7081_s28  ;;  %v4637_v5 = vmul.f32 %v4635_v1, %v4633_v37 }
0x681f   :  { %v4640_v57 = vpop.permute.xlu0 %4639 }
0x6820   :  { %v4642_v58 = vmul.f32 %v4640_v57, %v4633_v37 }
0x6822   :  { %4644 = vrot.lane.b32.xlu1 %v4642_v58, %s7082_s29 }
0x6894   :  { %v4645_v7 = vpop.permute.xlu1 %4644 }
0x6895   :  { %v4647_v36 = vadd.f32 %v4645_v7, %v4637_v5 }
0x6897   :  { %6973 = vtanh.f32 %v4647_v36  ;;  %v4755_v7 = vrot.slane %v4647_v36, 6 }
0x68a4   :  { %v6974_v17 = vpop.eup %6973 }
0x68a5   :  { %4650 = vrot.lane.b32.xlu0 %v6974_v17, %s7085_s8 }
0x6917   :  { %v4651_v15 = vpop.permute.xlu0 %4650 }
0x6918   :  { %v7855_v9 = vmul.f32 %v4651_v15, %v4633_v37 }
0x691a   :  { %v4667_v27 = vrot.slane %v7855_v9, 2 }
0x691c   :  { %4668 = vrot.lane.b32.xlu1 %v4667_v27, %s7086_s9 }
0x698e   :  { %v4669_v19 = vpop.permute.xlu1 %4668 }
0x698f   :  { %6569 = vmatmul.mubr.msk.f32.vlgmr.msra.gmra.mxu1 %vm256_vm6, %v4669_v19 }
0x6990   :  { %6577 = vmatpush3.msra.mxu1 %v7755_v40  ;;  %6578 = vmatprep.mubr.msk.f32.mxu1 %vm7084_vm5, %v8378_v22 }
0x6991   :  { %6586 = vmatprep.subr.mxu1 %v8378_v22 }
0x6a4f   :  { %v4738_v42 = vpop.f32.mrf.mxu1 }
0x6a50   :  { %v4743_v34 = vrot.slane %v4738_v42, 4 }
0x6a51   :  { %v6570_v35 = vpop.f32.mrf.mxu1 }
0x6a52   :  { %v4745_v38 = vadd.f32 %v4743_v34, %v7832_v59 }
0x6a54   :  { %v6182_v46 = vmul.f32 -1.442695, %v4745_v38 }
0x6a56   :  { %6975 = vpow2.f32 %v6182_v46 }
0x6a57   :  { %6977 = vtanh.f32 %v4745_v38 }
0x6a63   :  { %v6976_v44 = vpop.eup %6975 }
0x6a64   :  { %v4749_v62 = vadd.f32 1.0, %v6976_v44  ;;  %v6978_v37 = vpop.eup %6977 }
0x6a66   :  { %6979 = vrcp.f32 %v4749_v62 }
0x6a73   :  { %v6980_v57 = vpop.eup %6979 }
0x6a74   :  { %v4753_v58 = vsel %vm7159_vm4, %v6978_v37, %v6980_v57 }
0x6a75   :  { %4759 = vrot.lane.b32.xlu0 %v4753_v58, %s7081_s28  ;;  %v4757_v17 = vmul.f32 %v4755_v7, %v4753_v58 }
0x6ae7   :  { %v4760_v1 = vpop.permute.xlu0 %4759 }
0x6ae8   :  { %v4762_v5 = vmul.f32 %v4760_v1, %v4753_v58 }
0x6aea   :  { %4764 = vrot.lane.b32.xlu1 %v4762_v5, %s7082_s29 }
0x6b5c   :  { %v4765_v15 = vpop.permute.xlu1 %4764 }
0x6b5d   :  { %v4767_v27 = vadd.f32 %v4765_v15, %v4757_v17 }
0x6b5f   :  { %6981 = vtanh.f32 %v4767_v27 }
0x6b6c   :  { %v6982_v19 = vpop.eup %6981 }
0x6b6d   :  { %4770 = vrot.lane.b32.xlu0 %v6982_v19, %s7085_s8  ;;  %v4875_v19 = vrot.slane %v4767_v27, 6  ;;  %v7896_v27 = vadd.f32 %v7764_v52, %v7345_v61 }
0x6bdf   :  { %v4771_v42 = vpop.permute.xlu0 %4770 }
0x6be0   :  { %v7870_v34 = vmul.f32 %v4771_v42, %v4753_v58 }
0x6be2   :  { %v4787_v35 = vrot.slane %v7870_v34, 4 }
0x6be4   :  { %4788 = vrot.lane.b32.xlu1 %v4787_v35, %s7086_s9 }
0x6c56   :  { %v4789_v38 = vpop.permute.xlu1 %4788 }
0x6c57   :  { %6574 = vmatmul.mubr.msk.f32.vlgmr.msra.gmra.mxu0 %vm256_vm6, %v4789_v38 }
0x6c58   :  { %6582 = vmatpush3.msra.mxu0 %v7755_v40  ;;  %6583 = vmatprep.mubr.msk.f32.mxu0 %vm7084_vm5, %v8378_v22 }
0x6c59   :  { %6591 = vmatprep.subr.mxu0 %v8378_v22 }
0x6d17   :  { %v4858_v36 = vpop.f32.mrf.mxu0 }
0x6d18   :  { %v4863_v46 = vrot.slane %v4858_v36, 2 }
0x6d19   :  { %v6575_v44 = vpop.f32.mrf.mxu0 }
0x6d1a   :  { %v4865_v62 = vadd.f32 %v4863_v46, %v7832_v59 }
0x6d1c   :  { %v6184_v37 = vmul.f32 -1.442695, %v4865_v62 }
0x6d1e   :  { %6983 = vpow2.f32 %v6184_v37 }
0x6d1f   :  { %6985 = vtanh.f32 %v4865_v62 }
0x6d2b   :  { %v6984_v57 = vpop.eup %6983 }
0x6d2c   :  { %v4869_v58 = vadd.f32 1.0, %v6984_v57  ;;  %v6986_v1 = vpop.eup %6985 }
0x6d2e   :  { %6987 = vrcp.f32 %v4869_v58 }
0x6d3b   :  { %v6988_v5 = vpop.eup %6987 }
0x6d3c   :  { %v4873_v7 = vsel %vm7159_vm4, %v6986_v1, %v6988_v5 }
0x6d3d   :  { %4879 = vrot.lane.b32.xlu0 %v4873_v7, %s7081_s28  ;;  %v4877_v42 = vmul.f32 %v4875_v19, %v4873_v7 }
0x6daf   :  { %v4880_v17 = vpop.permute.xlu0 %4879 }
0x6db0   :  { %v4882_v15 = vmul.f32 %v4880_v17, %v4873_v7 }
0x6db2   :  { %4884 = vrot.lane.b32.xlu1 %v4882_v15, %s7082_s29 }
0x6e24   :  { %v4885_v59 = vpop.permute.xlu1 %4884 }
0x6e25   :  { %v4887_v35 = vadd.f32 %v4885_v59, %v4877_v42 }
0x6e27   :  { %6989 = vtanh.f32 %v4887_v35  ;;  %v4993_v59 = vrot.slane %v4887_v35, 6 }
0x6e34   :  { %v6990_v38 = vpop.eup %6989 }
0x6e35   :  { %4890 = vrot.lane.b32.xlu0 %v6990_v38, %s7085_s8 }
0x6ea7   :  { %v4891_v36 = vpop.permute.xlu0 %4890 }
0x6ea8   :  { %v7885_v46 = vmul.f32 %v4891_v36, %v4873_v7 }
0x6eaa   :  { %v4908_v44 = vrot.slane %v7885_v46, 6 }
0x6eac   :  { %4909 = vrot.lane.b32.xlu1 %v4908_v44, %s7086_s9 }
0x6f1e   :  { %v4910_v62 = vpop.permute.xlu1 %4909 }
0x6f1f   :  { %6579 = vmatmul.mubr.msk.f32.vlgmr.msra.gmra.mxu1 %vm256_vm6, %v4910_v62 }
0x6f20   :  { %6587 = vmatpush3.msra.mxu1 %v7755_v40  ;;  %6588 = vmatprep.mubr.msk.f32.mxu1 %vm7084_vm5, %v8378_v22 }
0x6f21   :  { %6596 = vmatprep.subr.mxu1 %v8378_v22 }
0x6fdf   :  { %v4979_v37 = vpop.f32.mrf.mxu1 }
0x6fe0   :  { %v4983_v57 = vadd.f32 %v4979_v37, %v7896_v27 }
0x6fe1   :  { %v6580_v58 = vpop.f32.mrf.mxu1 }
0x6fe2   :  { %v6186_v1 = vmul.f32 -1.442695, %v4983_v57 }
0x6fe4   :  { %6991 = vpow2.f32 %v6186_v1 }
0x6fe5   :  { %6993 = vtanh.f32 %v4983_v57 }
0x6ff1   :  { %v6992_v5 = vpop.eup %6991 }
0x6ff2   :  { %v4987_v7 = vadd.f32 1.0, %v6992_v5  ;;  %v6994_v17 = vpop.eup %6993 }
0x6ff4   :  { %6995 = vrcp.f32 %v4987_v7 }
0x7001   :  { %v6996_v15 = vpop.eup %6995 }
0x7002   :  { %v4991_v19 = vsel %vm7159_vm4, %v6994_v17, %v6996_v15 }
0x7003   :  { %4997 = vrot.lane.b32.xlu0 %v4991_v19, %s7081_s28  ;;  %v4995_v38 = vmul.f32 %v4993_v59, %v4991_v19 }
0x7075   :  { %v4998_v42 = vpop.permute.xlu0 %4997 }
0x7076   :  { %v5000_v61 = vmul.f32 %v4998_v42, %v4991_v19 }
0x7078   :  { %5002 = vrot.lane.b32.xlu1 %v5000_v61, %s7082_s29 }
0x70ea   :  { %v5003_v36 = vpop.permute.xlu1 %5002 }
0x70eb   :  { %v5005_v44 = vadd.f32 %v5003_v36, %v4995_v38 }
0x70ed   :  { %6997 = vtanh.f32 %v5005_v44 }
0x70fa   :  { %v6998_v62 = vpop.eup %6997 }
0x70fb   :  { %5008 = vrot.lane.b32.xlu0 %v6998_v62, %s7085_s8  ;;  %v5111_v62 = vrot.slane %v5005_v44, 6 }
0x716d   :  { %v5009_v37 = vpop.permute.xlu0 %5008 }
0x716e   :  { %v7904_v57 = vmul.f32 %v5009_v37, %v4991_v19 }
0x7170   :  { %5024 = vrot.lane.b32.xlu1 %v7904_v57, %s7086_s9 }
0x71e2   :  { %v5025_v58 = vpop.permute.xlu1 %5024 }
0x71e3   :  { %6584 = vmatmul.mubr.msk.f32.vlgmr.msra.gmra.mxu0 %vm256_vm6, %v5025_v58 }
0x71e4   :  { %6592 = vmatpush3.msra.mxu0 %v7755_v40  ;;  %6593 = vmatprep.mubr.msk.f32.mxu0 %vm7084_vm5, %v8378_v22 }
0x71e5   :  { %6601 = vmatprep.subr.mxu0 %v8378_v22 }
0x72a3   :  { %v5094_v35 = vpop.f32.mrf.mxu0 }
0x72a4   :  { %v5099_v1 = vrot.slane %v5094_v35, 6 }
0x72a5   :  { %v6585_v5 = vpop.f32.mrf.mxu0 }
0x72a6   :  { %v5101_v7 = vadd.f32 %v5099_v1, %v7896_v27 }
0x72a8   :  { %v6188_v17 = vmul.f32 -1.442695, %v5101_v7 }
0x72aa   :  { %6999 = vpow2.f32 %v6188_v17 }
0x72ab   :  { %7001 = vtanh.f32 %v5101_v7 }
0x72b7   :  { %v7000_v15 = vpop.eup %6999 }
0x72b8   :  { %v5105_v19 = vadd.f32 1.0, %v7000_v15  ;;  %v7002_v42 = vpop.eup %7001 }
0x72ba   :  { %7003 = vrcp.f32 %v5105_v19 }
0x72c7   :  { %v7004_v61 = vpop.eup %7003 }
0x72c8   :  { %v5109_v59 = vsel %vm7159_vm4, %v7002_v42, %v7004_v61 }
0x72c9   :  { %5115 = vrot.lane.b32.xlu0 %v5109_v59, %s7081_s28  ;;  %v5113_v37 = vmul.f32 %v5111_v62, %v5109_v59 }
0x733b   :  { %v5116_v38 = vpop.permute.xlu0 %5115 }
0x733c   :  { %v5118_v36 = vmul.f32 %v5116_v38, %v5109_v59 }
0x733e   :  { %5120 = vrot.lane.b32.xlu1 %v5118_v36, %s7082_s29 }
0x73b0   :  { %v5121_v58 = vpop.permute.xlu1 %5120 }
0x73b1   :  { %v5123_v35 = vadd.f32 %v5121_v58, %v5113_v37 }
0x73b3   :  { %7005 = vtanh.f32 %v5123_v35 }
0x73c0   :  { %v7006_v1 = vpop.eup %7005 }
0x73c1   :  { %5126 = vrot.lane.b32.xlu0 %v7006_v1, %s7085_s8 }
0x7433   :  { %v5127_v5 = vpop.permute.xlu0 %5126 }
0x7434   :  { %v7919_v7 = vmul.f32 %v5127_v5, %v5109_v59 }
0x7436   :  { %v5143_v17 = vrot.slane %v7919_v7, 2 }
0x7438   :  { %5144 = vrot.lane.b32.xlu1 %v5143_v17, %s7086_s9  ;;  %v5231_v17 = vrot.slane %v5123_v35, 6 }
0x74aa   :  { %v5145_v15 = vpop.permute.xlu1 %5144 }
0x74ab   :  { %6589 = vmatmul.mubr.msk.f32.vlgmr.msra.gmra.mxu1 %vm256_vm6, %v5145_v15 }
0x74ac   :  { %6597 = vmatpush3.msra.mxu1 %v7755_v40  ;;  %6598 = vmatprep.mubr.msk.f32.mxu1 %vm7084_vm5, %v8378_v22 }
0x74ad   :  { %6606 = vmatprep.subr.mxu1 %v8378_v22 }
0x756b   :  { %v5214_v44 = vpop.f32.mrf.mxu1 }
0x756c   :  { %v5219_v19 = vrot.slane %v5214_v44, 4 }
0x756d   :  { %v6590_v42 = vpop.f32.mrf.mxu1 }
0x756e   :  { %v5221_v61 = vadd.f32 %v5219_v19, %v7896_v27 }
0x7570   :  { %v6190_v59 = vmul.f32 -1.442695, %v5221_v61 }
0x7572   :  { %7007 = vpow2.f32 %v6190_v59 }
0x7573   :  { %7009 = vtanh.f32 %v5221_v61 }
0x757f   :  { %v7008_v38 = vpop.eup %7007 }
0x7580   :  { %v5225_v36 = vadd.f32 1.0, %v7008_v38  ;;  %v7010_v62 = vpop.eup %7009 }
0x7582   :  { %7011 = vrcp.f32 %v5225_v36 }
0x758f   :  { %v7012_v37 = vpop.eup %7011 }
0x7590   :  { %v5229_v58 = vsel %vm7159_vm4, %v7010_v62, %v7012_v37 }
0x7591   :  { %5235 = vrot.lane.b32.xlu0 %v5229_v58, %s7081_s28  ;;  %v5233_v15 = vmul.f32 %v5231_v17, %v5229_v58 }
0x7603   :  { %v5236_v1 = vpop.permute.xlu0 %5235 }
0x7604   :  { %v5238_v5 = vmul.f32 %v5236_v1, %v5229_v58 }
0x7606   :  { %5240 = vrot.lane.b32.xlu1 %v5238_v5, %s7082_s29 }
0x7678   :  { %v5241_v44 = vpop.permute.xlu1 %5240 }
0x7679   :  { %v5243_v19 = vadd.f32 %v5241_v44, %v5233_v15 }
0x767b   :  { %7013 = vtanh.f32 %v5243_v19 }
0x7688   :  { %v7014_v42 = vpop.eup %7013 }
0x7689   :  { %5246 = vrot.lane.b32.xlu0 %v7014_v42, %s7085_s8 }
0x76fb   :  { %v5247_v61 = vpop.permute.xlu0 %5246 }
0x76fc   :  { %v7934_v59 = vmul.f32 %v5247_v61, %v5229_v58 }
0x76fe   :  { %v5263_v38 = vrot.slane %v7934_v59, 4 }
0x7700   :  { %5264 = vrot.lane.b32.xlu1 %v5263_v38, %s7086_s9 }
0x7772   :  { %v5265_v36 = vpop.permute.xlu1 %5264 }
0x7773   :  { %6594 = vmatmul.mubr.msk.f32.vlgmr.msra.gmra.mxu0 %vm256_vm6, %v5265_v36  ;;  %v5351_v36 = vrot.slane %v5243_v19, 6  ;;  %v7959_v19 = vadd.f32 %v7764_v52, %v7343_v60 }
0x7774   :  { %6602 = vmatpush3.msra.mxu0 %v7755_v40  ;;  %6603 = vmatprep.mubr.msk.f32.mxu0 %vm7084_vm5, %v8378_v22 }
0x7775   :  { %6611 = vmatprep.subr.mxu0 %v8378_v22 }
0x7833   :  { %v5334_v35 = vpop.f32.mrf.mxu0 }
0x7834   :  { %v5339_v62 = vrot.slane %v5334_v35, 2 }
0x7835   :  { %v6595_v37 = vpop.f32.mrf.mxu0 }
0x7836   :  { %v5341_v58 = vadd.f32 %v5339_v62, %v7896_v27 }
0x7838   :  { %v6192_v1 = vmul.f32 -1.442695, %v5341_v58 }
0x783a   :  { %7015 = vpow2.f32 %v6192_v1 }
0x783b   :  { %7017 = vtanh.f32 %v5341_v58 }
0x7847   :  { %v7016_v5 = vpop.eup %7015 }
0x7848   :  { %v5345_v17 = vadd.f32 1.0, %v7016_v5  ;;  %v7018_v15 = vpop.eup %7017 }
0x784a   :  { %7019 = vrcp.f32 %v5345_v17 }
0x7857   :  { %v7020_v44 = vpop.eup %7019 }
0x7858   :  { %v5349_v42 = vsel %vm7159_vm4, %v7018_v15, %v7020_v44 }
0x7859   :  { %5355 = vrot.lane.b32.xlu0 %v5349_v42, %s7081_s28  ;;  %v5353_v35 = vmul.f32 %v5351_v36, %v5349_v42 }
0x78cb   :  { %v5356_v61 = vpop.permute.xlu0 %5355 }
0x78cc   :  { %v5358_v38 = vmul.f32 %v5356_v61, %v5349_v42 }
0x78ce   :  { %5360 = vrot.lane.b32.xlu1 %v5358_v38, %s7082_s29 }
0x7940   :  { %v5361_v27 = vpop.permute.xlu1 %5360 }
0x7941   :  { %v5363_v62 = vadd.f32 %v5361_v27, %v5353_v35 }
0x7943   :  { %7021 = vtanh.f32 %v5363_v62  ;;  %v5469_v52 = vrot.slane %v5363_v62, 6 }
0x7950   :  { %v7022_v37 = vpop.eup %7021 }
0x7951   :  { %5366 = vrot.lane.b32.xlu0 %v7022_v37, %s7085_s8 }
0x79c3   :  { %v5367_v58 = vpop.permute.xlu0 %5366 }
0x79c4   :  { %v7949_v1 = vmul.f32 %v5367_v58, %v5349_v42 }
0x79c6   :  { %v5384_v5 = vrot.slane %v7949_v1, 6 }
0x79c8   :  { %5385 = vrot.lane.b32.xlu1 %v5384_v5, %s7086_s9 }
0x7a3a   :  { %v5386_v17 = vpop.permute.xlu1 %5385 }
0x7a3b   :  { %6599 = vmatmul.mubr.msk.f32.vlgmr.msra.gmra.mxu1 %vm256_vm6, %v5386_v17 }
0x7a3c   :  { %6607 = vmatpush3.msra.mxu1 %v7755_v40  ;;  %6608 = vmatprep.mubr.msk.f32.mxu1 %vm7084_vm5, %v8378_v22 }
0x7afb   :  { %v5455_v15 = vpop.f32.mrf.mxu1 }
0x7afc   :  { %v5459_v44 = vadd.f32 %v5455_v15, %v7959_v19 }
0x7afd   :  { %v6600_v42 = vpop.f32.mrf.mxu1 }
0x7afe   :  { %v6194_v61 = vmul.f32 -1.442695, %v5459_v44 }
0x7b00   :  { %7023 = vpow2.f32 %v6194_v61 }
0x7b01   :  { %7025 = vtanh.f32 %v5459_v44 }
0x7b0d   :  { %v7024_v38 = vpop.eup %7023 }
0x7b0e   :  { %v5463_v36 = vadd.f32 1.0, %v7024_v38  ;;  %v7026_v35 = vpop.eup %7025 }
0x7b10   :  { %7027 = vrcp.f32 %v5463_v36 }
0x7b1d   :  { %v7028_v27 = vpop.eup %7027 }
0x7b1e   :  { %v5467_v37 = vsel %vm7159_vm4, %v7026_v35, %v7028_v27 }
0x7b1f   :  { %5473 = vrot.lane.b32.xlu0 %v5467_v37, %s7081_s28  ;;  %v5471_v5 = vmul.f32 %v5469_v52, %v5467_v37 }
0x7b91   :  { %v5474_v58 = vpop.permute.xlu0 %5473 }
0x7b92   :  { %v5476_v60 = vmul.f32 %v5474_v58, %v5467_v37 }
0x7b94   :  { %5478 = vrot.lane.b32.xlu1 %v5476_v60, %s7082_s29 }
0x7c06   :  { %v5479_v17 = vpop.permute.xlu1 %5478 }
0x7c07   :  { %v5481_v15 = vadd.f32 %v5479_v17, %v5471_v5 }
0x7c09   :  { %7029 = vtanh.f32 %v5481_v15 }
0x7c16   :  { %v7030_v42 = vpop.eup %7029 }
0x7c17   :  { %5484 = vrot.lane.b32.xlu0 %v7030_v42, %s7085_s8 }
0x7c89   :  { %v5485_v44 = vpop.permute.xlu0 %5484 }
0x7c8a   :  { %v7967_v61 = vmul.f32 %v5485_v44, %v5467_v37  ;;  %v5587_v44 = vrot.slane %v5481_v15, 6 }
0x7c8c   :  { %5500 = vrot.lane.b32.xlu1 %v7967_v61, %s7086_s9 }
0x7cfe   :  { %v5501_v38 = vpop.permute.xlu1 %5500 }
0x7cff   :  { %6604 = vmatmul.mubr.msk.f32.vlgmr.msra.gmra.mxu0 %vm256_vm6, %v5501_v38 }
0x7d00   :  { %6612 = vmatpush3.msra.mxu0 %v7755_v40  ;;  %6613 = vmatprep.mubr.msk.f32.mxu0 %vm7084_vm5, %v8378_v22 }
0x7d01   :  { %6616 = vmatprep.subr.mxu0 %v8378_v22 }
0x7dbf   :  { %v5570_v62 = vpop.f32.mrf.mxu0 }
0x7dc0   :  { %v5575_v36 = vrot.slane %v5570_v62, 6 }
0x7dc1   :  { %v6605_v35 = vpop.f32.mrf.mxu0 }
0x7dc2   :  { %v5577_v27 = vadd.f32 %v5575_v36, %v7959_v19 }
0x7dc4   :  { %v6196_v37 = vmul.f32 -1.442695, %v5577_v27 }
0x7dc6   :  { %7031 = vpow2.f32 %v6196_v37 }
0x7dc7   :  { %7033 = vtanh.f32 %v5577_v27 }
0x7dd3   :  { %v7032_v58 = vpop.eup %7031 }
0x7dd4   :  { %v5581_v60 = vadd.f32 1.0, %v7032_v58  ;;  %v7034_v52 = vpop.eup %7033 }
0x7dd6   :  { %7035 = vrcp.f32 %v5581_v60 }
0x7de3   :  { %v7036_v5 = vpop.eup %7035 }
0x7de4   :  { %v5585_v40 = vsel %vm7159_vm4, %v7034_v52, %v7036_v5 }
0x7de5   :  { %5591 = vrot.lane.b32.xlu0 %v5585_v40, %s7081_s28  ;;  %v5589_v38 = vmul.f32 %v5587_v44, %v5585_v40 }
0x7e57   :  { %v5592_v17 = vpop.permute.xlu0 %5591 }
0x7e58   :  { %v5594_v42 = vmul.f32 %v5592_v17, %v5585_v40 }
0x7e5a   :  { %5596 = vrot.lane.b32.xlu1 %v5594_v42, %s7082_s29 }
0x7ecc   :  { %v5597_v62 = vpop.permute.xlu1 %5596 }
0x7ecd   :  { %v5599_v36 = vadd.f32 %v5597_v62, %v5589_v38 }
0x7ecf   :  { %7037 = vtanh.f32 %v5599_v36 }
0x7edc   :  { %v7038_v35 = vpop.eup %7037 }
0x7edd   :  { %5602 = vrot.lane.b32.xlu0 %v7038_v35, %s7085_s8 }
0x7f4f   :  { %v5603_v27 = vpop.permute.xlu0 %5602 }
0x7f50   :  { %v7982_v37 = vmul.f32 %v5603_v27, %v5585_v40 }
0x7f52   :  { %v5619_v58 = vrot.slane %v7982_v37, 2 }
0x7f54   :  { %5620 = vrot.lane.b32.xlu1 %v5619_v58, %s7086_s9 }
0x7fc6   :  { %v5621_v60 = vpop.permute.xlu1 %5620 }
0x7fc7   :  { %6609 = vmatmul.mubr.msk.f32.vlgmr.msra.gmra.mxu1 %vm256_vm6, %v5621_v60  ;;  %v5707_v60 = vrot.slane %v5599_v36, 6 }
0x8087   :  { %v5690_v52 = vpop.f32.mrf.mxu1 }
0x8088   :  { %v5695_v5 = vrot.slane %v5690_v52, 4 }
0x8089   :  { %v6610_v15 = vpop.f32.mrf.mxu1 }
0x808a   :  { %v5697_v17 = vadd.f32 %v5695_v5, %v7959_v19 }
0x808c   :  { %v6198_v42 = vmul.f32 -1.442695, %v5697_v17 }
0x808e   :  { %7039 = vpow2.f32 %v6198_v42 }
0x808f   :  { %7041 = vtanh.f32 %v5697_v17 }
0x809b   :  { %v7040_v44 = vpop.eup %7039 }
0x809c   :  { %v5701_v38 = vadd.f32 1.0, %v7040_v44  ;;  %v7042_v40 = vpop.eup %7041 }
0x809e   :  { %7043 = vrcp.f32 %v5701_v38 }
0x80ab   :  { %v7044_v62 = vpop.eup %7043 }
0x80ac   :  { %v5705_v35 = vsel %vm7159_vm4, %v7042_v40, %v7044_v62 }
0x80ad   :  { %5711 = vrot.lane.b32.xlu0 %v5705_v35, %s7081_s28  ;;  %v5709_v52 = vmul.f32 %v5707_v60, %v5705_v35 }
0x811f   :  { %v5712_v27 = vpop.permute.xlu0 %5711 }
0x8120   :  { %v5714_v58 = vmul.f32 %v5712_v27, %v5705_v35 }
0x8122   :  { %5716 = vrot.lane.b32.xlu1 %v5714_v58, %s7082_s29 }
0x8194   :  { %v5717_v5 = vpop.permute.xlu1 %5716 }
0x8195   :  { %v7992_v15 = vadd.f32 %v5717_v5, %v5709_v52  ;;  %v7087_v5 = vmov 1983009808  }
0x8197   :  { %7045 = vtanh.f32 %v7992_v15 }
0x81a4   :  { %v7046_v17 = vpop.eup %7045 }
0x81a5   :  { %5722 = vrot.lane.b32.xlu0 %v7046_v17, %s7085_s8  ;;  %v243_v17 = vunpack.c.l.s4 %v7087_v5 }
0x8217   :  { %v5723_v42 = vpop.permute.xlu0 %5722 }
0x8218   :  { %v7996_v44 = vmul.f32 %v5723_v42, %v5705_v35  ;;  %v244_v42 = vunpack.c.0.s8 %v243_v17  ;;  %v4301_v17 = vcombine.high %v7806_v54, %v7806_v54  ;;  %v1082_v54 = vcombine.high %v7354_v24, %v7354_v24 }
0x821a   :  { %8382 = vst [vmem:[#allocation6_spill] sm:$0xff] %v7996_v44  ;;  %v5739_v38 = vrot.slane %v7996_v44, 4 }
0x821c   :  { %5740 = vrot.lane.b32.xlu1 %v5739_v38, %s7086_s9  ;;  %v246_v38 = vshrl.u32 %v211_v10, 7 }
0x828e   :  { %v5741_v40 = vpop.permute.xlu1 %5740 }
0x828f   :  { %6614 = vmatmul.mubr.msk.f32.vlgmr.msra.gmra.mxu0 %vm256_vm6, %v5741_v40  ;;  %vm2054_vm6 = vcmask 1042368  }
0x8290   :  { %6648 = vmatprep.mubr.msk.f32.mxu0 %vm7084_vm5, %v8378_v22  ;;  %vm1932_vm5 = vcmask 976768  }
0x834f   :  { %v5810_v36 = vpop.f32.mrf.mxu0 }
0x8350   :  { %v5815_v62 = vrot.slane %v5810_v36, 2  ;;  %v8009_v36 = vsub.s32 %v244_v42, %v246_v38 }
0x8351   :  { %v6615_v27 = vpop.f32.mrf.mxu0 }
0x8352   :  { %v5817_v58 = vadd.f32 %v5815_v62, %v7959_v19  ;;  %v368_v19 = vrot.slane %v7196_v45, %v8009_v36  ;;  %v2167_v62 = vrot.slane %v7510_v8, %v8009_v36  ;;  %v4187_v27 = vrot.slane %v7791_v39, %v8009_v36 }
0x8353   :  { %v727_v45 = vrot.slane %v7245_v51, %v8009_v36  ;;  %v248_v21 = vrot.slane %v7181_v25, %v8009_v36  ;;  %v4069_v51 = vrot.slane %v7776_v23, %v8009_v36  ;;  %v4308_v42 = vrot.slane %v4301_v17, %v8009_v36 }
0x8354   :  { %v6200_v60 = vmul.f32 -1.442695, %v5817_v58  ;;  %v369_v10 = vcombine.high %v368_v19, %v368_v19  ;;  %v2641_v23 = vrot.slane %v7574_v31, %v8009_v36  ;;  %v4661_v38 = vrot.slane %v7855_v9, %v8009_v36 }
0x8356   :  { %7047 = vpow2.f32 %v6200_v60  ;;  %v4662_v19 = vcombine.high %v4661_v38, %v4661_v38 }
0x8357   :  { %7049 = vtanh.f32 %v5817_v58  ;;  %v2406_v58 = vrot.slane %v2399_v12, %v8009_v36  ;;  %v5137_v12 = vrot.slane %v7919_v7, %v8009_v36 }
0x8363   :  { %v7048_v52 = vpop.eup %7047 }
0x8364   :  { %v5821_v35 = vadd.f32 1.0, %v7048_v52  ;;  %v7050_v40 = vpop.eup %7049  ;;  %v2285_v52 = vrot.slane %v7525_v41, %v8009_v36  ;;  %v846_v41 = vrot.slane %v7260_v13, %v8009_v36  ;;  %v1089_v13 = vrot.slane %v1082_v54, %v8009_v36 }
0x8366   :  { %7051 = vrcp.f32 %v5821_v35  ;;  %v483_v35 = vcombine.high %v7211_v2, %v7211_v2  ;;  %v2286_v5 = vcombine.high %v2285_v52, %v2285_v52  ;;  %v847_v2 = vcombine.high %v846_v41, %v846_v41 }
0x8367   :  { %v1090_v9 = vcombine.high %v1089_v13, %v1089_v13  ;;  %v2042_v52 = vcombine.high %v7481_v32, %v7481_v32  ;;  %v2519_v41 = vcombine.high %v7555_v55, %v7555_v55  ;;  %v4421_v55 = vcombine.high %v7821_v18, %v7821_v18 }
0x8368   :  { %v490_v25 = vrot.slane %v483_v35, %v8009_v36 }
0x8369   :  { %v2526_v38 = vrot.slane %v2519_v41, %v8009_v36 }
0x836b   :  { %v2527_v13 = vcombine.high %v2526_v38, %v2526_v38  ;;  %v5872_v38 = vld [vmem:[%s8374_s4 + $0x58] sm:$0xff] }
0x8373   :  { %v7052_v44 = vpop.eup %7051 }
0x8374   :  { %v8007_v22 = vsel %vm7159_vm4, %v7050_v40, %v7052_v44  ;;  %v4188_v44 = vcombine.high %v4187_v27, %v4187_v27  ;;  %v2873_v40 = vcombine.high %v7604_v3, %v7604_v3  ;;  %v1326_v3 = vrot.slane %v7387_v20, %v8009_v36 }
0x8375   :  { %5831 = vrot.lane.b32.xlu0 %v8007_v22, %s7081_s28  ;;  %v3117_v27 = vrot.slane %v7638_v16, %v8009_v36  ;;  %v5138_v20 = vcombine.high %v5137_v12, %v5137_v12  ;;  %vm1811_vm4 = vcmask 911168  }
0x8376   :  { %v2880_v31 = vrot.slane %v2873_v40, %v8009_v36 }
0x8379   :  { %2168 = vrot.lane.b32.xlu0 %v2167_v62, %s7086_s9  ;;  %v4895_v62 = vcombine.high %v7885_v46, %v7885_v46  ;;  %v1327_v46 = vcombine.high %v1326_v3, %v1326_v3 }
0x837d   :  { %370 = vrot.lane.b32.xlu0 %v369_v10, %s7081_s28  ;;  %v4902_v10 = vrot.slane %v4895_v62, %v8009_v36  ;;  %v4428_v62 = vrot.slane %v4421_v55, %v8009_v36  ;;  %v5903_v55 = vld [vmem:[%s8374_s4 + $0x150] sm:$0xff] }
0x837f   :  { %v4903_v24 = vcombine.high %v4902_v10, %v4902_v10  ;;  %v2759_v10 = vrot.slane %v7589_v14, %v8009_v36  ;;  %v4429_v3 = vcombine.high %v4428_v62, %v4428_v62  ;;  %v5885_v62 = vld [vmem:[%s8374_s4 + $0xc0] sm:$0xff] }
0x8381   :  { %4189 = vrot.lane.b32.xlu0 %v4188_v44, %s7081_s28  ;;  %v1562_v44 = vcombine.high %v7417_v26, %v7417_v26  ;;  %v2760_v12 = vcombine.high %v2759_v10, %v2759_v10  ;;  %v5884_v10 = vld [vmem:[%s8374_s4 + $0xb8] sm:$0xff] }
0x8383   :  { %v1569_v16 = vrot.slane %v1562_v44, %v8009_v36 }
0x8385   :  { %2407 = vrot.lane.b32.xlu0 %v2406_v58, %s7088_s2  ;;  %v3349_v58 = vcombine.high %v7668_v4, %v7668_v4  ;;  %v1570_v7 = vcombine.high %v1569_v16, %v1569_v16  ;;  %v1806_v4 = vrot.slane %v7451_v6, %v8009_v36 }
0x8389   :  { %728 = vrot.lane.b32.xlu0 %v727_v45, %s7082_s29  ;;  %v3356_v45 = vrot.slane %v3349_v58, %v8009_v36  ;;  %v4775_v58 = vcombine.high %v7870_v34, %v7870_v34  ;;  %v3235_v34 = vrot.slane %v7653_v53, %v8009_v36 }
0x838b   :  { %v4782_v16 = vrot.slane %v4775_v58, %v8009_v36  ;;  %v5867_v58 = vld [vmem:[%s8374_s4 + $0x30] sm:$0xff] }
0x83e7   :  { %v5832_v8 = vpop.permute.xlu0 %5831 }
0x83e8   :  { %v5834_v39 = vmul.f32 %v5832_v8, %v8007_v22  ;;  %v5371_v8 = vcombine.high %v7949_v1, %v7949_v1  ;;  %v1807_v1 = vcombine.high %v1806_v4, %v1806_v4  ;;  %v5251_v4 = vcombine.high %v7934_v59, %v7934_v59 }
0x83e9   :  { %v5495_v59 = vrot.slane %v7967_v61, %v8009_v36  ;;  %v5907_v61 = vld [vmem:[%s8374_s4 + $0x170] sm:$0xff] }
0x83ea   :  { %5836 = vrot.lane.b32.xlu1 %v5834_v39, %s7082_s29  ;;  %v5378_v39 = vrot.slane %v5371_v8, %v8009_v36  ;;  %v5019_v8 = vrot.slane %v7904_v57, %v8009_v36  ;;  %v5258_v57 = vrot.slane %v5251_v4, %v8009_v36  ;;  %v5895_v4 = vld [vmem:[%s8374_s4 + $0x110] sm:$0xff] }
0x83eb   :  { %v2169_v60 = vpop.permute.xlu0 %2168 }
0x83ec   :  { %2171 = vst.msk [vmem:[#allocation2 + $0x2] sm:$0x3] %vm252_vm7, %v2169_v60  ;;  %v5379_v26 = vcombine.high %v5378_v39, %v5378_v39  ;;  %v3593_v60 = vrot.slane %v7702_v11, %v8009_v36  ;;  %v2049_v11 = vrot.slane %v2042_v52, %v8009_v36  ;;  %v3236_v39 = vcombine.high %v3235_v34, %v3235_v34  ;;  %v5892_v52 = vld [vmem:[%s8374_s4 + $0xf8] sm:$0xff]  ;;  %v5865_v34 = vld [vmem:[%s8374_s4 + $0x20] sm:$0xff] }
0x83ed   :  { %6309 = vmatprep.subr.mxu1 %v5892_v52  ;;  %v5893_v52 = vld [vmem:[%s8374_s4 + $0x100] sm:$0xff] }
0x83ee   :  { %249 = vrot.lane.b32.xlu1 %v248_v21, %s7086_s9  ;;  %v5613_v21 = vrot.slane %v7982_v37, %v8009_v36  ;;  %v2050_v37 = vcombine.high %v2049_v11, %v2049_v11  ;;  %v3945_v11 = vcombine.high %v7747_v29, %v7747_v29  ;;  %v5874_v29 = vld [vmem:[%s8374_s4 + $0x68] sm:$0xff] }
0x83f0   :  { %v5614_v6 = vcombine.high %v5613_v21, %v5613_v21  ;;  %v3952_v41 = vrot.slane %v3945_v11, %v8009_v36 }
0x83f2   :  { %4070 = vrot.lane.b32.xlu1 %v4069_v51, %s7086_s9  ;;  %s7091_s9 = smov 40   ;;  %v3825_v51 = vcombine.high %v7732_v43, %v7732_v43 }
0x83f4   :  { %v3832_v35 = vrot.slane %v3825_v51, %v8009_v36  ;;  %v5875_v51 = vld [vmem:[%s8374_s4 + $0x70] sm:$0xff] }
0x83f6   :  { %2287 = vrot.lane.b32.xlu1 %v2286_v5, %s7081_s28  ;;  %s7090_s28 = smov 32   ;;  %v5827_v5 = vrot.slane %v7992_v15, 6 }
0x83f8   :  { %v5829_v32 = vmul.f32 %v5827_v5, %v8007_v22  ;;  %v8384_v5 = vmov 0.0  }
0x83fa   :  { %491 = vrot.lane.b32.xlu1 %v490_v25, %s7088_s2  ;;  %v371_v25 = vpop.permute.xlu0 %370 }
0x83fe   :  { %4309 = vrot.lane.b32.xlu1 %v4308_v42, %s7088_s2  ;;  %s7059_s2 = scalar_lea.vmem %s6085_s15, 32 }
0x83ff   :  { %p7060_p0 = scmp.ne.s32.totalorder %s6085_s15, %s7059_s2  ;;  %p7065_p2 = scmp.lt.s32.totalorder %s7059_s2, %s7059_s2 }
0x8401   :  { %p7066_p3 = por %p7065_p2, %p7064_p1 }
0x8402   :  { %2642 = vrot.lane.b32.xlu1 %v2641_v23, %s7082_s29  ;;  %v4190_v23 = vpop.permute.xlu0 %4189 }
0x8403   :  { %p7067_p4 = pnand %p7066_p3, %p7060_p0 }
0x8406   :  { %848 = vrot.lane.b32.xlu1 %v847_v2, %s7085_s8  ;;  %v604_v2 = vcombine.high %v7226_v30, %v7226_v30  ;;  %v2408_v40 = vpop.permute.xlu0 %2407 }
0x8408   :  { %v611_v54 = vrot.slane %v604_v2, %v8009_v36  ;;  %v5888_v2 = vld [vmem:[%s8374_s4 + $0xd8] sm:$0xff] }
0x840a   :  { %4663 = vrot.lane.b32.xlu1 %v4662_v19, %s7085_s8  ;;  %v729_v18 = vpop.permute.xlu0 %728 }
0x840e   :  { %2881 = vrot.lane.b32.xlu1 %v2880_v31, %s7089_s3  ;;  %v612_v31 = vcombine.high %v611_v54, %v611_v54  ;;  %v5887_v54 = vld [vmem:[%s8374_s4 + $0xd0] sm:$0xff] }
0x8412   :  { %1091 = vrot.lane.b32.xlu1 %v1090_v9, %s7090_s28 }
0x8416   :  { %4904 = vrot.lane.b32.xlu1 %v4903_v24, %s7090_s28  ;;  %v4543_v24 = vrot.slane %v7840_v33, %v8009_v36  ;;  %v2993_v33 = vcombine.high %v7619_v28, %v7619_v28  ;;  %v1207_v28 = vrot.slane %v7372_v47, %v8009_v36  ;;  %v3469_v47 = vcombine.high %v7683_v0, %v7683_v0 }
0x8417   :  { %v3711_v0 = vrot.slane %v7717_v56, %v8009_v36  ;;  %v5876_v56 = vld [vmem:[%s8374_s4 + $0x78] sm:$0xff] }
0x8418   :  { %v3476_v53 = vrot.slane %v3469_v47, %v8009_v36  ;;  %6310 = vmatpush3.msra.mxu1 %v5876_v56  ;;  %v5879_v47 = vld [vmem:[%s8374_s4 + $0x90] sm:$0xff]  ;;  %v5861_v56 = vld [vmem:[%s8374_s4] sm:$0xff] }
0x8419   :  { %v3712_v21 = vcombine.high %v3711_v0, %v3711_v0  ;;  %v5894_v0 = vld [vmem:[%s8374_s4 + $0x108] sm:$0xff] }
0x841a   :  { %3118 = vrot.lane.b32.xlu1 %v3117_v27, %s7091_s9 }
0x841e   :  { %1328 = vrot.lane.b32.xlu1 %v1327_v46, %s7092_s16  ;;  %v961_v46 = vcombine.high %v7320_v48, %v7320_v48  ;;  %v3000_v48 = vrot.slane %v2993_v33, %v8009_v36 }
0x8420   :  { %v968_v14 = vrot.slane %v961_v46, %v8009_v36  ;;  %v5899_v46 = vld [vmem:[%s8374_s4 + $0x130] sm:$0xff] }
0x8422   :  { %5139 = vrot.lane.b32.xlu1 %v5138_v20, %s7092_s16 }
0x8426   :  { %3357 = vrot.lane.b32.xlu1 %v3356_v45, %s7093_s17  ;;  %v3001_v45 = vcombine.high %v3000_v48, %v3000_v48  ;;  %v5898_v48 = vld [vmem:[%s8374_s4 + $0x128] sm:$0xff] }
0x842a   :  { %1571 = vrot.lane.b32.xlu1 %v1570_v7, %s7094_s18  ;;  %v1441_v7 = vcombine.high %v7402_v49, %v7402_v49  ;;  %v3477_v49 = vcombine.high %v3476_v53, %v3476_v53 }
0x842e   :  { %5380 = vrot.lane.b32.xlu1 %v5379_v26, %s7094_s18  ;;  %v1448_v26 = vrot.slane %v1441_v7, %v8009_v36  ;;  %v5896_v7 = vld [vmem:[%s8374_s4 + $0x118] sm:$0xff] }
0x8432   :  { %3594 = vrot.lane.b32.xlu1 %v3593_v60, %s7095_s19  ;;  %v1687_v60 = vrot.slane %v7436_v50, %v8009_v36  ;;  %v5908_v50 = vld [vmem:[%s8374_s4 + $0x178] sm:$0xff] }
0x8433   :  { %6617 = vmatpush3.msra.mxu0 %v5908_v50 }
0x8434   :  { %6618 = vmatprep.subr.mxu0 %v8384_v5 }
0x8435   :  { %6619 = vmatpush3.msra.mxu0 %v5907_v61 }
0x8436   :  { %1808 = vrot.lane.b32.xlu1 %v1807_v1, %s7096_s20  ;;  %v1921_v1 = vcombine.high %v7466_v63, %v7466_v63  ;;  %v5891_v63 = vld [vmem:[%s8374_s4 + $0xf0] sm:$0xff]  ;;  %6620 = vmatprep.subr.mxu0 %v8384_v5 }
0x8437   :  { %6311 = vmatprep.subr.mxu1 %v5891_v63 }
0x8438   :  { %6312 = vmatpush3.msra.mxu1 %v5875_v51 }
0x843a   :  { %5615 = vrot.lane.b32.xlu1 %v5614_v6, %s7096_s20  ;;  %v1928_v6 = vrot.slane %v1921_v1, %v8009_v36 }
0x843e   :  { %3833 = vrot.lane.b32.xlu1 %v3832_v35, %s7097_s21  ;;  %v8383_v35 = vld [vmem:[#allocation6_spill] sm:$0xff] }
0x8442   :  { %2051 = vrot.lane.b32.xlu1 %v2050_v37, %s7098_s22  ;;  %v5727_v37 = vcombine.high %v8383_v35, %v8383_v35 }
0x845c   :  { %v5837_v43 = vpop.permute.xlu1 %5836 }
0x845d   :  { %v5839_v17 = vadd.f32 %v5837_v43, %v5829_v32  ;;  %v5890_v32 = vld [vmem:[%s8374_s4 + $0xe8] sm:$0xff]  ;;  %v5889_v43 = vld [vmem:[%s8374_s4 + $0xe0] sm:$0xff] }
0x845e   :  { %6313 = vmatprep.subr.mxu1 %v5890_v32 }
0x845f   :  { %7053 = vtanh.f32 %v5839_v17  ;;  %v5905_v17 = vld [vmem:[%s8374_s4 + $0x160] sm:$0xff]  ;;  %6314 = vmatpush3.msra.mxu1 %v5874_v29 }
0x8460   :  { %v250_v42 = vpop.permute.xlu1 %249  ;;  %6315 = vmatprep.subr.mxu1 %v5889_v43 }
0x8461   :  { %253 = vst.msk [vmem:[#allocation2] sm:$0x3] %vm252_vm7, %v250_v42  ;;  %v5873_v42 = vld [vmem:[%s8374_s4 + $0x60] sm:$0xff] }
0x8462   :  { %374 = vst.msk [vmem:[#allocation2] sm:$0x3] %vm373_vm8, %v371_v25  ;;  %v5906_v25 = vld [vmem:[%s8374_s4 + $0x168] sm:$0xff]  ;;  %6316 = vmatpush3.msra.mxu1 %v5873_v42 }
0x8463   :  { %6621 = vmatpush3.msra.mxu0 %v5906_v25  ;;  %6317 = vmatprep.subr.mxu1 %v5888_v2 }
0x8464   :  { %v4071_v15 = vpop.permute.xlu1 %4070  ;;  %6622 = vmatprep.subr.mxu0 %v8384_v5  ;;  %6318 = vmatpush3.msra.mxu1 %v5872_v38 }
0x8465   :  { %4073 = vst.msk [vmem:[#allocation2 + $0x4] sm:$0x3] %vm252_vm7, %v4071_v15  ;;  %6623 = vmatpush3.msra.mxu0 %v5905_v17  ;;  %v5904_v15 = vld [vmem:[%s8374_s4 + $0x158] sm:$0xff]  ;;  %6319 = vmatprep.subr.mxu1 %v5887_v54  ;;  %vm6076_vm7 = vcmask 9216  }
0x8466   :  { %4192 = vst.msk [vmem:[#allocation2 + $0x4] sm:$0x3] %vm373_vm8, %v4190_v23  ;;  %v5734_v23 = vrot.slane %v5727_v37, %v8009_v36  ;;  %6624 = vmatprep.subr.mxu0 %v8384_v5 }
0x8467   :  { %6625 = vmatpush3.msra.mxu0 %v5904_v15 }
0x8468   :  { %v2288_v19 = vpop.permute.xlu1 %2287  ;;  %6626 = vmatprep.subr.mxu0 %v8384_v5 }
0x8469   :  { %2290 = vst.msk [vmem:[#allocation2 + $0x2] sm:$0x3] %vm373_vm8, %v2288_v19  ;;  %v5871_v19 = vld [vmem:[%s8374_s4 + $0x50] sm:$0xff]  ;;  %6627 = vmatpush3.msra.mxu0 %v5903_v55 }
0x846a   :  { %2410 = vst.msk [vmem:[#allocation2 + $0x2] sm:$0x3] %vm494_vm9, %v2408_v40  ;;  %v3953_v40 = vcombine.high %v3952_v41, %v3952_v41  ;;  %6320 = vmatpush3.msra.mxu1 %v5871_v19  ;;  %6628 = vmatprep.subr.mxu0 %v8384_v5 }
0x846b   :  { %2529 = vst.msk [vmem:[#allocation2 + $0x2] sm:$0x3] %vm614_vm10, %v2527_v13  ;;  %v5886_v13 = vld [vmem:[%s8374_s4 + $0xc8] sm:$0xff] }
0x846c   :  { %v7054_v30 = vpop.eup %7053  ;;  %v492_v9 = vpop.permute.xlu1 %491  ;;  %6321 = vmatprep.subr.mxu1 %v5886_v13 }
0x846d   :  { %495 = vst.msk [vmem:[#allocation2] sm:$0x3] %vm494_vm9, %v492_v9  ;;  %5842 = vrot.lane.b32.xlu0 %v7054_v30, %s7085_s8  ;;  %v5902_v30 = vld [vmem:[%s8374_s4 + $0x148] sm:$0xff]  ;;  %v5901_v9 = vld [vmem:[%s8374_s4 + $0x140] sm:$0xff] }
0x846e   :  { %615 = vst.msk [vmem:[#allocation2] sm:$0x3] %vm614_vm10, %v612_v31  ;;  %v5870_v31 = vld [vmem:[%s8374_s4 + $0x48] sm:$0xff]  ;;  %6629 = vmatpush3.msra.mxu0 %v5902_v30 }
0x846f   :  { %732 = vst.msk [vmem:[#allocation2] sm:$0x3] %vm731_vm11, %v729_v18  ;;  %v5869_v18 = vld [vmem:[%s8374_s4 + $0x40] sm:$0xff]  ;;  %6322 = vmatpush3.msra.mxu1 %v5870_v31  ;;  %6630 = vmatprep.subr.mxu0 %v8384_v5 }
0x8470   :  { %v4310_v27 = vpop.permute.xlu1 %4309  ;;  %6323 = vmatprep.subr.mxu1 %v5885_v62  ;;  %6631 = vmatpush3.msra.mxu0 %v5901_v9 }
0x8471   :  { %4312 = vst.msk [vmem:[#allocation2 + $0x4] sm:$0x3] %vm494_vm9, %v4310_v27  ;;  %4544 = vrot.lane.b32.xlu0 %v4543_v24, %s7082_s29  ;;  %v5900_v24 = vld [vmem:[%s8374_s4 + $0x138] sm:$0xff]  ;;  %6324 = vmatpush3.msra.mxu1 %v5869_v18  ;;  %v5883_v27 = vld [vmem:[%s8374_s4 + $0xb0] sm:$0xff] }
0x8472   :  { %4431 = vst.msk [vmem:[#allocation2 + $0x4] sm:$0x3] %vm614_vm10, %v4429_v3  ;;  %v5868_v3 = vld [vmem:[%s8374_s4 + $0x38] sm:$0xff]  ;;  %6632 = vmatprep.subr.mxu0 %v8384_v5  ;;  %6325 = vmatprep.subr.mxu1 %v5884_v10 }
0x8473   :  { %6633 = vmatpush3.msra.mxu0 %v5900_v24  ;;  %6326 = vmatpush3.msra.mxu1 %v5868_v3 }
0x8474   :  { %v2643_v44 = vpop.permute.xlu1 %2642  ;;  %6634 = vmatprep.subr.mxu0 %v8384_v5  ;;  %6327 = vmatprep.subr.mxu1 %v5883_v27 }
0x8475   :  { %2645 = vst.msk [vmem:[#allocation2 + $0x2] sm:$0x3] %vm731_vm11, %v2643_v44  ;;  %2761 = vrot.lane.b32.xlu0 %v2760_v12, %s7085_s8  ;;  %6635 = vmatpush3.msra.mxu0 %v5899_v46 }
0x8476   :  { %6636 = vmatprep.subr.mxu0 %v8384_v5  ;;  %6328 = vmatpush3.msra.mxu1 %v5867_v58 }
0x8477   :  { %6637 = vmatpush3.msra.mxu0 %v5898_v48 }
0x8478   :  { %v849_v20 = vpop.permute.xlu1 %848  ;;  %6638 = vmatprep.subr.mxu0 %v8384_v5 }
0x8479   :  { %852 = vst.msk [vmem:[#allocation2] sm:$0x3] %vm851_vm12, %v849_v20  ;;  %969 = vrot.lane.b32.xlu0 %v968_v14, %s7089_s3  ;;  %v5882_v20 = vld [vmem:[%s8374_s4 + $0xa8] sm:$0xff] }
0x847a   :  { %6329 = vmatprep.subr.mxu1 %v5882_v20 }
0x847c   :  { %v4664_v12 = vpop.permute.xlu1 %4663 }
0x847d   :  { %4783 = vrot.lane.b32.xlu0 %v4782_v16, %s7089_s3  ;;  %v5866_v16 = vld [vmem:[%s8374_s4 + $0x28] sm:$0xff] }
0x847e   :  { %6330 = vmatpush3.msra.mxu1 %v5866_v16 }
0x8480   :  { %v2882_v44 = vpop.permute.xlu1 %2881 }
0x8481   :  { %3002 = vrot.lane.b32.xlu0 %v3001_v45, %s7090_s28  ;;  %v5881_v45 = vld [vmem:[%s8374_s4 + $0xa0] sm:$0xff] }
0x8482   :  { %6331 = vmatprep.subr.mxu1 %v5881_v45 }
0x8483   :  { %6332 = vmatpush3.msra.mxu1 %v5865_v34 }
0x8484   :  { %v8288_v14 = vpop.permute.xlu1 %1091 }
0x8485   :  { %1208 = vrot.lane.b32.xlu0 %v1207_v28, %s7091_s9  ;;  %v5897_v28 = vld [vmem:[%s8374_s4 + $0x120] sm:$0xff] }
0x8486   :  { %6639 = vmatpush3.msra.mxu0 %v5897_v28 }
0x8487   :  { %6640 = vmatprep.subr.mxu0 %v8384_v5 }
0x8488   :  { %v8290_v33 = vpop.permute.xlu1 %4904  ;;  %6641 = vmatpush3.msra.mxu0 %v5896_v7 }
0x8489   :  { %5020 = vrot.lane.b32.xlu0 %v5019_v8, %s7091_s9  ;;  %v5880_v8 = vld [vmem:[%s8374_s4 + $0x98] sm:$0xff]  ;;  %6642 = vmatprep.subr.mxu0 %v8384_v5 }
0x848a   :  { %6333 = vmatprep.subr.mxu1 %v5880_v8  ;;  %6643 = vmatpush3.msra.mxu0 %v5895_v4 }
0x848b   :  { %6644 = vmatprep.subr.mxu0 %v8384_v5 }
0x848c   :  { %v3119_v53 = vpop.permute.xlu1 %3118  ;;  %6645 = vmatpush3.msra.mxu0 %v5894_v0 }
0x848d   :  { %3237 = vrot.lane.b32.xlu0 %v3236_v39, %s7092_s16  ;;  %v5864_v39 = vld [vmem:[%s8374_s4 + $0x18] sm:$0xff]  ;;  %6646 = vmatprep.subr.mxu0 %v8384_v5 }
0x848e   :  { %6334 = vmatpush3.msra.mxu1 %v5864_v39  ;;  %6647 = vmatpush3.msra.mxu0 %v5893_v52 }
0x848f   :  { %6335 = vmatprep.subr.mxu1 %v5879_v47 }
0x8490   :  { %v1329_v63 = vpop.permute.xlu1 %1328 }
0x8491   :  { %1449 = vrot.lane.b32.xlu0 %v1448_v26, %s7093_s17 }
0x8494   :  { %v5140_v11 = vpop.permute.xlu1 %5139 }
0x8495   :  { %5259 = vrot.lane.b32.xlu0 %v5258_v57, %s7093_s17 }
0x8498   :  { %v3358_v37 = vpop.permute.xlu1 %3357 }
0x8499   :  { %3478 = vrot.lane.b32.xlu0 %v3477_v49, %s7094_s18  ;;  %v5863_v49 = vld [vmem:[%s8374_s4 + $0x10] sm:$0xff] }
0x849a   :  { %6336 = vmatpush3.msra.mxu1 %v5863_v49 }
0x849c   :  { %v1572_v25 = vpop.permute.xlu1 %1571 }
0x849d   :  { %1688 = vrot.lane.b32.xlu0 %v1687_v60, %s7095_s19  ;;  %v5878_v60 = vld [vmem:[%s8374_s4 + $0x88] sm:$0xff] }
0x849e   :  { %6337 = vmatprep.subr.mxu1 %v5878_v60 }
0x84a0   :  { %v5381_v43 = vpop.permute.xlu1 %5380 }
0x84a1   :  { %5496 = vrot.lane.b32.xlu0 %v5495_v59, %s7095_s19 }
0x84a4   :  { %v3595_v41 = vpop.permute.xlu1 %3594 }
0x84a5   :  { %3713 = vrot.lane.b32.xlu0 %v3712_v21, %s7096_s20  ;;  %v5877_v21 = vld [vmem:[%s8374_s4 + $0x80] sm:$0xff] }
0x84a8   :  { %v1809_v2 = vpop.permute.xlu1 %1808 }
0x84a9   :  { %1929 = vrot.lane.b32.xlu0 %v1928_v6, %s7097_s21 }
0x84ac   :  { %v5616_v54 = vpop.permute.xlu1 %5615 }
0x84ad   :  { %5735 = vrot.lane.b32.xlu0 %v5734_v23, %s7097_s21 }
0x84b1   :  { %3954 = vrot.lane.b32.xlu0 %v3953_v40, %s7098_s22  ;;  %v3834_v40 = vpop.permute.xlu1 %3833 }
0x84b5   :  { %v2052_v30 = vpop.permute.xlu1 %2051 }
0x84df   :  { %v5843_v26 = vpop.permute.xlu0 %5842 }
0x84e0   :  { %v5845_v57 = vmul.f32 %v5843_v26, %v8007_v22  ;;  %v5862_v22 = vld [vmem:[%s8374_s4 + $0x8] sm:$0xff] }
0x84e1   :  { %6338 = vmatpush3.msra.mxu1 %v5862_v22 }
0x84e2   :  { %v5847_v59 = vcombine.high %v5845_v57, %v5845_v57  ;;  %6339 = vmatprep.subr.mxu1 %v5877_v21 }
0x84e3   :  { %v4545_v1 = vpop.permute.xlu0 %4544  ;;  %6340 = vmatpush3.msra.mxu1 %v5861_v56 }
0x84e4   :  { %v5854_v50 = vrot.slane %v5847_v59, %v8009_v36  ;;  %4547 = vst.msk [vmem:[#allocation2 + $0x4] sm:$0x3] %vm731_vm11, %v4545_v1 }
0x84e5   :  { %4666 = vst.msk [vmem:[#allocation2 + $0x4] sm:$0x3] %vm851_vm12, %v4664_v12 }
0x84e6   :  { %v5855_v61 = vcombine.high %v5854_v50, %v5854_v50 }
0x84e7   :  { %v2762_v51 = vpop.permute.xlu0 %2761 }
0x84e8   :  { %2764 = vst.msk [vmem:[#allocation2 + $0x2] sm:$0x3] %vm851_vm12, %v2762_v51  ;;  %5856 = vrot.lane.b32.xlu1 %v5855_v61, %s7098_s22 }
0x84e9   :  { %2884 = vst.msk [vmem:[#allocation2 + $0x2] sm:$0x3] %vm972_vm13, %v2882_v44 }
0x84eb   :  { %v970_v6 = vpop.permute.xlu0 %969 }
0x84ec   :  { %973 = vst.msk [vmem:[#allocation2] sm:$0x3] %vm972_vm13, %v970_v6 }
0x84ed   :  { %1095 = vst.msk [vmem:[#allocation2] sm:$0x3] %vm1094_vm14, %v8288_v14  ;;  %v6201_v14 = vld [vmem:[%s8375_s5] ss:$0 sm:$0xff] }
0x84ef   :  { %v4784_v35 = vpop.permute.xlu0 %4783 }
0x84f0   :  { %4786 = vst.msk [vmem:[#allocation2 + $0x4] sm:$0x3] %vm972_vm13, %v4784_v35 }
0x84f1   :  { %4907 = vst.msk [vmem:[#allocation2 + $0x4] sm:$0x3] %vm1094_vm14, %v8290_v33 }
0x84f3   :  { %v3003_v5 = vpop.permute.xlu0 %3002 }
0x84f4   :  { %3005 = vst.msk [vmem:[#allocation2 + $0x2] sm:$0x3] %vm1094_vm14, %v3003_v5 }
0x84f5   :  { %3121 = vst.msk [vmem:[#allocation2 + $0x2] sm:$0x3] %vm1211_vm15, %v3119_v53 }
0x84f7   :  { %v1209_v32 = vpop.permute.xlu0 %1208 }
0x84f8   :  { %1212 = vst.msk [vmem:[#allocation2] sm:$0x3] %vm1211_vm15, %v1209_v32 }
0x84f9   :  { %1332 = vst.msk [vmem:[#allocation2] sm:$0x3] %vm1331_vm0, %v1329_v63 }
0x84fb   :  { %v5021_v29 = vpop.permute.xlu0 %5020 }
0x84fc   :  { %5023 = vst.msk [vmem:[#allocation2 + $0x4] sm:$0x3] %vm1211_vm15, %v5021_v29 }
0x84fd   :  { %5142 = vst.msk [vmem:[#allocation2 + $0x4] sm:$0x3] %vm1331_vm0, %v5140_v11 }
0x84ff   :  { %v3238_v17 = vpop.permute.xlu0 %3237 }
0x8500   :  { %3240 = vst.msk [vmem:[#allocation2 + $0x2] sm:$0x3] %vm1331_vm0, %v3238_v17 }
0x8501   :  { %3360 = vst.msk [vmem:[#allocation2 + $0x2] sm:$0x3] %vm1452_vm1, %v3358_v37 }
0x8503   :  { %v1450_v42 = vpop.permute.xlu0 %1449 }
0x8504   :  { %1453 = vst.msk [vmem:[#allocation2] sm:$0x3] %vm1452_vm1, %v1450_v42 }
0x8505   :  { %1575 = vst.msk [vmem:[#allocation2] sm:$0x3] %vm1574_vm2, %v1572_v25 }
0x8507   :  { %v5260_v23 = vpop.permute.xlu0 %5259 }
0x8508   :  { %5262 = vst.msk [vmem:[#allocation2 + $0x4] sm:$0x3] %vm1452_vm1, %v5260_v23 }
0x8509   :  { %5383 = vst.msk [vmem:[#allocation2 + $0x4] sm:$0x3] %vm1574_vm2, %v5381_v43 }
0x850b   :  { %v3479_v15 = vpop.permute.xlu0 %3478 }
0x850c   :  { %3481 = vst.msk [vmem:[#allocation2 + $0x2] sm:$0x3] %vm1574_vm2, %v3479_v15 }
0x850d   :  { %3597 = vst.msk [vmem:[#allocation2 + $0x2] sm:$0x3] %vm1691_vm3, %v3595_v41 }
0x850f   :  { %v1689_v38 = vpop.permute.xlu0 %1688 }
0x8510   :  { %1692 = vst.msk [vmem:[#allocation2] sm:$0x3] %vm1691_vm3, %v1689_v38 }
0x8511   :  { %1812 = vst.msk [vmem:[#allocation2] sm:$0x3] %vm1811_vm4, %v1809_v2 }
0x8513   :  { %v5497_v55 = vpop.permute.xlu0 %5496 }
0x8514   :  { %5499 = vst.msk [vmem:[#allocation2 + $0x4] sm:$0x3] %vm1691_vm3, %v5497_v55 }
0x8515   :  { %5618 = vst.msk [vmem:[#allocation2 + $0x4] sm:$0x3] %vm1811_vm4, %v5616_v54 }
0x8517   :  { %v3714_v19 = vpop.permute.xlu0 %3713 }
0x8518   :  { %3716 = vst.msk [vmem:[#allocation2 + $0x2] sm:$0x3] %vm1811_vm4, %v3714_v19 }
0x8519   :  { %3836 = vst.msk [vmem:[#allocation2 + $0x2] sm:$0x3] %vm1932_vm5, %v3834_v40 }
0x851b   :  { %v1930_v13 = vpop.permute.xlu0 %1929 }
0x851c   :  { %1933 = vst.msk [vmem:[#allocation2] sm:$0x3] %vm1932_vm5, %v1930_v13 }
0x851d   :  { %2055 = vst.msk [vmem:[#allocation2] sm:$0x3] %vm2054_vm6, %v2052_v30 }
0x851f   :  { %v5736_v31 = vpop.permute.xlu0 %5735 }
0x8520   :  { %5738 = vst.msk [vmem:[#allocation2 + $0x4] sm:$0x3] %vm1932_vm5, %v5736_v31 }
0x8523   :  { %v3955_v62 = vpop.permute.xlu0 %3954 }
0x8524   :  { %3957 = vst.msk [vmem:[#allocation2 + $0x2] sm:$0x3] %vm2054_vm6, %v3955_v62 }
0x855a   :  { %v5857_v9 = vpop.permute.xlu1 %5856 }
0x855b   :  { %5859 = vst.msk [vmem:[#allocation2 + $0x4] sm:$0x3] %vm2054_vm6, %v5857_v9 }
0x8562   :  { %v5860_v18 = vld [vmem:[#allocation2] sm:$0x3f] }
0x8563   :  { %v5917_v10 = vcombine.high %v5860_v18, %v5860_v18  ;;  %v5924_v24 = vrot.slane %v5860_v18, %v8009_v36 }
0x8565   :  { %v5932_v3 = vcombine.high %v5924_v24, %v5924_v24  ;;  %v5931_v27 = vrot.slane %v5917_v10, %v8009_v36 }
0x8567   :  { %6000 = vmatprep.mubr.f32.mxu1 %v5932_v3  ;;  %6649 = vmatmul.mubr.f32.vlgmr.msra.gmra.mxu0 %v5931_v27 }
0x8568   :  { %6001 = vmatmul.mubr.f32.vlgmr.msra.gmra.mxu1 %v5924_v24 }
0x8627   :  { %v6072_v46 = vpop.f32.mrf.mxu0 }
0x8628   :  { %v6341_v12 = vpop.f32.mrf.mxu1 }
0x8629   :  { %v6650_v44 = vpop.f32.mrf.mxu0 }
0x862a   :  { %v6342_v33 = vpop.f32.mrf.mxu1 }
0x862b   :  { %v6343_v58 = vadd.f32 %v6342_v33, %v6341_v12 }
0x862d   :  { %v6003_v20 = vadd.f32 %v6343_v58, %v6201_v14 }
0x862f   :  { %v6073_v48 = vadd.f32 %v6072_v46, %v6003_v20 }
0x8631   :  { %6077 = vst.msk [vmem:[#allocation3] sm:$0x3] %vm6076_vm7, %v6073_v48 }
0x8632   :  { %7070 = shalt.err (!%p7067_p4)
}
0x8633   :  { %6087 = dma.vmem_to_hbm [thread:$0]  %s6085_s15, 32, %s8376_s6, [#allocation4]  }
0x8634   :  { %7079 = dma.done.wait [#allocation4], 32  }
0x8635   :  { %7080 = vsyncadd [#allocation4], 4294967264 }
0x8636   :  { %6091 = vsyncpa [#allocation4], 1 }

</bundles_post_ra>
